<compile_context>
chip_gen: v7x
topology: tpu7x:2x2x1
jax: 0.10.0
libtpu: 0.0.40
codegen_flags: <defaults>
</compile_context>

<pallas_src>
import functools

import jax
import jax.numpy as jnp
from jax.experimental import pallas as pl
from jax.experimental.pallas import tpu as pltpu

F32 = jnp.float32
BF16 = jnp.bfloat16
LN_EPS = 1e-5
NEG_INF = -1e30   # finite large negative instead of -inf (NaN-safe)


# ---------------------------------------------------------------------------
# In-kernel helpers
# ---------------------------------------------------------------------------

def _layer_norm(z, g, b):
    mu = jnp.mean(z, axis=-1, keepdims=True)
    var = jnp.mean((z - mu) ** 2, axis=-1, keepdims=True)
    return (z - mu) * jax.lax.rsqrt(var + LN_EPS) * g + b


def _mha_heads(q, k, v, mask_add, ctx_ref, n_heads):
    """Multi-head attention core.

    Writes each head's context into column slices of the VMEM scratch
    `ctx_ref` (no lane-axis concat).  Returns (ctx, head-averaged weights).
    NOTE: the reference MHA never applies 1/sqrt(Dh) scaling -> reproduced.
    """
    T, C = q.shape
    S = k.shape[0]
    Dh = C // n_heads
    qb, kb, vb = q.astype(BF16), k.astype(BF16), v.astype(BF16)
    p_sum = jnp.zeros((T, S), F32)
    for h in range(n_heads):                     # static unroll over heads
        sl = slice(h * Dh, (h + 1) * Dh)
        s = jax.lax.dot_general(qb[:, sl], kb[:, sl], (((1,), (1,)), ((), ())),
                                preferred_element_type=F32)          # (T, S)
        if mask_add is not None:
            s = s + mask_add
        m = jnp.max(s, axis=-1, keepdims=True)
        e = jnp.exp(s - m)
        denom = jnp.sum(e, axis=-1, keepdims=True)
        p = e * pl.reciprocal(denom, approx=False)   # exact -> weights sum to 1
        p_sum = p_sum + p
        ctx_ref[:, sl] = jnp.dot(p.astype(BF16), vb[:, sl],
                                 preferred_element_type=F32)
    return ctx_ref[...], p_sum * (1.0 / n_heads)


# ---------------------------------------------------------------------------
# Fused decoder-stack kernel (whole stack + output head, one batch / grid step)
# ---------------------------------------------------------------------------

def _decoder_stack_kernel(
        x_ref, mk_ref, mv_ref, mask_ref,
        wqkv_ref, bqkv_ref, wos_ref, bos_ref,
        wqc_ref, bqc_ref, wkc_ref, bkc_ref, wvc_ref, bvc_ref, woc_ref, boc_ref,
        w1_ref, b1_ref, w2_ref, b2_ref, lng_ref, lnb_ref,
        how_ref, hob_ref,
        out_ref, pred_ref, cache_ref, wself_ref, wcross_ref,
        ctx_ref, *, n_heads, n_layers, batch):
    b = pl.program_id(0)
    x = x_ref[0]                                   # (T, C) f32
    C = x.shape[1]
    mask = mask_ref[...]                           # (T, T) additive mask

    # Memory features arrive in their native (S, B, C) layout; select this
    # step's batch column in-kernel (avoids XLA-side transposes feeding us).
    mk_all = mk_ref[...]
    mv_all = mv_ref[...]
    mk = mk_all[:, 0, :]
    mv = mv_all[:, 0, :]
    for bb in range(1, batch):
        sel = b == bb
        mk = jnp.where(sel, mk_all[:, bb, :], mk)
        mv = jnp.where(sel, mv_all[:, bb, :], mv)

    for li in range(n_layers):                     # static unroll over layers
        ln_g = lng_ref[li]                         # (3, 1, C)
        ln_b = lnb_ref[li]

        # ---- self attention + residual + LayerNorm1 --------------------
        qkv = jnp.dot(x.astype(BF16), wqkv_ref[li],
                      preferred_element_type=F32) + bqkv_ref[li]      # (T, 3C)
        ctx, w_self = _mha_heads(qkv[:, :C], qkv[:, C:2 * C], qkv[:, 2 * C:],
                                 mask, ctx_ref, n_heads)
        attn = jnp.dot(ctx.astype(BF16), wos_ref[li],
                       preferred_element_type=F32) + bos_ref[li]
        x = _layer_norm(x + attn, ln_g[0], ln_b[0])
        wself_ref[li] = w_self[None]

        # ---- cross attention + residual + LayerNorm2 -------------------
        q = jnp.dot(x.astype(BF16), wqc_ref[li],
                    preferred_element_type=F32) + bqc_ref[li]
        k = jnp.dot(mk.astype(BF16), wkc_ref[li],
                    preferred_element_type=F32) + bkc_ref[li]
        v = jnp.dot(mv.astype(BF16), wvc_ref[li],
                    preferred_element_type=F32) + bvc_ref[li]
        ctx, w_cross = _mha_heads(q, k, v, None, ctx_ref, n_heads)
        attn = jnp.dot(ctx.astype(BF16), woc_ref[li],
                       preferred_element_type=F32) + boc_ref[li]
        x = _layer_norm(x + attn, ln_g[1], ln_b[1])
        wcross_ref[li] = w_cross[None]

        # ---- FFN + residual + LayerNorm3 --------------------------------
        h = jnp.maximum(jnp.dot(x.astype(BF16), w1_ref[li],
                                preferred_element_type=F32) + b1_ref[li], 0.0)
        y = jnp.dot(h.astype(BF16), w2_ref[li],
                    preferred_element_type=F32) + b2_ref[li]
        x = _layer_norm(x + y, ln_g[2], ln_b[2])
        cache_ref[li] = x[None]

    out_ref[0] = x
    # fused ReLU + 1x1-conv head; weight padded to 128 lanes -> lane-dense store
    pred_ref[0] = jnp.dot(jnp.maximum(x, 0.0).astype(BF16), how_ref[...],
                          preferred_element_type=F32) + hob_ref[...]


# ---------------------------------------------------------------------------
# pallas_call wrapper
# ---------------------------------------------------------------------------

def decoder_stack_fused(pos_tokens_btc, mem_key_sbc, mem_val_sbc, mask_add,
                        sp, out_w_pad, out_b_pad, n_heads, n_layers):
    B, T, C = pos_tokens_btc.shape
    S = mem_key_sbc.shape[0]
    Npad = out_w_pad.shape[1]

    def full(a):
        nd = a.ndim
        return pl.BlockSpec(a.shape, lambda b: (0,) * nd)

    kernel = functools.partial(_decoder_stack_kernel, n_heads=n_heads,
                               n_layers=n_layers, batch=B)

    operands = (pos_tokens_btc, mem_key_sbc, mem_val_sbc, mask_add,
                sp["wqkv"], sp["bqkv"], sp["wo_s"], sp["bo_s"],
                sp["wq_c"], sp["bq_c"], sp["wk_c"], sp["bk_c"],
                sp["wv_c"], sp["bv_c"], sp["wo_c"], sp["bo_c"],
                sp["w1"], sp["b1"], sp["w2"], sp["b2"],
                sp["ln_g"], sp["ln_b"], out_w_pad, out_b_pad)

    in_specs = ([pl.BlockSpec((1, T, C), lambda b: (b, 0, 0))]
                + [full(a) for a in operands[1:]])

    out_shape = (
        jax.ShapeDtypeStruct((B, T, C), F32),             # final hidden state
        jax.ShapeDtypeStruct((B, T, Npad), F32),          # padded predictions
        jax.ShapeDtypeStruct((n_layers, B, T, C), F32),   # per-layer cache
        jax.ShapeDtypeStruct((n_layers, B, T, T), F32),   # self-attn weights
        jax.ShapeDtypeStruct((n_layers, B, T, S), F32),   # cross-attn weights
    )
    out_specs = (
        pl.BlockSpec((1, T, C), lambda b: (b, 0, 0)),
        pl.BlockSpec((1, T, Npad), lambda b: (b, 0, 0)),
        pl.BlockSpec((n_layers, 1, T, C), lambda b: (0, b, 0, 0)),
        pl.BlockSpec((n_layers, 1, T, T), lambda b: (0, b, 0, 0)),
        pl.BlockSpec((n_layers, 1, T, S), lambda b: (0, b, 0, 0)),
    )

    # TODO(synk): when scaling d_model/dim_ff to production sizes, single-buffer
    # the constant-index weight specs (pipeline_mode=pl.Buffered(1)) and set
    # vmem_limit_bytes explicitly for v7x's 64 MiB VMEM.
    return pl.pallas_call(
        kernel,
        out_shape=out_shape,
        grid=(B,),
        in_specs=in_specs,
        out_specs=out_specs,
        scratch_shapes=[pltpu.VMEM((T, C), F32)],
        compiler_params=pltpu.CompilerParams(
            dimension_semantics=("parallel",)),
    )(*operands)


# ---------------------------------------------------------------------------
# Model composition (minimal JAX glue around the single fused kernel)
# ---------------------------------------------------------------------------

def generate_target_mask(target_len, dec_attn_win):
    i = jnp.arange(target_len)[:, None]
    j = jnp.arange(target_len)[None, :]
    if dec_attn_win == 1:
        return j > i
    band = (j <= i) & (j >= i - (dec_attn_win - 1))
    return jnp.logical_not(band)


def build_pe(dim, len_max):
    div = jnp.exp(-jnp.arange(0.0, dim, 2) / dim * jnp.log(10000.0))[:, None]
    l_pos = jnp.arange(0.0, len_max)[None, :]
    pe = jnp.zeros((1, dim, len_max), F32)
    pe = pe.at[:, ::2, :].set(jnp.sin(l_pos * div)[None])
    pe = pe.at[:, 1::2, :].set(jnp.cos(l_pos * div)[None])
    return pe


def decoder_forward(raw_features_1D, enhanced_features_1D, tokens, reduced_size,
                    token_len, features_size, params, cfg, start=0):
    maxlen = cfg["maxlen"]
    n_heads = cfg["n_heads"]
    n_layers = cfg["n_layers"]
    out_categories = cfg["out_categories"]
    B, L = tokens.shape

    # embedding + 1D positional encoding (tiny XLA glue, kept outside kernel)
    emb = jnp.take(params["embedding"], tokens, axis=0)               # (B, L, C)
    pos_tokens = emb + params["pe_t"][start:start + L][None]          # (B, L, C)

    num_pred = L
    # cache is None on first call -> stays None (dec_attn_win branch), reproduced.
    num_tokens_to_keep = min(num_pred + maxlen - 1, pos_tokens.shape[1],
                             int(token_len[0]))
    pos_tokens = pos_tokens[:, -num_tokens_to_keep:, :]
    # TODO(synk): if token_len[0] < L the mask keeps num_pred rows while the
    # sequence is trimmed -- same latent shape bug as the PyTorch reference;
    # the demo uses token_len[0] == L.

    tm_bool = generate_target_mask(L, maxlen)[-num_pred:, -num_tokens_to_keep:]
    mask_add = jnp.where(tm_bool, NEG_INF, 0.0).astype(F32)
    # TODO(synk): key_target_mask / key_memory_mask are dead code in the
    # reference MHA (masked_fill result discarded) -> intentionally omitted.

    hid_btc, pred_pad, cache_lbtc, wself, wcross = decoder_stack_fused(
        pos_tokens, enhanced_features_1D, raw_features_1D, mask_add,
        params["stack"], params["out_w_pad"], params["out_b_pad"],
        n_heads, n_layers)

    # mirror reference unpacking order: 'mix' collects self-attn weights,
    # 'self' collects cross-attn weights.
    all_weights = {"self": [wcross[i] for i in range(n_layers)],
                   "mix": [wself[i] for i in range(n_layers)]}
    cache = cache_lbtc.transpose(0, 2, 1, 3)               # (n_layers, T, B, C)
    output = hid_btc.transpose(1, 0, 2)                    # (T, B, C); num_pred==T
    predictions = pred_pad[:, :, :out_categories].transpose(0, 2, 1)
    hidden_predict = None
    return output, predictions, hidden_predict, cache, all_weights


# ---------------------------------------------------------------------------
# Deterministic parameter init (synthetic; matmul weights stored in bf16,
# per-layer weights stacked along a leading layer axis for the fused kernel)
# ---------------------------------------------------------------------------

def init_params(key, d_model, dim_ff, n_layers, out_categories, maxlen):
    def lin(k, fi, fo):
        kw, kb = jax.random.split(k)
        w = (jax.random.normal(kw, (fi, fo), F32) * 0.08).astype(BF16)
        b = jax.random.normal(kb, (1, fo), F32) * 0.02
        return w, b

    params = {
        "embedding": jax.random.normal(jax.random.fold_in(key, 0),
                                       (out_categories, d_model), F32) * 0.1,
        "pe_t": build_pe(d_model, maxlen)[0].T,      # (len_max, d_model)
    }

    # Lane-dense output head: pad out_categories up to a multiple of 128.
    n_pad = ((out_categories + 127) // 128) * 128
    kw, kb = jax.random.split(jax.random.fold_in(key, 1))
    out_w = jax.random.normal(kw, (d_model, out_categories), F32) * 0.08
    out_b = jax.random.normal(kb, (1, out_categories), F32) * 0.02
    params["out_w_pad"] = (jnp.zeros((d_model, n_pad), BF16)
                           .at[:, :out_categories].set(out_w.astype(BF16)))
    params["out_b_pad"] = (jnp.zeros((1, n_pad), F32)
                           .at[:, :out_categories].set(out_b))

    names = ["wqkv", "bqkv", "wo_s", "bo_s",
             "wq_c", "bq_c", "wk_c", "bk_c", "wv_c", "bv_c", "wo_c", "bo_c",
             "w1", "b1", "w2", "b2", "ln_g", "ln_b"]
    acc = {n: [] for n in names}
    for li in range(n_layers):
        lk = jax.random.fold_in(key, 100 + li)
        # self-attn: fused QKV weights
        wq, bq = lin(jax.random.fold_in(lk, 0), d_model, d_model)
        wk, bk = lin(jax.random.fold_in(lk, 1), d_model, d_model)
        wv, bv = lin(jax.random.fold_in(lk, 2), d_model, d_model)
        wo_s, bo_s = lin(jax.random.fold_in(lk, 3), d_model, d_model)
        acc["wqkv"].append(jnp.concatenate([wq, wk, wv], axis=1))
        acc["bqkv"].append(jnp.concatenate([bq, bk, bv], axis=1))
        acc["wo_s"].append(wo_s)
        acc["bo_s"].append(bo_s)
        # cross-attn
        for nm, seed in (("q", 10), ("k", 11), ("v", 12), ("o", 13)):
            w, b_ = lin(jax.random.fold_in(lk, seed), d_model, d_model)
            acc["w%s_c" % nm].append(w)
            acc["b%s_c" % nm].append(b_)
        # FFN
        w1, b1 = lin(jax.random.fold_in(lk, 20), d_model, dim_ff)
        w2, b2 = lin(jax.random.fold_in(lk, 21), dim_ff, d_model)
        acc["w1"].append(w1); acc["b1"].append(b1)
        acc["w2"].append(w2); acc["b2"].append(b2)
        # LayerNorms (3 per layer)
        acc["ln_g"].append(jnp.ones((3, 1, d_model), F32))
        acc["ln_b"].append(jnp.zeros((3, 1, d_model), F32))
    params["stack"] = {n: jnp.stack(acc[n], axis=0) for n in names}
    return params


# ---------------------------------------------------------------------------
# Demo
# ---------------------------------------------------------------------------

if __name__ == "__main__":
    d_model, dim_ff, n_layers, maxlen, out_categories, n_heads = 32, 64, 2, 16, 11, 4
    B, L, S_mem = 2, 8, 16
    cfg = {"d_model": d_model, "maxlen": maxlen, "n_heads": n_heads,
           "n_layers": n_layers, "out_categories": out_categories}

    key = jax.random.PRNGKey(0)
    k_tok, k_raw, k_enh, k_par = jax.random.split(key, 4)

    tokens = jax.random.randint(k_tok, (B, L), 0, out_categories, dtype=jnp.int32)
    raw_features_1D = jax.random.normal(k_raw, (S_mem, B, d_model), F32)
    enhanced_features_1D = jax.random.normal(k_enh, (S_mem, B, d_model), F32)

    token_len = [L, L]
    features_size = (B, 8, 4, 4)          # H*W == S_mem (only used by dead-code masks)
    reduced_size = [(4, 4), (4, 4)]

    params = init_params(k_par, d_model, dim_ff, n_layers, out_categories, maxlen)

    @jax.jit
    def fwd(raw, enh, tok, prm):
        return decoder_forward(raw, enh, tok, reduced_size, token_len,
                               features_size, prm, cfg, start=0)

    output, predictions, hidden_predict, cache, weights = fwd(
        raw_features_1D, enhanced_features_1D, tokens, params)

    jax.block_until_ready((output, predictions, cache,
                           weights["self"][-1], weights["mix"][-1]))

    assert output.shape == (L, B, d_model)
    assert predictions.shape == (B, out_categories, L)
    assert cache.shape == (n_layers, L, B, d_model)
    assert weights["self"][-1].shape == (B, L, S_mem)
    assert weights["mix"][-1].shape == (B, L, L)
    print("KERNEL_OK")
</pallas_src>

<mosaic_0001>
module attributes {stable_mosaic.version = 11 : i64} {
  func.func @_decoder_stack_kernel(%arg0: i32, %arg1: memref<1x8x32xf32, #tpu.memory_space<vmem>>, %arg2: memref<16x2x32xf32, #tpu.memory_space<vmem>>, %arg3: memref<16x2x32xf32, #tpu.memory_space<vmem>>, %arg4: memref<8x8xf32, #tpu.memory_space<vmem>>, %arg5: memref<2x32x96xbf16, #tpu.memory_space<vmem>>, %arg6: memref<2x1x96xf32, #tpu.memory_space<vmem>>, %arg7: memref<2x32x32xbf16, #tpu.memory_space<vmem>>, %arg8: memref<2x1x32xf32, #tpu.memory_space<vmem>>, %arg9: memref<2x32x32xbf16, #tpu.memory_space<vmem>>, %arg10: memref<2x1x32xf32, #tpu.memory_space<vmem>>, %arg11: memref<2x32x32xbf16, #tpu.memory_space<vmem>>, %arg12: memref<2x1x32xf32, #tpu.memory_space<vmem>>, %arg13: memref<2x32x32xbf16, #tpu.memory_space<vmem>>, %arg14: memref<2x1x32xf32, #tpu.memory_space<vmem>>, %arg15: memref<2x32x32xbf16, #tpu.memory_space<vmem>>, %arg16: memref<2x1x32xf32, #tpu.memory_space<vmem>>, %arg17: memref<2x32x64xbf16, #tpu.memory_space<vmem>>, %arg18: memref<2x1x64xf32, #tpu.memory_space<vmem>>, %arg19: memref<2x64x32xbf16, #tpu.memory_space<vmem>>, %arg20: memref<2x1x32xf32, #tpu.memory_space<vmem>>, %arg21: memref<2x3x1x32xf32, #tpu.memory_space<vmem>>, %arg22: memref<2x3x1x32xf32, #tpu.memory_space<vmem>>, %arg23: memref<32x128xbf16, #tpu.memory_space<vmem>>, %arg24: memref<1x128xf32, #tpu.memory_space<vmem>>, %arg25: memref<1x8x32xf32, #tpu.memory_space<vmem>>, %arg26: memref<1x8x128xf32, #tpu.memory_space<vmem>>, %arg27: memref<2x1x8x32xf32, #tpu.memory_space<vmem>>, %arg28: memref<2x1x8x8xf32, #tpu.memory_space<vmem>>, %arg29: memref<2x1x8x16xf32, #tpu.memory_space<vmem>>, %arg30: memref<8x32xf32, #tpu.memory_space<vmem>>) attributes {dimension_semantics = [#tpu.dimension_semantics<parallel>], iteration_bounds = array<i64: 2>, scalar_prefetch = 0 : i64, scratch_operands = 1 : i64, tpu.core_type = #tpu.core_type<tc>, window_params = [{transform_indices = @transform_0, window_bounds = array<i64: 1, 8, 32>}, {pipeline_mode = #tpu.pipeline_mode<synchronous>, transform_indices = @transform_1, window_bounds = array<i64: 16, 2, 32>}, {pipeline_mode = #tpu.pipeline_mode<synchronous>, transform_indices = @transform_2, window_bounds = array<i64: 16, 2, 32>}, {pipeline_mode = #tpu.pipeline_mode<synchronous>, transform_indices = @transform_3, window_bounds = array<i64: 8, 8>}, {pipeline_mode = #tpu.pipeline_mode<synchronous>, transform_indices = @transform_4, window_bounds = array<i64: 2, 32, 96>}, {pipeline_mode = #tpu.pipeline_mode<synchronous>, transform_indices = @transform_5, window_bounds = array<i64: 2, 1, 96>}, {pipeline_mode = #tpu.pipeline_mode<synchronous>, transform_indices = @transform_6, window_bounds = array<i64: 2, 32, 32>}, {pipeline_mode = #tpu.pipeline_mode<synchronous>, transform_indices = @transform_7, window_bounds = array<i64: 2, 1, 32>}, {pipeline_mode = #tpu.pipeline_mode<synchronous>, transform_indices = @transform_8, window_bounds = array<i64: 2, 32, 32>}, {pipeline_mode = #tpu.pipeline_mode<synchronous>, transform_indices = @transform_9, window_bounds = array<i64: 2, 1, 32>}, {pipeline_mode = #tpu.pipeline_mode<synchronous>, transform_indices = @transform_10, window_bounds = array<i64: 2, 32, 32>}, {pipeline_mode = #tpu.pipeline_mode<synchronous>, transform_indices = @transform_11, window_bounds = array<i64: 2, 1, 32>}, {pipeline_mode = #tpu.pipeline_mode<synchronous>, transform_indices = @transform_12, window_bounds = array<i64: 2, 32, 32>}, {pipeline_mode = #tpu.pipeline_mode<synchronous>, transform_indices = @transform_13, window_bounds = array<i64: 2, 1, 32>}, {pipeline_mode = #tpu.pipeline_mode<synchronous>, transform_indices = @transform_14, window_bounds = array<i64: 2, 32, 32>}, {pipeline_mode = #tpu.pipeline_mode<synchronous>, transform_indices = @transform_15, window_bounds = array<i64: 2, 1, 32>}, {pipeline_mode = #tpu.pipeline_mode<synchronous>, transform_indices = @transform_16, window_bounds = array<i64: 2, 32, 64>}, {pipeline_mode = #tpu.pipeline_mode<synchronous>, transform_indices = @transform_17, window_bounds = array<i64: 2, 1, 64>}, {pipeline_mode = #tpu.pipeline_mode<synchronous>, transform_indices = @transform_18, window_bounds = array<i64: 2, 64, 32>}, {pipeline_mode = #tpu.pipeline_mode<synchronous>, transform_indices = @transform_19, window_bounds = array<i64: 2, 1, 32>}, {pipeline_mode = #tpu.pipeline_mode<synchronous>, transform_indices = @transform_20, window_bounds = array<i64: 2, 3, 1, 32>}, {pipeline_mode = #tpu.pipeline_mode<synchronous>, transform_indices = @transform_21, window_bounds = array<i64: 2, 3, 1, 32>}, {pipeline_mode = #tpu.pipeline_mode<synchronous>, transform_indices = @transform_22, window_bounds = array<i64: 32, 128>}, {pipeline_mode = #tpu.pipeline_mode<synchronous>, transform_indices = @transform_23, window_bounds = array<i64: 1, 128>}, {transform_indices = @transform_24, window_bounds = array<i64: 1, 8, 32>}, {transform_indices = @transform_25, window_bounds = array<i64: 1, 8, 128>}, {transform_indices = @transform_26, window_bounds = array<i64: 2, 1, 8, 32>}, {transform_indices = @transform_27, window_bounds = array<i64: 2, 1, 8, 8>}, {transform_indices = @transform_28, window_bounds = array<i64: 2, 1, 8, 16>}]} {
    %c0 = arith.constant 0 : index
    %c0_0 = arith.constant 0 : index
    %c0_1 = arith.constant 0 : index
    %0 = vector.load %arg1[%c0, %c0_0, %c0_1] : memref<1x8x32xf32, #tpu.memory_space<vmem>>, vector<1x8x32xf32>
    %1 = vector.shape_cast %0 : vector<1x8x32xf32> to vector<8x32xf32>
    %c0_2 = arith.constant 0 : index
    %c0_3 = arith.constant 0 : index
    %2 = vector.load %arg4[%c0_2, %c0_3] : memref<8x8xf32, #tpu.memory_space<vmem>>, vector<8x8xf32>
    %c0_4 = arith.constant 0 : index
    %c0_5 = arith.constant 0 : index
    %c0_6 = arith.constant 0 : index
    %3 = vector.load %arg2[%c0_4, %c0_5, %c0_6] : memref<16x2x32xf32, #tpu.memory_space<vmem>>, vector<16x2x32xf32>
    %c0_7 = arith.constant 0 : index
    %c0_8 = arith.constant 0 : index
    %c0_9 = arith.constant 0 : index
    %4 = vector.load %arg3[%c0_7, %c0_8, %c0_9] : memref<16x2x32xf32, #tpu.memory_space<vmem>>, vector<16x2x32xf32>
    %5 = vector.extract_strided_slice %3 {offsets = [0, 0, 0], sizes = [16, 1, 32], strides = [1, 1, 1]} : vector<16x2x32xf32> to vector<16x1x32xf32>
    %6 = vector.shape_cast %5 : vector<16x1x32xf32> to vector<16x32xf32>
    %7 = vector.extract_strided_slice %4 {offsets = [0, 0, 0], sizes = [16, 1, 32], strides = [1, 1, 1]} : vector<16x2x32xf32> to vector<16x1x32xf32>
    %8 = vector.shape_cast %7 : vector<16x1x32xf32> to vector<16x32xf32>
    %c1_i32 = arith.constant 1 : i32
    %9 = arith.cmpi eq, %arg0, %c1_i32 : i32
    %10 = vector.extract_strided_slice %3 {offsets = [0, 1, 0], sizes = [16, 1, 32], strides = [1, 1, 1]} : vector<16x2x32xf32> to vector<16x1x32xf32>
    %11 = vector.shape_cast %10 : vector<16x1x32xf32> to vector<16x32xf32>
    %12 = arith.select %9, %11, %6 : vector<16x32xf32>
    %13 = vector.extract_strided_slice %4 {offsets = [0, 1, 0], sizes = [16, 1, 32], strides = [1, 1, 1]} : vector<16x2x32xf32> to vector<16x1x32xf32>
    %14 = vector.shape_cast %13 : vector<16x1x32xf32> to vector<16x32xf32>
    %15 = arith.select %9, %14, %8 : vector<16x32xf32>
    %c0_10 = arith.constant 0 : index
    %c0_11 = arith.constant 0 : index
    %c0_12 = arith.constant 0 : index
    %c0_13 = arith.constant 0 : index
    %16 = vector.load %arg21[%c0_10, %c0_11, %c0_12, %c0_13] : memref<2x3x1x32xf32, #tpu.memory_space<vmem>>, vector<1x3x1x32xf32>
    %17 = vector.shape_cast %16 : vector<1x3x1x32xf32> to vector<3x1x32xf32>
    %c0_14 = arith.constant 0 : index
    %c0_15 = arith.constant 0 : index
    %c0_16 = arith.constant 0 : index
    %c0_17 = arith.constant 0 : index
    %18 = vector.load %arg22[%c0_14, %c0_15, %c0_16, %c0_17] : memref<2x3x1x32xf32, #tpu.memory_space<vmem>>, vector<1x3x1x32xf32>
    %19 = vector.shape_cast %18 : vector<1x3x1x32xf32> to vector<3x1x32xf32>
    %20 = arith.truncf %1 : vector<8x32xf32> to vector<8x32xbf16>
    %c0_18 = arith.constant 0 : index
    %c0_19 = arith.constant 0 : index
    %c0_20 = arith.constant 0 : index
    %21 = vector.load %arg5[%c0_18, %c0_19, %c0_20] : memref<2x32x96xbf16, #tpu.memory_space<vmem>>, vector<1x32x96xbf16>
    %22 = vector.shape_cast %21 : vector<1x32x96xbf16> to vector<32x96xbf16>
    %cst = arith.constant dense<0.000000e+00> : vector<8x96xf32>
    %23 = tpu.matmul %20, %22, %cst {dimension_numbers = #tpu.dot_dimension_numbers<[1], [0], [0], [1], [0, 0, 1, 1], [], []>} : vector<8x32xbf16>, vector<32x96xbf16>, vector<8x96xf32> -> vector<8x96xf32>
    %c0_21 = arith.constant 0 : index
    %c0_22 = arith.constant 0 : index
    %c0_23 = arith.constant 0 : index
    %24 = vector.load %arg6[%c0_21, %c0_22, %c0_23] : memref<2x1x96xf32, #tpu.memory_space<vmem>>, vector<1x1x96xf32>
    %25 = vector.shape_cast %24 : vector<1x1x96xf32> to vector<1x96xf32>
    %26 = vector.broadcast %25 : vector<1x96xf32> to vector<8x96xf32>
    %27 = arith.addf %23, %26 : vector<8x96xf32>
    %28 = vector.extract_strided_slice %27 {offsets = [0, 0], sizes = [8, 32], strides = [1, 1]} : vector<8x96xf32> to vector<8x32xf32>
    %29 = vector.extract_strided_slice %27 {offsets = [0, 32], sizes = [8, 32], strides = [1, 1]} : vector<8x96xf32> to vector<8x32xf32>
    %30 = vector.extract_strided_slice %27 {offsets = [0, 64], sizes = [8, 32], strides = [1, 1]} : vector<8x96xf32> to vector<8x32xf32>
    %31 = arith.truncf %28 : vector<8x32xf32> to vector<8x32xbf16>
    %32 = arith.truncf %29 : vector<8x32xf32> to vector<8x32xbf16>
    %33 = arith.truncf %30 : vector<8x32xf32> to vector<8x32xbf16>
    %cst_24 = arith.constant 0.000000e+00 : f32
    %34 = vector.broadcast %cst_24 : f32 to vector<8x8xf32>
    %35 = vector.extract_strided_slice %31 {offsets = [0, 0], sizes = [8, 8], strides = [1, 1]} : vector<8x32xbf16> to vector<8x8xbf16>
    %36 = vector.extract_strided_slice %32 {offsets = [0, 0], sizes = [8, 8], strides = [1, 1]} : vector<8x32xbf16> to vector<8x8xbf16>
    %cst_25 = arith.constant dense<0.000000e+00> : vector<8x8xf32>
    %37 = tpu.matmul %35, %36, %cst_25 {dimension_numbers = #tpu.dot_dimension_numbers<[1], [1], [0], [0], [0, 0, 1, 0], [], []>} : vector<8x8xbf16>, vector<8x8xbf16>, vector<8x8xf32> -> vector<8x8xf32>
    %38 = arith.addf %37, %2 : vector<8x8xf32>
    %cst_26 = arith.constant dense<0xFF800000> : vector<8xf32>
    %39 = vector.multi_reduction <maximumf>, %38, %cst_26 [1] : vector<8x8xf32> to vector<8xf32>
    %40 = vector.shape_cast %39 : vector<8xf32> to vector<8x1xf32>
    %41 = vector.broadcast %40 : vector<8x1xf32> to vector<8x8xf32>
    %42 = arith.subf %38, %41 : vector<8x8xf32>
    %43 = math.exp %42 : vector<8x8xf32>
    %cst_27 = arith.constant dense<0.000000e+00> : vector<8xf32>
    %44 = vector.multi_reduction <add>, %43, %cst_27 [1] : vector<8x8xf32> to vector<8xf32>
    %45 = vector.shape_cast %44 : vector<8xf32> to vector<8x1xf32>
    %46 = tpu.reciprocal %45 : vector<8x1xf32> -> vector<8x1xf32>
    %47 = vector.broadcast %46 : vector<8x1xf32> to vector<8x8xf32>
    %48 = arith.mulf %43, %47 : vector<8x8xf32>
    %49 = arith.addf %34, %48 : vector<8x8xf32>
    %50 = arith.truncf %48 : vector<8x8xf32> to vector<8x8xbf16>
    %51 = vector.extract_strided_slice %33 {offsets = [0, 0], sizes = [8, 8], strides = [1, 1]} : vector<8x32xbf16> to vector<8x8xbf16>
    %cst_28 = arith.constant dense<0.000000e+00> : vector<8x8xf32>
    %52 = tpu.matmul %50, %51, %cst_28 {dimension_numbers = #tpu.dot_dimension_numbers<[1], [0], [0], [1], [0, 0, 1, 1], [], []>} : vector<8x8xbf16>, vector<8x8xbf16>, vector<8x8xf32> -> vector<8x8xf32>
    %c0_29 = arith.constant 0 : index
    %c0_30 = arith.constant 0 : index
    %53 = vector.load %arg30[%c0_29, %c0_30] : memref<8x32xf32, #tpu.memory_space<vmem>>, vector<8x8xf32>
    tpu.vector_store %arg30[%c0_29, %c0_30], %52 {strides = array<i32>} : memref<8x32xf32, #tpu.memory_space<vmem>>, vector<8x8xf32>,
    %54 = vector.extract_strided_slice %31 {offsets = [0, 8], sizes = [8, 8], strides = [1, 1]} : vector<8x32xbf16> to vector<8x8xbf16>
    %55 = vector.extract_strided_slice %32 {offsets = [0, 8], sizes = [8, 8], strides = [1, 1]} : vector<8x32xbf16> to vector<8x8xbf16>
    %cst_31 = arith.constant dense<0.000000e+00> : vector<8x8xf32>
    %56 = tpu.matmul %54, %55, %cst_31 {dimension_numbers = #tpu.dot_dimension_numbers<[1], [1], [0], [0], [0, 0, 1, 0], [], []>} : vector<8x8xbf16>, vector<8x8xbf16>, vector<8x8xf32> -> vector<8x8xf32>
    %57 = arith.addf %56, %2 : vector<8x8xf32>
    %cst_32 = arith.constant dense<0xFF800000> : vector<8xf32>
    %58 = vector.multi_reduction <maximumf>, %57, %cst_32 [1] : vector<8x8xf32> to vector<8xf32>
    %59 = vector.shape_cast %58 : vector<8xf32> to vector<8x1xf32>
    %60 = vector.broadcast %59 : vector<8x1xf32> to vector<8x8xf32>
    %61 = arith.subf %57, %60 : vector<8x8xf32>
    %62 = math.exp %61 : vector<8x8xf32>
    %cst_33 = arith.constant dense<0.000000e+00> : vector<8xf32>
    %63 = vector.multi_reduction <add>, %62, %cst_33 [1] : vector<8x8xf32> to vector<8xf32>
    %64 = vector.shape_cast %63 : vector<8xf32> to vector<8x1xf32>
    %65 = tpu.reciprocal %64 : vector<8x1xf32> -> vector<8x1xf32>
    %66 = vector.broadcast %65 : vector<8x1xf32> to vector<8x8xf32>
    %67 = arith.mulf %62, %66 : vector<8x8xf32>
    %68 = arith.addf %49, %67 : vector<8x8xf32>
    %69 = arith.truncf %67 : vector<8x8xf32> to vector<8x8xbf16>
    %70 = vector.extract_strided_slice %33 {offsets = [0, 8], sizes = [8, 8], strides = [1, 1]} : vector<8x32xbf16> to vector<8x8xbf16>
    %cst_34 = arith.constant dense<0.000000e+00> : vector<8x8xf32>
    %71 = tpu.matmul %69, %70, %cst_34 {dimension_numbers = #tpu.dot_dimension_numbers<[1], [0], [0], [1], [0, 0, 1, 1], [], []>} : vector<8x8xbf16>, vector<8x8xbf16>, vector<8x8xf32> -> vector<8x8xf32>
    %c0_35 = arith.constant 0 : index
    %c8 = arith.constant 8 : index
    %72 = vector.load %arg30[%c0_35, %c8] : memref<8x32xf32, #tpu.memory_space<vmem>>, vector<8x8xf32>
    tpu.vector_store %arg30[%c0_35, %c8], %71 {strides = array<i32>} : memref<8x32xf32, #tpu.memory_space<vmem>>, vector<8x8xf32>,
    %73 = vector.extract_strided_slice %31 {offsets = [0, 16], sizes = [8, 8], strides = [1, 1]} : vector<8x32xbf16> to vector<8x8xbf16>
    %74 = vector.extract_strided_slice %32 {offsets = [0, 16], sizes = [8, 8], strides = [1, 1]} : vector<8x32xbf16> to vector<8x8xbf16>
    %cst_36 = arith.constant dense<0.000000e+00> : vector<8x8xf32>
    %75 = tpu.matmul %73, %74, %cst_36 {dimension_numbers = #tpu.dot_dimension_numbers<[1], [1], [0], [0], [0, 0, 1, 0], [], []>} : vector<8x8xbf16>, vector<8x8xbf16>, vector<8x8xf32> -> vector<8x8xf32>
    %76 = arith.addf %75, %2 : vector<8x8xf32>
    %cst_37 = arith.constant dense<0xFF800000> : vector<8xf32>
    %77 = vector.multi_reduction <maximumf>, %76, %cst_37 [1] : vector<8x8xf32> to vector<8xf32>
    %78 = vector.shape_cast %77 : vector<8xf32> to vector<8x1xf32>
    %79 = vector.broadcast %78 : vector<8x1xf32> to vector<8x8xf32>
    %80 = arith.subf %76, %79 : vector<8x8xf32>
    %81 = math.exp %80 : vector<8x8xf32>
    %cst_38 = arith.constant dense<0.000000e+00> : vector<8xf32>
    %82 = vector.multi_reduction <add>, %81, %cst_38 [1] : vector<8x8xf32> to vector<8xf32>
    %83 = vector.shape_cast %82 : vector<8xf32> to vector<8x1xf32>
    %84 = tpu.reciprocal %83 : vector<8x1xf32> -> vector<8x1xf32>
    %85 = vector.broadcast %84 : vector<8x1xf32> to vector<8x8xf32>
    %86 = arith.mulf %81, %85 : vector<8x8xf32>
    %87 = arith.addf %68, %86 : vector<8x8xf32>
    %88 = arith.truncf %86 : vector<8x8xf32> to vector<8x8xbf16>
    %89 = vector.extract_strided_slice %33 {offsets = [0, 16], sizes = [8, 8], strides = [1, 1]} : vector<8x32xbf16> to vector<8x8xbf16>
    %cst_39 = arith.constant dense<0.000000e+00> : vector<8x8xf32>
    %90 = tpu.matmul %88, %89, %cst_39 {dimension_numbers = #tpu.dot_dimension_numbers<[1], [0], [0], [1], [0, 0, 1, 1], [], []>} : vector<8x8xbf16>, vector<8x8xbf16>, vector<8x8xf32> -> vector<8x8xf32>
    %c0_40 = arith.constant 0 : index
    %c16 = arith.constant 16 : index
    %91 = vector.load %arg30[%c0_40, %c16] : memref<8x32xf32, #tpu.memory_space<vmem>>, vector<8x8xf32>
    tpu.vector_store %arg30[%c0_40, %c16], %90 {strides = array<i32>} : memref<8x32xf32, #tpu.memory_space<vmem>>, vector<8x8xf32>,
    %92 = vector.extract_strided_slice %31 {offsets = [0, 24], sizes = [8, 8], strides = [1, 1]} : vector<8x32xbf16> to vector<8x8xbf16>
    %93 = vector.extract_strided_slice %32 {offsets = [0, 24], sizes = [8, 8], strides = [1, 1]} : vector<8x32xbf16> to vector<8x8xbf16>
    %cst_41 = arith.constant dense<0.000000e+00> : vector<8x8xf32>
    %94 = tpu.matmul %92, %93, %cst_41 {dimension_numbers = #tpu.dot_dimension_numbers<[1], [1], [0], [0], [0, 0, 1, 0], [], []>} : vector<8x8xbf16>, vector<8x8xbf16>, vector<8x8xf32> -> vector<8x8xf32>
    %95 = arith.addf %94, %2 : vector<8x8xf32>
    %cst_42 = arith.constant dense<0xFF800000> : vector<8xf32>
    %96 = vector.multi_reduction <maximumf>, %95, %cst_42 [1] : vector<8x8xf32> to vector<8xf32>
    %97 = vector.shape_cast %96 : vector<8xf32> to vector<8x1xf32>
    %98 = vector.broadcast %97 : vector<8x1xf32> to vector<8x8xf32>
    %99 = arith.subf %95, %98 : vector<8x8xf32>
    %100 = math.exp %99 : vector<8x8xf32>
    %cst_43 = arith.constant dense<0.000000e+00> : vector<8xf32>
    %101 = vector.multi_reduction <add>, %100, %cst_43 [1] : vector<8x8xf32> to vector<8xf32>
    %102 = vector.shape_cast %101 : vector<8xf32> to vector<8x1xf32>
    %103 = tpu.reciprocal %102 : vector<8x1xf32> -> vector<8x1xf32>
    %104 = vector.broadcast %103 : vector<8x1xf32> to vector<8x8xf32>
    %105 = arith.mulf %100, %104 : vector<8x8xf32>
    %106 = arith.addf %87, %105 : vector<8x8xf32>
    %107 = arith.truncf %105 : vector<8x8xf32> to vector<8x8xbf16>
    %108 = vector.extract_strided_slice %33 {offsets = [0, 24], sizes = [8, 8], strides = [1, 1]} : vector<8x32xbf16> to vector<8x8xbf16>
    %cst_44 = arith.constant dense<0.000000e+00> : vector<8x8xf32>
    %109 = tpu.matmul %107, %108, %cst_44 {dimension_numbers = #tpu.dot_dimension_numbers<[1], [0], [0], [1], [0, 0, 1, 1], [], []>} : vector<8x8xbf16>, vector<8x8xbf16>, vector<8x8xf32> -> vector<8x8xf32>
    %c0_45 = arith.constant 0 : index
    %c24 = arith.constant 24 : index
    %110 = vector.load %arg30[%c0_45, %c24] : memref<8x32xf32, #tpu.memory_space<vmem>>, vector<8x8xf32>
    tpu.vector_store %arg30[%c0_45, %c24], %109 {strides = array<i32>} : memref<8x32xf32, #tpu.memory_space<vmem>>, vector<8x8xf32>,
    %c0_46 = arith.constant 0 : index
    %c0_47 = arith.constant 0 : index
    %111 = vector.load %arg30[%c0_46, %c0_47] : memref<8x32xf32, #tpu.memory_space<vmem>>, vector<8x32xf32>
    %cst_48 = arith.constant 2.500000e-01 : f32
    %112 = vector.broadcast %cst_48 : f32 to vector<8x8xf32>
    %113 = arith.mulf %106, %112 : vector<8x8xf32>
    %114 = arith.truncf %111 : vector<8x32xf32> to vector<8x32xbf16>
    %c0_49 = arith.constant 0 : index
    %c0_50 = arith.constant 0 : index
    %c0_51 = arith.constant 0 : index
    %115 = vector.load %arg7[%c0_49, %c0_50, %c0_51] : memref<2x32x32xbf16, #tpu.memory_space<vmem>>, vector<1x32x32xbf16>
    %116 = vector.shape_cast %115 : vector<1x32x32xbf16> to vector<32x32xbf16>
    %cst_52 = arith.constant dense<0.000000e+00> : vector<8x32xf32>
    %117 = tpu.matmul %114, %116, %cst_52 {dimension_numbers = #tpu.dot_dimension_numbers<[1], [0], [0], [1], [0, 0, 1, 1], [], []>} : vector<8x32xbf16>, vector<32x32xbf16>, vector<8x32xf32> -> vector<8x32xf32>
    %c0_53 = arith.constant 0 : index
    %c0_54 = arith.constant 0 : index
    %c0_55 = arith.constant 0 : index
    %118 = vector.load %arg8[%c0_53, %c0_54, %c0_55] : memref<2x1x32xf32, #tpu.memory_space<vmem>>, vector<1x1x32xf32>
    %119 = vector.shape_cast %118 : vector<1x1x32xf32> to vector<1x32xf32>
    %120 = vector.broadcast %119 : vector<1x32xf32> to vector<8x32xf32>
    %121 = arith.addf %117, %120 : vector<8x32xf32>
    %122 = arith.addf %1, %121 : vector<8x32xf32>
    %123 = vector.extract_strided_slice %17 {offsets = [0, 0, 0], sizes = [1, 1, 32], strides = [1, 1, 1]} : vector<3x1x32xf32> to vector<1x1x32xf32>
    %124 = vector.shape_cast %123 : vector<1x1x32xf32> to vector<1x32xf32>
    %125 = vector.extract_strided_slice %19 {offsets = [0, 0, 0], sizes = [1, 1, 32], strides = [1, 1, 1]} : vector<3x1x32xf32> to vector<1x1x32xf32>
    %126 = vector.shape_cast %125 : vector<1x1x32xf32> to vector<1x32xf32>
    %cst_56 = arith.constant dense<0.000000e+00> : vector<8xf32>
    %127 = vector.multi_reduction <add>, %122, %cst_56 [1] : vector<8x32xf32> to vector<8xf32>
    %128 = vector.shape_cast %127 : vector<8xf32> to vector<8x1xf32>
    %cst_57 = arith.constant 3.200000e+01 : f32
    %129 = vector.broadcast %cst_57 : f32 to vector<8x1xf32>
    %130 = arith.divf %128, %129 : vector<8x1xf32>
    %131 = vector.broadcast %130 : vector<8x1xf32> to vector<8x32xf32>
    %132 = arith.subf %122, %131 : vector<8x32xf32>
    %133 = arith.mulf %132, %132 : vector<8x32xf32>
    %cst_58 = arith.constant dense<0.000000e+00> : vector<8xf32>
    %134 = vector.multi_reduction <add>, %133, %cst_58 [1] : vector<8x32xf32> to vector<8xf32>
    %135 = vector.shape_cast %134 : vector<8xf32> to vector<8x1xf32>
    %cst_59 = arith.constant 3.200000e+01 : f32
    %136 = vector.broadcast %cst_59 : f32 to vector<8x1xf32>
    %137 = arith.divf %135, %136 : vector<8x1xf32>
    %138 = vector.broadcast %130 : vector<8x1xf32> to vector<8x32xf32>
    %139 = arith.subf %122, %138 : vector<8x32xf32>
    %cst_60 = arith.constant 9.99999974E-6 : f32
    %140 = vector.broadcast %cst_60 : f32 to vector<8x1xf32>
    %141 = arith.addf %137, %140 : vector<8x1xf32>
    %142 = math.rsqrt %141 : vector<8x1xf32>
    %143 = vector.broadcast %142 : vector<8x1xf32> to vector<8x32xf32>
    %144 = arith.mulf %139, %143 : vector<8x32xf32>
    %145 = vector.broadcast %124 : vector<1x32xf32> to vector<8x32xf32>
    %146 = arith.mulf %144, %145 : vector<8x32xf32>
    %147 = vector.broadcast %126 : vector<1x32xf32> to vector<8x32xf32>
    %148 = arith.addf %146, %147 : vector<8x32xf32>
    %149 = vector.shape_cast %113 : vector<8x8xf32> to vector<1x8x8xf32>
    %c0_61 = arith.constant 0 : index
    %c0_62 = arith.constant 0 : index
    %c0_63 = arith.constant 0 : index
    %c0_64 = arith.constant 0 : index
    %150 = vector.load %arg28[%c0_61, %c0_62, %c0_63, %c0_64] : memref<2x1x8x8xf32, #tpu.memory_space<vmem>>, vector<1x1x8x8xf32>
    %151 = vector.shape_cast %150 : vector<1x1x8x8xf32> to vector<1x8x8xf32>
    %152 = vector.shape_cast %149 : vector<1x8x8xf32> to vector<1x1x8x8xf32>
    tpu.vector_store %arg28[%c0_61, %c0_62, %c0_63, %c0_64], %152 {strides = array<i32>} : memref<2x1x8x8xf32, #tpu.memory_space<vmem>>, vector<1x1x8x8xf32>,
    %153 = arith.truncf %148 : vector<8x32xf32> to vector<8x32xbf16>
    %c0_65 = arith.constant 0 : index
    %c0_66 = arith.constant 0 : index
    %c0_67 = arith.constant 0 : index
    %154 = vector.load %arg9[%c0_65, %c0_66, %c0_67] : memref<2x32x32xbf16, #tpu.memory_space<vmem>>, vector<1x32x32xbf16>
    %155 = vector.shape_cast %154 : vector<1x32x32xbf16> to vector<32x32xbf16>
    %cst_68 = arith.constant dense<0.000000e+00> : vector<8x32xf32>
    %156 = tpu.matmul %153, %155, %cst_68 {dimension_numbers = #tpu.dot_dimension_numbers<[1], [0], [0], [1], [0, 0, 1, 1], [], []>} : vector<8x32xbf16>, vector<32x32xbf16>, vector<8x32xf32> -> vector<8x32xf32>
    %c0_69 = arith.constant 0 : index
    %c0_70 = arith.constant 0 : index
    %c0_71 = arith.constant 0 : index
    %157 = vector.load %arg10[%c0_69, %c0_70, %c0_71] : memref<2x1x32xf32, #tpu.memory_space<vmem>>, vector<1x1x32xf32>
    %158 = vector.shape_cast %157 : vector<1x1x32xf32> to vector<1x32xf32>
    %159 = vector.broadcast %158 : vector<1x32xf32> to vector<8x32xf32>
    %160 = arith.addf %156, %159 : vector<8x32xf32>
    %161 = arith.truncf %12 : vector<16x32xf32> to vector<16x32xbf16>
    %c0_72 = arith.constant 0 : index
    %c0_73 = arith.constant 0 : index
    %c0_74 = arith.constant 0 : index
    %162 = vector.load %arg11[%c0_72, %c0_73, %c0_74] : memref<2x32x32xbf16, #tpu.memory_space<vmem>>, vector<1x32x32xbf16>
    %163 = vector.shape_cast %162 : vector<1x32x32xbf16> to vector<32x32xbf16>
    %cst_75 = arith.constant dense<0.000000e+00> : vector<16x32xf32>
    %164 = tpu.matmul %161, %163, %cst_75 {dimension_numbers = #tpu.dot_dimension_numbers<[1], [0], [0], [1], [0, 0, 1, 1], [], []>} : vector<16x32xbf16>, vector<32x32xbf16>, vector<16x32xf32> -> vector<16x32xf32>
    %c0_76 = arith.constant 0 : index
    %c0_77 = arith.constant 0 : index
    %c0_78 = arith.constant 0 : index
    %165 = vector.load %arg12[%c0_76, %c0_77, %c0_78] : memref<2x1x32xf32, #tpu.memory_space<vmem>>, vector<1x1x32xf32>
    %166 = vector.shape_cast %165 : vector<1x1x32xf32> to vector<1x32xf32>
    %167 = vector.broadcast %166 : vector<1x32xf32> to vector<16x32xf32>
    %168 = arith.addf %164, %167 : vector<16x32xf32>
    %169 = arith.truncf %15 : vector<16x32xf32> to vector<16x32xbf16>
    %c0_79 = arith.constant 0 : index
    %c0_80 = arith.constant 0 : index
    %c0_81 = arith.constant 0 : index
    %170 = vector.load %arg13[%c0_79, %c0_80, %c0_81] : memref<2x32x32xbf16, #tpu.memory_space<vmem>>, vector<1x32x32xbf16>
    %171 = vector.shape_cast %170 : vector<1x32x32xbf16> to vector<32x32xbf16>
    %cst_82 = arith.constant dense<0.000000e+00> : vector<16x32xf32>
    %172 = tpu.matmul %169, %171, %cst_82 {dimension_numbers = #tpu.dot_dimension_numbers<[1], [0], [0], [1], [0, 0, 1, 1], [], []>} : vector<16x32xbf16>, vector<32x32xbf16>, vector<16x32xf32> -> vector<16x32xf32>
    %c0_83 = arith.constant 0 : index
    %c0_84 = arith.constant 0 : index
    %c0_85 = arith.constant 0 : index
    %173 = vector.load %arg14[%c0_83, %c0_84, %c0_85] : memref<2x1x32xf32, #tpu.memory_space<vmem>>, vector<1x1x32xf32>
    %174 = vector.shape_cast %173 : vector<1x1x32xf32> to vector<1x32xf32>
    %175 = vector.broadcast %174 : vector<1x32xf32> to vector<16x32xf32>
    %176 = arith.addf %172, %175 : vector<16x32xf32>
    %177 = arith.truncf %160 : vector<8x32xf32> to vector<8x32xbf16>
    %178 = arith.truncf %168 : vector<16x32xf32> to vector<16x32xbf16>
    %179 = arith.truncf %176 : vector<16x32xf32> to vector<16x32xbf16>
    %cst_86 = arith.constant 0.000000e+00 : f32
    %180 = vector.broadcast %cst_86 : f32 to vector<8x16xf32>
    %181 = vector.extract_strided_slice %177 {offsets = [0, 0], sizes = [8, 8], strides = [1, 1]} : vector<8x32xbf16> to vector<8x8xbf16>
    %182 = vector.extract_strided_slice %178 {offsets = [0, 0], sizes = [16, 8], strides = [1, 1]} : vector<16x32xbf16> to vector<16x8xbf16>
    %cst_87 = arith.constant dense<0.000000e+00> : vector<8x16xf32>
    %183 = tpu.matmul %181, %182, %cst_87 {dimension_numbers = #tpu.dot_dimension_numbers<[1], [1], [0], [0], [0, 0, 1, 0], [], []>} : vector<8x8xbf16>, vector<16x8xbf16>, vector<8x16xf32> -> vector<8x16xf32>
    %cst_88 = arith.constant dense<0xFF800000> : vector<8xf32>
    %184 = vector.multi_reduction <maximumf>, %183, %cst_88 [1] : vector<8x16xf32> to vector<8xf32>
    %185 = vector.shape_cast %184 : vector<8xf32> to vector<8x1xf32>
    %186 = vector.broadcast %185 : vector<8x1xf32> to vector<8x16xf32>
    %187 = arith.subf %183, %186 : vector<8x16xf32>
    %188 = math.exp %187 : vector<8x16xf32>
    %cst_89 = arith.constant dense<0.000000e+00> : vector<8xf32>
    %189 = vector.multi_reduction <add>, %188, %cst_89 [1] : vector<8x16xf32> to vector<8xf32>
    %190 = vector.shape_cast %189 : vector<8xf32> to vector<8x1xf32>
    %191 = tpu.reciprocal %190 : vector<8x1xf32> -> vector<8x1xf32>
    %192 = vector.broadcast %191 : vector<8x1xf32> to vector<8x16xf32>
    %193 = arith.mulf %188, %192 : vector<8x16xf32>
    %194 = arith.addf %180, %193 : vector<8x16xf32>
    %195 = arith.truncf %193 : vector<8x16xf32> to vector<8x16xbf16>
    %196 = vector.extract_strided_slice %179 {offsets = [0, 0], sizes = [16, 8], strides = [1, 1]} : vector<16x32xbf16> to vector<16x8xbf16>
    %cst_90 = arith.constant dense<0.000000e+00> : vector<8x8xf32>
    %197 = tpu.matmul %195, %196, %cst_90 {dimension_numbers = #tpu.dot_dimension_numbers<[1], [0], [0], [1], [0, 0, 1, 1], [], []>} : vector<8x16xbf16>, vector<16x8xbf16>, vector<8x8xf32> -> vector<8x8xf32>
    %c0_91 = arith.constant 0 : index
    %c0_92 = arith.constant 0 : index
    %198 = vector.load %arg30[%c0_91, %c0_92] : memref<8x32xf32, #tpu.memory_space<vmem>>, vector<8x8xf32>
    tpu.vector_store %arg30[%c0_91, %c0_92], %197 {strides = array<i32>} : memref<8x32xf32, #tpu.memory_space<vmem>>, vector<8x8xf32>,
    %199 = vector.extract_strided_slice %177 {offsets = [0, 8], sizes = [8, 8], strides = [1, 1]} : vector<8x32xbf16> to vector<8x8xbf16>
    %200 = vector.extract_strided_slice %178 {offsets = [0, 8], sizes = [16, 8], strides = [1, 1]} : vector<16x32xbf16> to vector<16x8xbf16>
    %cst_93 = arith.constant dense<0.000000e+00> : vector<8x16xf32>
    %201 = tpu.matmul %199, %200, %cst_93 {dimension_numbers = #tpu.dot_dimension_numbers<[1], [1], [0], [0], [0, 0, 1, 0], [], []>} : vector<8x8xbf16>, vector<16x8xbf16>, vector<8x16xf32> -> vector<8x16xf32>
    %cst_94 = arith.constant dense<0xFF800000> : vector<8xf32>
    %202 = vector.multi_reduction <maximumf>, %201, %cst_94 [1] : vector<8x16xf32> to vector<8xf32>
    %203 = vector.shape_cast %202 : vector<8xf32> to vector<8x1xf32>
    %204 = vector.broadcast %203 : vector<8x1xf32> to vector<8x16xf32>
    %205 = arith.subf %201, %204 : vector<8x16xf32>
    %206 = math.exp %205 : vector<8x16xf32>
    %cst_95 = arith.constant dense<0.000000e+00> : vector<8xf32>
    %207 = vector.multi_reduction <add>, %206, %cst_95 [1] : vector<8x16xf32> to vector<8xf32>
    %208 = vector.shape_cast %207 : vector<8xf32> to vector<8x1xf32>
    %209 = tpu.reciprocal %208 : vector<8x1xf32> -> vector<8x1xf32>
    %210 = vector.broadcast %209 : vector<8x1xf32> to vector<8x16xf32>
    %211 = arith.mulf %206, %210 : vector<8x16xf32>
    %212 = arith.addf %194, %211 : vector<8x16xf32>
    %213 = arith.truncf %211 : vector<8x16xf32> to vector<8x16xbf16>
    %214 = vector.extract_strided_slice %179 {offsets = [0, 8], sizes = [16, 8], strides = [1, 1]} : vector<16x32xbf16> to vector<16x8xbf16>
    %cst_96 = arith.constant dense<0.000000e+00> : vector<8x8xf32>
    %215 = tpu.matmul %213, %214, %cst_96 {dimension_numbers = #tpu.dot_dimension_numbers<[1], [0], [0], [1], [0, 0, 1, 1], [], []>} : vector<8x16xbf16>, vector<16x8xbf16>, vector<8x8xf32> -> vector<8x8xf32>
    %c0_97 = arith.constant 0 : index
    %c8_98 = arith.constant 8 : index
    %216 = vector.load %arg30[%c0_97, %c8_98] : memref<8x32xf32, #tpu.memory_space<vmem>>, vector<8x8xf32>
    tpu.vector_store %arg30[%c0_97, %c8_98], %215 {strides = array<i32>} : memref<8x32xf32, #tpu.memory_space<vmem>>, vector<8x8xf32>,
    %217 = vector.extract_strided_slice %177 {offsets = [0, 16], sizes = [8, 8], strides = [1, 1]} : vector<8x32xbf16> to vector<8x8xbf16>
    %218 = vector.extract_strided_slice %178 {offsets = [0, 16], sizes = [16, 8], strides = [1, 1]} : vector<16x32xbf16> to vector<16x8xbf16>
    %cst_99 = arith.constant dense<0.000000e+00> : vector<8x16xf32>
    %219 = tpu.matmul %217, %218, %cst_99 {dimension_numbers = #tpu.dot_dimension_numbers<[1], [1], [0], [0], [0, 0, 1, 0], [], []>} : vector<8x8xbf16>, vector<16x8xbf16>, vector<8x16xf32> -> vector<8x16xf32>
    %cst_100 = arith.constant dense<0xFF800000> : vector<8xf32>
    %220 = vector.multi_reduction <maximumf>, %219, %cst_100 [1] : vector<8x16xf32> to vector<8xf32>
    %221 = vector.shape_cast %220 : vector<8xf32> to vector<8x1xf32>
    %222 = vector.broadcast %221 : vector<8x1xf32> to vector<8x16xf32>
    %223 = arith.subf %219, %222 : vector<8x16xf32>
    %224 = math.exp %223 : vector<8x16xf32>
    %cst_101 = arith.constant dense<0.000000e+00> : vector<8xf32>
    %225 = vector.multi_reduction <add>, %224, %cst_101 [1] : vector<8x16xf32> to vector<8xf32>
    %226 = vector.shape_cast %225 : vector<8xf32> to vector<8x1xf32>
    %227 = tpu.reciprocal %226 : vector<8x1xf32> -> vector<8x1xf32>
    %228 = vector.broadcast %227 : vector<8x1xf32> to vector<8x16xf32>
    %229 = arith.mulf %224, %228 : vector<8x16xf32>
    %230 = arith.addf %212, %229 : vector<8x16xf32>
    %231 = arith.truncf %229 : vector<8x16xf32> to vector<8x16xbf16>
    %232 = vector.extract_strided_slice %179 {offsets = [0, 16], sizes = [16, 8], strides = [1, 1]} : vector<16x32xbf16> to vector<16x8xbf16>
    %cst_102 = arith.constant dense<0.000000e+00> : vector<8x8xf32>
    %233 = tpu.matmul %231, %232, %cst_102 {dimension_numbers = #tpu.dot_dimension_numbers<[1], [0], [0], [1], [0, 0, 1, 1], [], []>} : vector<8x16xbf16>, vector<16x8xbf16>, vector<8x8xf32> -> vector<8x8xf32>
    %c0_103 = arith.constant 0 : index
    %c16_104 = arith.constant 16 : index
    %234 = vector.load %arg30[%c0_103, %c16_104] : memref<8x32xf32, #tpu.memory_space<vmem>>, vector<8x8xf32>
    tpu.vector_store %arg30[%c0_103, %c16_104], %233 {strides = array<i32>} : memref<8x32xf32, #tpu.memory_space<vmem>>, vector<8x8xf32>,
    %235 = vector.extract_strided_slice %177 {offsets = [0, 24], sizes = [8, 8], strides = [1, 1]} : vector<8x32xbf16> to vector<8x8xbf16>
    %236 = vector.extract_strided_slice %178 {offsets = [0, 24], sizes = [16, 8], strides = [1, 1]} : vector<16x32xbf16> to vector<16x8xbf16>
    %cst_105 = arith.constant dense<0.000000e+00> : vector<8x16xf32>
    %237 = tpu.matmul %235, %236, %cst_105 {dimension_numbers = #tpu.dot_dimension_numbers<[1], [1], [0], [0], [0, 0, 1, 0], [], []>} : vector<8x8xbf16>, vector<16x8xbf16>, vector<8x16xf32> -> vector<8x16xf32>
    %cst_106 = arith.constant dense<0xFF800000> : vector<8xf32>
    %238 = vector.multi_reduction <maximumf>, %237, %cst_106 [1] : vector<8x16xf32> to vector<8xf32>
    %239 = vector.shape_cast %238 : vector<8xf32> to vector<8x1xf32>
    %240 = vector.broadcast %239 : vector<8x1xf32> to vector<8x16xf32>
    %241 = arith.subf %237, %240 : vector<8x16xf32>
    %242 = math.exp %241 : vector<8x16xf32>
    %cst_107 = arith.constant dense<0.000000e+00> : vector<8xf32>
    %243 = vector.multi_reduction <add>, %242, %cst_107 [1] : vector<8x16xf32> to vector<8xf32>
    %244 = vector.shape_cast %243 : vector<8xf32> to vector<8x1xf32>
    %245 = tpu.reciprocal %244 : vector<8x1xf32> -> vector<8x1xf32>
    %246 = vector.broadcast %245 : vector<8x1xf32> to vector<8x16xf32>
    %247 = arith.mulf %242, %246 : vector<8x16xf32>
    %248 = arith.addf %230, %247 : vector<8x16xf32>
    %249 = arith.truncf %247 : vector<8x16xf32> to vector<8x16xbf16>
    %250 = vector.extract_strided_slice %179 {offsets = [0, 24], sizes = [16, 8], strides = [1, 1]} : vector<16x32xbf16> to vector<16x8xbf16>
    %cst_108 = arith.constant dense<0.000000e+00> : vector<8x8xf32>
    %251 = tpu.matmul %249, %250, %cst_108 {dimension_numbers = #tpu.dot_dimension_numbers<[1], [0], [0], [1], [0, 0, 1, 1], [], []>} : vector<8x16xbf16>, vector<16x8xbf16>, vector<8x8xf32> -> vector<8x8xf32>
    %c0_109 = arith.constant 0 : index
    %c24_110 = arith.constant 24 : index
    %252 = vector.load %arg30[%c0_109, %c24_110] : memref<8x32xf32, #tpu.memory_space<vmem>>, vector<8x8xf32>
    tpu.vector_store %arg30[%c0_109, %c24_110], %251 {strides = array<i32>} : memref<8x32xf32, #tpu.memory_space<vmem>>, vector<8x8xf32>,
    %c0_111 = arith.constant 0 : index
    %c0_112 = arith.constant 0 : index
    %253 = vector.load %arg30[%c0_111, %c0_112] : memref<8x32xf32, #tpu.memory_space<vmem>>, vector<8x32xf32>
    %cst_113 = arith.constant 2.500000e-01 : f32
    %254 = vector.broadcast %cst_113 : f32 to vector<8x16xf32>
    %255 = arith.mulf %248, %254 : vector<8x16xf32>
    %256 = arith.truncf %253 : vector<8x32xf32> to vector<8x32xbf16>
    %c0_114 = arith.constant 0 : index
    %c0_115 = arith.constant 0 : index
    %c0_116 = arith.constant 0 : index
    %257 = vector.load %arg15[%c0_114, %c0_115, %c0_116] : memref<2x32x32xbf16, #tpu.memory_space<vmem>>, vector<1x32x32xbf16>
    %258 = vector.shape_cast %257 : vector<1x32x32xbf16> to vector<32x32xbf16>
    %cst_117 = arith.constant dense<0.000000e+00> : vector<8x32xf32>
    %259 = tpu.matmul %256, %258, %cst_117 {dimension_numbers = #tpu.dot_dimension_numbers<[1], [0], [0], [1], [0, 0, 1, 1], [], []>} : vector<8x32xbf16>, vector<32x32xbf16>, vector<8x32xf32> -> vector<8x32xf32>
    %c0_118 = arith.constant 0 : index
    %c0_119 = arith.constant 0 : index
    %c0_120 = arith.constant 0 : index
    %260 = vector.load %arg16[%c0_118, %c0_119, %c0_120] : memref<2x1x32xf32, #tpu.memory_space<vmem>>, vector<1x1x32xf32>
    %261 = vector.shape_cast %260 : vector<1x1x32xf32> to vector<1x32xf32>
    %262 = vector.broadcast %261 : vector<1x32xf32> to vector<8x32xf32>
    %263 = arith.addf %259, %262 : vector<8x32xf32>
    %264 = arith.addf %148, %263 : vector<8x32xf32>
    %265 = vector.extract_strided_slice %17 {offsets = [1, 0, 0], sizes = [1, 1, 32], strides = [1, 1, 1]} : vector<3x1x32xf32> to vector<1x1x32xf32>
    %266 = vector.shape_cast %265 : vector<1x1x32xf32> to vector<1x32xf32>
    %267 = vector.extract_strided_slice %19 {offsets = [1, 0, 0], sizes = [1, 1, 32], strides = [1, 1, 1]} : vector<3x1x32xf32> to vector<1x1x32xf32>
    %268 = vector.shape_cast %267 : vector<1x1x32xf32> to vector<1x32xf32>
    %cst_121 = arith.constant dense<0.000000e+00> : vector<8xf32>
    %269 = vector.multi_reduction <add>, %264, %cst_121 [1] : vector<8x32xf32> to vector<8xf32>
    %270 = vector.shape_cast %269 : vector<8xf32> to vector<8x1xf32>
    %cst_122 = arith.constant 3.200000e+01 : f32
    %271 = vector.broadcast %cst_122 : f32 to vector<8x1xf32>
    %272 = arith.divf %270, %271 : vector<8x1xf32>
    %273 = vector.broadcast %272 : vector<8x1xf32> to vector<8x32xf32>
    %274 = arith.subf %264, %273 : vector<8x32xf32>
    %275 = arith.mulf %274, %274 : vector<8x32xf32>
    %cst_123 = arith.constant dense<0.000000e+00> : vector<8xf32>
    %276 = vector.multi_reduction <add>, %275, %cst_123 [1] : vector<8x32xf32> to vector<8xf32>
    %277 = vector.shape_cast %276 : vector<8xf32> to vector<8x1xf32>
    %cst_124 = arith.constant 3.200000e+01 : f32
    %278 = vector.broadcast %cst_124 : f32 to vector<8x1xf32>
    %279 = arith.divf %277, %278 : vector<8x1xf32>
    %280 = vector.broadcast %272 : vector<8x1xf32> to vector<8x32xf32>
    %281 = arith.subf %264, %280 : vector<8x32xf32>
    %cst_125 = arith.constant 9.99999974E-6 : f32
    %282 = vector.broadcast %cst_125 : f32 to vector<8x1xf32>
    %283 = arith.addf %279, %282 : vector<8x1xf32>
    %284 = math.rsqrt %283 : vector<8x1xf32>
    %285 = vector.broadcast %284 : vector<8x1xf32> to vector<8x32xf32>
    %286 = arith.mulf %281, %285 : vector<8x32xf32>
    %287 = vector.broadcast %266 : vector<1x32xf32> to vector<8x32xf32>
    %288 = arith.mulf %286, %287 : vector<8x32xf32>
    %289 = vector.broadcast %268 : vector<1x32xf32> to vector<8x32xf32>
    %290 = arith.addf %288, %289 : vector<8x32xf32>
    %291 = vector.shape_cast %255 : vector<8x16xf32> to vector<1x8x16xf32>
    %c0_126 = arith.constant 0 : index
    %c0_127 = arith.constant 0 : index
    %c0_128 = arith.constant 0 : index
    %c0_129 = arith.constant 0 : index
    %292 = vector.load %arg29[%c0_126, %c0_127, %c0_128, %c0_129] : memref<2x1x8x16xf32, #tpu.memory_space<vmem>>, vector<1x1x8x16xf32>
    %293 = vector.shape_cast %292 : vector<1x1x8x16xf32> to vector<1x8x16xf32>
    %294 = vector.shape_cast %291 : vector<1x8x16xf32> to vector<1x1x8x16xf32>
    tpu.vector_store %arg29[%c0_126, %c0_127, %c0_128, %c0_129], %294 {strides = array<i32>} : memref<2x1x8x16xf32, #tpu.memory_space<vmem>>, vector<1x1x8x16xf32>,
    %295 = arith.truncf %290 : vector<8x32xf32> to vector<8x32xbf16>
    %c0_130 = arith.constant 0 : index
    %c0_131 = arith.constant 0 : index
    %c0_132 = arith.constant 0 : index
    %296 = vector.load %arg17[%c0_130, %c0_131, %c0_132] : memref<2x32x64xbf16, #tpu.memory_space<vmem>>, vector<1x32x64xbf16>
    %297 = vector.shape_cast %296 : vector<1x32x64xbf16> to vector<32x64xbf16>
    %cst_133 = arith.constant dense<0.000000e+00> : vector<8x64xf32>
    %298 = tpu.matmul %295, %297, %cst_133 {dimension_numbers = #tpu.dot_dimension_numbers<[1], [0], [0], [1], [0, 0, 1, 1], [], []>} : vector<8x32xbf16>, vector<32x64xbf16>, vector<8x64xf32> -> vector<8x64xf32>
    %c0_134 = arith.constant 0 : index
    %c0_135 = arith.constant 0 : index
    %c0_136 = arith.constant 0 : index
    %299 = vector.load %arg18[%c0_134, %c0_135, %c0_136] : memref<2x1x64xf32, #tpu.memory_space<vmem>>, vector<1x1x64xf32>
    %300 = vector.shape_cast %299 : vector<1x1x64xf32> to vector<1x64xf32>
    %301 = vector.broadcast %300 : vector<1x64xf32> to vector<8x64xf32>
    %302 = arith.addf %298, %301 : vector<8x64xf32>
    %cst_137 = arith.constant 0.000000e+00 : f32
    %303 = vector.broadcast %cst_137 : f32 to vector<8x64xf32>
    %304 = arith.maximumf %302, %303 : vector<8x64xf32>
    %305 = arith.truncf %304 : vector<8x64xf32> to vector<8x64xbf16>
    %c0_138 = arith.constant 0 : index
    %c0_139 = arith.constant 0 : index
    %c0_140 = arith.constant 0 : index
    %306 = vector.load %arg19[%c0_138, %c0_139, %c0_140] : memref<2x64x32xbf16, #tpu.memory_space<vmem>>, vector<1x64x32xbf16>
    %307 = vector.shape_cast %306 : vector<1x64x32xbf16> to vector<64x32xbf16>
    %cst_141 = arith.constant dense<0.000000e+00> : vector<8x32xf32>
    %308 = tpu.matmul %305, %307, %cst_141 {dimension_numbers = #tpu.dot_dimension_numbers<[1], [0], [0], [1], [0, 0, 1, 1], [], []>} : vector<8x64xbf16>, vector<64x32xbf16>, vector<8x32xf32> -> vector<8x32xf32>
    %c0_142 = arith.constant 0 : index
    %c0_143 = arith.constant 0 : index
    %c0_144 = arith.constant 0 : index
    %309 = vector.load %arg20[%c0_142, %c0_143, %c0_144] : memref<2x1x32xf32, #tpu.memory_space<vmem>>, vector<1x1x32xf32>
    %310 = vector.shape_cast %309 : vector<1x1x32xf32> to vector<1x32xf32>
    %311 = vector.broadcast %310 : vector<1x32xf32> to vector<8x32xf32>
    %312 = arith.addf %308, %311 : vector<8x32xf32>
    %313 = arith.addf %290, %312 : vector<8x32xf32>
    %314 = vector.extract_strided_slice %17 {offsets = [2, 0, 0], sizes = [1, 1, 32], strides = [1, 1, 1]} : vector<3x1x32xf32> to vector<1x1x32xf32>
    %315 = vector.shape_cast %314 : vector<1x1x32xf32> to vector<1x32xf32>
    %316 = vector.extract_strided_slice %19 {offsets = [2, 0, 0], sizes = [1, 1, 32], strides = [1, 1, 1]} : vector<3x1x32xf32> to vector<1x1x32xf32>
    %317 = vector.shape_cast %316 : vector<1x1x32xf32> to vector<1x32xf32>
    %cst_145 = arith.constant dense<0.000000e+00> : vector<8xf32>
    %318 = vector.multi_reduction <add>, %313, %cst_145 [1] : vector<8x32xf32> to vector<8xf32>
    %319 = vector.shape_cast %318 : vector<8xf32> to vector<8x1xf32>
    %cst_146 = arith.constant 3.200000e+01 : f32
    %320 = vector.broadcast %cst_146 : f32 to vector<8x1xf32>
    %321 = arith.divf %319, %320 : vector<8x1xf32>
    %322 = vector.broadcast %321 : vector<8x1xf32> to vector<8x32xf32>
    %323 = arith.subf %313, %322 : vector<8x32xf32>
    %324 = arith.mulf %323, %323 : vector<8x32xf32>
    %cst_147 = arith.constant dense<0.000000e+00> : vector<8xf32>
    %325 = vector.multi_reduction <add>, %324, %cst_147 [1] : vector<8x32xf32> to vector<8xf32>
    %326 = vector.shape_cast %325 : vector<8xf32> to vector<8x1xf32>
    %cst_148 = arith.constant 3.200000e+01 : f32
    %327 = vector.broadcast %cst_148 : f32 to vector<8x1xf32>
    %328 = arith.divf %326, %327 : vector<8x1xf32>
    %329 = vector.broadcast %321 : vector<8x1xf32> to vector<8x32xf32>
    %330 = arith.subf %313, %329 : vector<8x32xf32>
    %cst_149 = arith.constant 9.99999974E-6 : f32
    %331 = vector.broadcast %cst_149 : f32 to vector<8x1xf32>
    %332 = arith.addf %328, %331 : vector<8x1xf32>
    %333 = math.rsqrt %332 : vector<8x1xf32>
    %334 = vector.broadcast %333 : vector<8x1xf32> to vector<8x32xf32>
    %335 = arith.mulf %330, %334 : vector<8x32xf32>
    %336 = vector.broadcast %315 : vector<1x32xf32> to vector<8x32xf32>
    %337 = arith.mulf %335, %336 : vector<8x32xf32>
    %338 = vector.broadcast %317 : vector<1x32xf32> to vector<8x32xf32>
    %339 = arith.addf %337, %338 : vector<8x32xf32>
    %340 = vector.shape_cast %339 : vector<8x32xf32> to vector<1x8x32xf32>
    %c0_150 = arith.constant 0 : index
    %c0_151 = arith.constant 0 : index
    %c0_152 = arith.constant 0 : index
    %c0_153 = arith.constant 0 : index
    %341 = vector.load %arg27[%c0_150, %c0_151, %c0_152, %c0_153] : memref<2x1x8x32xf32, #tpu.memory_space<vmem>>, vector<1x1x8x32xf32>
    %342 = vector.shape_cast %341 : vector<1x1x8x32xf32> to vector<1x8x32xf32>
    %343 = vector.shape_cast %340 : vector<1x8x32xf32> to vector<1x1x8x32xf32>
    tpu.vector_store %arg27[%c0_150, %c0_151, %c0_152, %c0_153], %343 {strides = array<i32>} : memref<2x1x8x32xf32, #tpu.memory_space<vmem>>, vector<1x1x8x32xf32>,
    %c1 = arith.constant 1 : index
    %c0_154 = arith.constant 0 : index
    %c0_155 = arith.constant 0 : index
    %c0_156 = arith.constant 0 : index
    %344 = vector.load %arg21[%c1, %c0_154, %c0_155, %c0_156] : memref<2x3x1x32xf32, #tpu.memory_space<vmem>>, vector<1x3x1x32xf32>
    %345 = vector.shape_cast %344 : vector<1x3x1x32xf32> to vector<3x1x32xf32>
    %c1_157 = arith.constant 1 : index
    %c0_158 = arith.constant 0 : index
    %c0_159 = arith.constant 0 : index
    %c0_160 = arith.constant 0 : index
    %346 = vector.load %arg22[%c1_157, %c0_158, %c0_159, %c0_160] : memref<2x3x1x32xf32, #tpu.memory_space<vmem>>, vector<1x3x1x32xf32>
    %347 = vector.shape_cast %346 : vector<1x3x1x32xf32> to vector<3x1x32xf32>
    %348 = arith.truncf %339 : vector<8x32xf32> to vector<8x32xbf16>
    %c1_161 = arith.constant 1 : index
    %c0_162 = arith.constant 0 : index
    %c0_163 = arith.constant 0 : index
    %349 = vector.load %arg5[%c1_161, %c0_162, %c0_163] : memref<2x32x96xbf16, #tpu.memory_space<vmem>>, vector<1x32x96xbf16>
    %350 = vector.shape_cast %349 : vector<1x32x96xbf16> to vector<32x96xbf16>
    %cst_164 = arith.constant dense<0.000000e+00> : vector<8x96xf32>
    %351 = tpu.matmul %348, %350, %cst_164 {dimension_numbers = #tpu.dot_dimension_numbers<[1], [0], [0], [1], [0, 0, 1, 1], [], []>} : vector<8x32xbf16>, vector<32x96xbf16>, vector<8x96xf32> -> vector<8x96xf32>
    %c1_165 = arith.constant 1 : index
    %c0_166 = arith.constant 0 : index
    %c0_167 = arith.constant 0 : index
    %352 = vector.load %arg6[%c1_165, %c0_166, %c0_167] : memref<2x1x96xf32, #tpu.memory_space<vmem>>, vector<1x1x96xf32>
    %353 = vector.shape_cast %352 : vector<1x1x96xf32> to vector<1x96xf32>
    %354 = vector.broadcast %353 : vector<1x96xf32> to vector<8x96xf32>
    %355 = arith.addf %351, %354 : vector<8x96xf32>
    %356 = vector.extract_strided_slice %355 {offsets = [0, 0], sizes = [8, 32], strides = [1, 1]} : vector<8x96xf32> to vector<8x32xf32>
    %357 = vector.extract_strided_slice %355 {offsets = [0, 32], sizes = [8, 32], strides = [1, 1]} : vector<8x96xf32> to vector<8x32xf32>
    %358 = vector.extract_strided_slice %355 {offsets = [0, 64], sizes = [8, 32], strides = [1, 1]} : vector<8x96xf32> to vector<8x32xf32>
    %359 = arith.truncf %356 : vector<8x32xf32> to vector<8x32xbf16>
    %360 = arith.truncf %357 : vector<8x32xf32> to vector<8x32xbf16>
    %361 = arith.truncf %358 : vector<8x32xf32> to vector<8x32xbf16>
    %cst_168 = arith.constant 0.000000e+00 : f32
    %362 = vector.broadcast %cst_168 : f32 to vector<8x8xf32>
    %363 = vector.extract_strided_slice %359 {offsets = [0, 0], sizes = [8, 8], strides = [1, 1]} : vector<8x32xbf16> to vector<8x8xbf16>
    %364 = vector.extract_strided_slice %360 {offsets = [0, 0], sizes = [8, 8], strides = [1, 1]} : vector<8x32xbf16> to vector<8x8xbf16>
    %cst_169 = arith.constant dense<0.000000e+00> : vector<8x8xf32>
    %365 = tpu.matmul %363, %364, %cst_169 {dimension_numbers = #tpu.dot_dimension_numbers<[1], [1], [0], [0], [0, 0, 1, 0], [], []>} : vector<8x8xbf16>, vector<8x8xbf16>, vector<8x8xf32> -> vector<8x8xf32>
    %366 = arith.addf %365, %2 : vector<8x8xf32>
    %cst_170 = arith.constant dense<0xFF800000> : vector<8xf32>
    %367 = vector.multi_reduction <maximumf>, %366, %cst_170 [1] : vector<8x8xf32> to vector<8xf32>
    %368 = vector.shape_cast %367 : vector<8xf32> to vector<8x1xf32>
    %369 = vector.broadcast %368 : vector<8x1xf32> to vector<8x8xf32>
    %370 = arith.subf %366, %369 : vector<8x8xf32>
    %371 = math.exp %370 : vector<8x8xf32>
    %cst_171 = arith.constant dense<0.000000e+00> : vector<8xf32>
    %372 = vector.multi_reduction <add>, %371, %cst_171 [1] : vector<8x8xf32> to vector<8xf32>
    %373 = vector.shape_cast %372 : vector<8xf32> to vector<8x1xf32>
    %374 = tpu.reciprocal %373 : vector<8x1xf32> -> vector<8x1xf32>
    %375 = vector.broadcast %374 : vector<8x1xf32> to vector<8x8xf32>
    %376 = arith.mulf %371, %375 : vector<8x8xf32>
    %377 = arith.addf %362, %376 : vector<8x8xf32>
    %378 = arith.truncf %376 : vector<8x8xf32> to vector<8x8xbf16>
    %379 = vector.extract_strided_slice %361 {offsets = [0, 0], sizes = [8, 8], strides = [1, 1]} : vector<8x32xbf16> to vector<8x8xbf16>
    %cst_172 = arith.constant dense<0.000000e+00> : vector<8x8xf32>
    %380 = tpu.matmul %378, %379, %cst_172 {dimension_numbers = #tpu.dot_dimension_numbers<[1], [0], [0], [1], [0, 0, 1, 1], [], []>} : vector<8x8xbf16>, vector<8x8xbf16>, vector<8x8xf32> -> vector<8x8xf32>
    %c0_173 = arith.constant 0 : index
    %c0_174 = arith.constant 0 : index
    %381 = vector.load %arg30[%c0_173, %c0_174] : memref<8x32xf32, #tpu.memory_space<vmem>>, vector<8x8xf32>
    tpu.vector_store %arg30[%c0_173, %c0_174], %380 {strides = array<i32>} : memref<8x32xf32, #tpu.memory_space<vmem>>, vector<8x8xf32>,
    %382 = vector.extract_strided_slice %359 {offsets = [0, 8], sizes = [8, 8], strides = [1, 1]} : vector<8x32xbf16> to vector<8x8xbf16>
    %383 = vector.extract_strided_slice %360 {offsets = [0, 8], sizes = [8, 8], strides = [1, 1]} : vector<8x32xbf16> to vector<8x8xbf16>
    %cst_175 = arith.constant dense<0.000000e+00> : vector<8x8xf32>
    %384 = tpu.matmul %382, %383, %cst_175 {dimension_numbers = #tpu.dot_dimension_numbers<[1], [1], [0], [0], [0, 0, 1, 0], [], []>} : vector<8x8xbf16>, vector<8x8xbf16>, vector<8x8xf32> -> vector<8x8xf32>
    %385 = arith.addf %384, %2 : vector<8x8xf32>
    %cst_176 = arith.constant dense<0xFF800000> : vector<8xf32>
    %386 = vector.multi_reduction <maximumf>, %385, %cst_176 [1] : vector<8x8xf32> to vector<8xf32>
    %387 = vector.shape_cast %386 : vector<8xf32> to vector<8x1xf32>
    %388 = vector.broadcast %387 : vector<8x1xf32> to vector<8x8xf32>
    %389 = arith.subf %385, %388 : vector<8x8xf32>
    %390 = math.exp %389 : vector<8x8xf32>
    %cst_177 = arith.constant dense<0.000000e+00> : vector<8xf32>
    %391 = vector.multi_reduction <add>, %390, %cst_177 [1] : vector<8x8xf32> to vector<8xf32>
    %392 = vector.shape_cast %391 : vector<8xf32> to vector<8x1xf32>
    %393 = tpu.reciprocal %392 : vector<8x1xf32> -> vector<8x1xf32>
    %394 = vector.broadcast %393 : vector<8x1xf32> to vector<8x8xf32>
    %395 = arith.mulf %390, %394 : vector<8x8xf32>
    %396 = arith.addf %377, %395 : vector<8x8xf32>
    %397 = arith.truncf %395 : vector<8x8xf32> to vector<8x8xbf16>
    %398 = vector.extract_strided_slice %361 {offsets = [0, 8], sizes = [8, 8], strides = [1, 1]} : vector<8x32xbf16> to vector<8x8xbf16>
    %cst_178 = arith.constant dense<0.000000e+00> : vector<8x8xf32>
    %399 = tpu.matmul %397, %398, %cst_178 {dimension_numbers = #tpu.dot_dimension_numbers<[1], [0], [0], [1], [0, 0, 1, 1], [], []>} : vector<8x8xbf16>, vector<8x8xbf16>, vector<8x8xf32> -> vector<8x8xf32>
    %c0_179 = arith.constant 0 : index
    %c8_180 = arith.constant 8 : index
    %400 = vector.load %arg30[%c0_179, %c8_180] : memref<8x32xf32, #tpu.memory_space<vmem>>, vector<8x8xf32>
    tpu.vector_store %arg30[%c0_179, %c8_180], %399 {strides = array<i32>} : memref<8x32xf32, #tpu.memory_space<vmem>>, vector<8x8xf32>,
    %401 = vector.extract_strided_slice %359 {offsets = [0, 16], sizes = [8, 8], strides = [1, 1]} : vector<8x32xbf16> to vector<8x8xbf16>
    %402 = vector.extract_strided_slice %360 {offsets = [0, 16], sizes = [8, 8], strides = [1, 1]} : vector<8x32xbf16> to vector<8x8xbf16>
    %cst_181 = arith.constant dense<0.000000e+00> : vector<8x8xf32>
    %403 = tpu.matmul %401, %402, %cst_181 {dimension_numbers = #tpu.dot_dimension_numbers<[1], [1], [0], [0], [0, 0, 1, 0], [], []>} : vector<8x8xbf16>, vector<8x8xbf16>, vector<8x8xf32> -> vector<8x8xf32>
    %404 = arith.addf %403, %2 : vector<8x8xf32>
    %cst_182 = arith.constant dense<0xFF800000> : vector<8xf32>
    %405 = vector.multi_reduction <maximumf>, %404, %cst_182 [1] : vector<8x8xf32> to vector<8xf32>
    %406 = vector.shape_cast %405 : vector<8xf32> to vector<8x1xf32>
    %407 = vector.broadcast %406 : vector<8x1xf32> to vector<8x8xf32>
    %408 = arith.subf %404, %407 : vector<8x8xf32>
    %409 = math.exp %408 : vector<8x8xf32>
    %cst_183 = arith.constant dense<0.000000e+00> : vector<8xf32>
    %410 = vector.multi_reduction <add>, %409, %cst_183 [1] : vector<8x8xf32> to vector<8xf32>
    %411 = vector.shape_cast %410 : vector<8xf32> to vector<8x1xf32>
    %412 = tpu.reciprocal %411 : vector<8x1xf32> -> vector<8x1xf32>
    %413 = vector.broadcast %412 : vector<8x1xf32> to vector<8x8xf32>
    %414 = arith.mulf %409, %413 : vector<8x8xf32>
    %415 = arith.addf %396, %414 : vector<8x8xf32>
    %416 = arith.truncf %414 : vector<8x8xf32> to vector<8x8xbf16>
    %417 = vector.extract_strided_slice %361 {offsets = [0, 16], sizes = [8, 8], strides = [1, 1]} : vector<8x32xbf16> to vector<8x8xbf16>
    %cst_184 = arith.constant dense<0.000000e+00> : vector<8x8xf32>
    %418 = tpu.matmul %416, %417, %cst_184 {dimension_numbers = #tpu.dot_dimension_numbers<[1], [0], [0], [1], [0, 0, 1, 1], [], []>} : vector<8x8xbf16>, vector<8x8xbf16>, vector<8x8xf32> -> vector<8x8xf32>
    %c0_185 = arith.constant 0 : index
    %c16_186 = arith.constant 16 : index
    %419 = vector.load %arg30[%c0_185, %c16_186] : memref<8x32xf32, #tpu.memory_space<vmem>>, vector<8x8xf32>
    tpu.vector_store %arg30[%c0_185, %c16_186], %418 {strides = array<i32>} : memref<8x32xf32, #tpu.memory_space<vmem>>, vector<8x8xf32>,
    %420 = vector.extract_strided_slice %359 {offsets = [0, 24], sizes = [8, 8], strides = [1, 1]} : vector<8x32xbf16> to vector<8x8xbf16>
    %421 = vector.extract_strided_slice %360 {offsets = [0, 24], sizes = [8, 8], strides = [1, 1]} : vector<8x32xbf16> to vector<8x8xbf16>
    %cst_187 = arith.constant dense<0.000000e+00> : vector<8x8xf32>
    %422 = tpu.matmul %420, %421, %cst_187 {dimension_numbers = #tpu.dot_dimension_numbers<[1], [1], [0], [0], [0, 0, 1, 0], [], []>} : vector<8x8xbf16>, vector<8x8xbf16>, vector<8x8xf32> -> vector<8x8xf32>
    %423 = arith.addf %422, %2 : vector<8x8xf32>
    %cst_188 = arith.constant dense<0xFF800000> : vector<8xf32>
    %424 = vector.multi_reduction <maximumf>, %423, %cst_188 [1] : vector<8x8xf32> to vector<8xf32>
    %425 = vector.shape_cast %424 : vector<8xf32> to vector<8x1xf32>
    %426 = vector.broadcast %425 : vector<8x1xf32> to vector<8x8xf32>
    %427 = arith.subf %423, %426 : vector<8x8xf32>
    %428 = math.exp %427 : vector<8x8xf32>
    %cst_189 = arith.constant dense<0.000000e+00> : vector<8xf32>
    %429 = vector.multi_reduction <add>, %428, %cst_189 [1] : vector<8x8xf32> to vector<8xf32>
    %430 = vector.shape_cast %429 : vector<8xf32> to vector<8x1xf32>
    %431 = tpu.reciprocal %430 : vector<8x1xf32> -> vector<8x1xf32>
    %432 = vector.broadcast %431 : vector<8x1xf32> to vector<8x8xf32>
    %433 = arith.mulf %428, %432 : vector<8x8xf32>
    %434 = arith.addf %415, %433 : vector<8x8xf32>
    %435 = arith.truncf %433 : vector<8x8xf32> to vector<8x8xbf16>
    %436 = vector.extract_strided_slice %361 {offsets = [0, 24], sizes = [8, 8], strides = [1, 1]} : vector<8x32xbf16> to vector<8x8xbf16>
    %cst_190 = arith.constant dense<0.000000e+00> : vector<8x8xf32>
    %437 = tpu.matmul %435, %436, %cst_190 {dimension_numbers = #tpu.dot_dimension_numbers<[1], [0], [0], [1], [0, 0, 1, 1], [], []>} : vector<8x8xbf16>, vector<8x8xbf16>, vector<8x8xf32> -> vector<8x8xf32>
    %c0_191 = arith.constant 0 : index
    %c24_192 = arith.constant 24 : index
    %438 = vector.load %arg30[%c0_191, %c24_192] : memref<8x32xf32, #tpu.memory_space<vmem>>, vector<8x8xf32>
    tpu.vector_store %arg30[%c0_191, %c24_192], %437 {strides = array<i32>} : memref<8x32xf32, #tpu.memory_space<vmem>>, vector<8x8xf32>,
    %c0_193 = arith.constant 0 : index
    %c0_194 = arith.constant 0 : index
    %439 = vector.load %arg30[%c0_193, %c0_194] : memref<8x32xf32, #tpu.memory_space<vmem>>, vector<8x32xf32>
    %cst_195 = arith.constant 2.500000e-01 : f32
    %440 = vector.broadcast %cst_195 : f32 to vector<8x8xf32>
    %441 = arith.mulf %434, %440 : vector<8x8xf32>
    %442 = arith.truncf %439 : vector<8x32xf32> to vector<8x32xbf16>
    %c1_196 = arith.constant 1 : index
    %c0_197 = arith.constant 0 : index
    %c0_198 = arith.constant 0 : index
    %443 = vector.load %arg7[%c1_196, %c0_197, %c0_198] : memref<2x32x32xbf16, #tpu.memory_space<vmem>>, vector<1x32x32xbf16>
    %444 = vector.shape_cast %443 : vector<1x32x32xbf16> to vector<32x32xbf16>
    %cst_199 = arith.constant dense<0.000000e+00> : vector<8x32xf32>
    %445 = tpu.matmul %442, %444, %cst_199 {dimension_numbers = #tpu.dot_dimension_numbers<[1], [0], [0], [1], [0, 0, 1, 1], [], []>} : vector<8x32xbf16>, vector<32x32xbf16>, vector<8x32xf32> -> vector<8x32xf32>
    %c1_200 = arith.constant 1 : index
    %c0_201 = arith.constant 0 : index
    %c0_202 = arith.constant 0 : index
    %446 = vector.load %arg8[%c1_200, %c0_201, %c0_202] : memref<2x1x32xf32, #tpu.memory_space<vmem>>, vector<1x1x32xf32>
    %447 = vector.shape_cast %446 : vector<1x1x32xf32> to vector<1x32xf32>
    %448 = vector.broadcast %447 : vector<1x32xf32> to vector<8x32xf32>
    %449 = arith.addf %445, %448 : vector<8x32xf32>
    %450 = arith.addf %339, %449 : vector<8x32xf32>
    %451 = vector.extract_strided_slice %345 {offsets = [0, 0, 0], sizes = [1, 1, 32], strides = [1, 1, 1]} : vector<3x1x32xf32> to vector<1x1x32xf32>
    %452 = vector.shape_cast %451 : vector<1x1x32xf32> to vector<1x32xf32>
    %453 = vector.extract_strided_slice %347 {offsets = [0, 0, 0], sizes = [1, 1, 32], strides = [1, 1, 1]} : vector<3x1x32xf32> to vector<1x1x32xf32>
    %454 = vector.shape_cast %453 : vector<1x1x32xf32> to vector<1x32xf32>
    %cst_203 = arith.constant dense<0.000000e+00> : vector<8xf32>
    %455 = vector.multi_reduction <add>, %450, %cst_203 [1] : vector<8x32xf32> to vector<8xf32>
    %456 = vector.shape_cast %455 : vector<8xf32> to vector<8x1xf32>
    %cst_204 = arith.constant 3.200000e+01 : f32
    %457 = vector.broadcast %cst_204 : f32 to vector<8x1xf32>
    %458 = arith.divf %456, %457 : vector<8x1xf32>
    %459 = vector.broadcast %458 : vector<8x1xf32> to vector<8x32xf32>
    %460 = arith.subf %450, %459 : vector<8x32xf32>
    %461 = arith.mulf %460, %460 : vector<8x32xf32>
    %cst_205 = arith.constant dense<0.000000e+00> : vector<8xf32>
    %462 = vector.multi_reduction <add>, %461, %cst_205 [1] : vector<8x32xf32> to vector<8xf32>
    %463 = vector.shape_cast %462 : vector<8xf32> to vector<8x1xf32>
    %cst_206 = arith.constant 3.200000e+01 : f32
    %464 = vector.broadcast %cst_206 : f32 to vector<8x1xf32>
    %465 = arith.divf %463, %464 : vector<8x1xf32>
    %466 = vector.broadcast %458 : vector<8x1xf32> to vector<8x32xf32>
    %467 = arith.subf %450, %466 : vector<8x32xf32>
    %cst_207 = arith.constant 9.99999974E-6 : f32
    %468 = vector.broadcast %cst_207 : f32 to vector<8x1xf32>
    %469 = arith.addf %465, %468 : vector<8x1xf32>
    %470 = math.rsqrt %469 : vector<8x1xf32>
    %471 = vector.broadcast %470 : vector<8x1xf32> to vector<8x32xf32>
    %472 = arith.mulf %467, %471 : vector<8x32xf32>
    %473 = vector.broadcast %452 : vector<1x32xf32> to vector<8x32xf32>
    %474 = arith.mulf %472, %473 : vector<8x32xf32>
    %475 = vector.broadcast %454 : vector<1x32xf32> to vector<8x32xf32>
    %476 = arith.addf %474, %475 : vector<8x32xf32>
    %477 = vector.shape_cast %441 : vector<8x8xf32> to vector<1x8x8xf32>
    %c1_208 = arith.constant 1 : index
    %c0_209 = arith.constant 0 : index
    %c0_210 = arith.constant 0 : index
    %c0_211 = arith.constant 0 : index
    %478 = vector.load %arg28[%c1_208, %c0_209, %c0_210, %c0_211] : memref<2x1x8x8xf32, #tpu.memory_space<vmem>>, vector<1x1x8x8xf32>
    %479 = vector.shape_cast %478 : vector<1x1x8x8xf32> to vector<1x8x8xf32>
    %480 = vector.shape_cast %477 : vector<1x8x8xf32> to vector<1x1x8x8xf32>
    tpu.vector_store %arg28[%c1_208, %c0_209, %c0_210, %c0_211], %480 {strides = array<i32>} : memref<2x1x8x8xf32, #tpu.memory_space<vmem>>, vector<1x1x8x8xf32>,
    %481 = arith.truncf %476 : vector<8x32xf32> to vector<8x32xbf16>
    %c1_212 = arith.constant 1 : index
    %c0_213 = arith.constant 0 : index
    %c0_214 = arith.constant 0 : index
    %482 = vector.load %arg9[%c1_212, %c0_213, %c0_214] : memref<2x32x32xbf16, #tpu.memory_space<vmem>>, vector<1x32x32xbf16>
    %483 = vector.shape_cast %482 : vector<1x32x32xbf16> to vector<32x32xbf16>
    %cst_215 = arith.constant dense<0.000000e+00> : vector<8x32xf32>
    %484 = tpu.matmul %481, %483, %cst_215 {dimension_numbers = #tpu.dot_dimension_numbers<[1], [0], [0], [1], [0, 0, 1, 1], [], []>} : vector<8x32xbf16>, vector<32x32xbf16>, vector<8x32xf32> -> vector<8x32xf32>
    %c1_216 = arith.constant 1 : index
    %c0_217 = arith.constant 0 : index
    %c0_218 = arith.constant 0 : index
    %485 = vector.load %arg10[%c1_216, %c0_217, %c0_218] : memref<2x1x32xf32, #tpu.memory_space<vmem>>, vector<1x1x32xf32>
    %486 = vector.shape_cast %485 : vector<1x1x32xf32> to vector<1x32xf32>
    %487 = vector.broadcast %486 : vector<1x32xf32> to vector<8x32xf32>
    %488 = arith.addf %484, %487 : vector<8x32xf32>
    %489 = arith.truncf %12 : vector<16x32xf32> to vector<16x32xbf16>
    %c1_219 = arith.constant 1 : index
    %c0_220 = arith.constant 0 : index
    %c0_221 = arith.constant 0 : index
    %490 = vector.load %arg11[%c1_219, %c0_220, %c0_221] : memref<2x32x32xbf16, #tpu.memory_space<vmem>>, vector<1x32x32xbf16>
    %491 = vector.shape_cast %490 : vector<1x32x32xbf16> to vector<32x32xbf16>
    %cst_222 = arith.constant dense<0.000000e+00> : vector<16x32xf32>
    %492 = tpu.matmul %489, %491, %cst_222 {dimension_numbers = #tpu.dot_dimension_numbers<[1], [0], [0], [1], [0, 0, 1, 1], [], []>} : vector<16x32xbf16>, vector<32x32xbf16>, vector<16x32xf32> -> vector<16x32xf32>
    %c1_223 = arith.constant 1 : index
    %c0_224 = arith.constant 0 : index
    %c0_225 = arith.constant 0 : index
    %493 = vector.load %arg12[%c1_223, %c0_224, %c0_225] : memref<2x1x32xf32, #tpu.memory_space<vmem>>, vector<1x1x32xf32>
    %494 = vector.shape_cast %493 : vector<1x1x32xf32> to vector<1x32xf32>
    %495 = vector.broadcast %494 : vector<1x32xf32> to vector<16x32xf32>
    %496 = arith.addf %492, %495 : vector<16x32xf32>
    %497 = arith.truncf %15 : vector<16x32xf32> to vector<16x32xbf16>
    %c1_226 = arith.constant 1 : index
    %c0_227 = arith.constant 0 : index
    %c0_228 = arith.constant 0 : index
    %498 = vector.load %arg13[%c1_226, %c0_227, %c0_228] : memref<2x32x32xbf16, #tpu.memory_space<vmem>>, vector<1x32x32xbf16>
    %499 = vector.shape_cast %498 : vector<1x32x32xbf16> to vector<32x32xbf16>
    %cst_229 = arith.constant dense<0.000000e+00> : vector<16x32xf32>
    %500 = tpu.matmul %497, %499, %cst_229 {dimension_numbers = #tpu.dot_dimension_numbers<[1], [0], [0], [1], [0, 0, 1, 1], [], []>} : vector<16x32xbf16>, vector<32x32xbf16>, vector<16x32xf32> -> vector<16x32xf32>
    %c1_230 = arith.constant 1 : index
    %c0_231 = arith.constant 0 : index
    %c0_232 = arith.constant 0 : index
    %501 = vector.load %arg14[%c1_230, %c0_231, %c0_232] : memref<2x1x32xf32, #tpu.memory_space<vmem>>, vector<1x1x32xf32>
    %502 = vector.shape_cast %501 : vector<1x1x32xf32> to vector<1x32xf32>
    %503 = vector.broadcast %502 : vector<1x32xf32> to vector<16x32xf32>
    %504 = arith.addf %500, %503 : vector<16x32xf32>
    %505 = arith.truncf %488 : vector<8x32xf32> to vector<8x32xbf16>
    %506 = arith.truncf %496 : vector<16x32xf32> to vector<16x32xbf16>
    %507 = arith.truncf %504 : vector<16x32xf32> to vector<16x32xbf16>
    %cst_233 = arith.constant 0.000000e+00 : f32
    %508 = vector.broadcast %cst_233 : f32 to vector<8x16xf32>
    %509 = vector.extract_strided_slice %505 {offsets = [0, 0], sizes = [8, 8], strides = [1, 1]} : vector<8x32xbf16> to vector<8x8xbf16>
    %510 = vector.extract_strided_slice %506 {offsets = [0, 0], sizes = [16, 8], strides = [1, 1]} : vector<16x32xbf16> to vector<16x8xbf16>
    %cst_234 = arith.constant dense<0.000000e+00> : vector<8x16xf32>
    %511 = tpu.matmul %509, %510, %cst_234 {dimension_numbers = #tpu.dot_dimension_numbers<[1], [1], [0], [0], [0, 0, 1, 0], [], []>} : vector<8x8xbf16>, vector<16x8xbf16>, vector<8x16xf32> -> vector<8x16xf32>
    %cst_235 = arith.constant dense<0xFF800000> : vector<8xf32>
    %512 = vector.multi_reduction <maximumf>, %511, %cst_235 [1] : vector<8x16xf32> to vector<8xf32>
    %513 = vector.shape_cast %512 : vector<8xf32> to vector<8x1xf32>
    %514 = vector.broadcast %513 : vector<8x1xf32> to vector<8x16xf32>
    %515 = arith.subf %511, %514 : vector<8x16xf32>
    %516 = math.exp %515 : vector<8x16xf32>
    %cst_236 = arith.constant dense<0.000000e+00> : vector<8xf32>
    %517 = vector.multi_reduction <add>, %516, %cst_236 [1] : vector<8x16xf32> to vector<8xf32>
    %518 = vector.shape_cast %517 : vector<8xf32> to vector<8x1xf32>
    %519 = tpu.reciprocal %518 : vector<8x1xf32> -> vector<8x1xf32>
    %520 = vector.broadcast %519 : vector<8x1xf32> to vector<8x16xf32>
    %521 = arith.mulf %516, %520 : vector<8x16xf32>
    %522 = arith.addf %508, %521 : vector<8x16xf32>
    %523 = arith.truncf %521 : vector<8x16xf32> to vector<8x16xbf16>
    %524 = vector.extract_strided_slice %507 {offsets = [0, 0], sizes = [16, 8], strides = [1, 1]} : vector<16x32xbf16> to vector<16x8xbf16>
    %cst_237 = arith.constant dense<0.000000e+00> : vector<8x8xf32>
    %525 = tpu.matmul %523, %524, %cst_237 {dimension_numbers = #tpu.dot_dimension_numbers<[1], [0], [0], [1], [0, 0, 1, 1], [], []>} : vector<8x16xbf16>, vector<16x8xbf16>, vector<8x8xf32> -> vector<8x8xf32>
    %c0_238 = arith.constant 0 : index
    %c0_239 = arith.constant 0 : index
    %526 = vector.load %arg30[%c0_238, %c0_239] : memref<8x32xf32, #tpu.memory_space<vmem>>, vector<8x8xf32>
    tpu.vector_store %arg30[%c0_238, %c0_239], %525 {strides = array<i32>} : memref<8x32xf32, #tpu.memory_space<vmem>>, vector<8x8xf32>,
    %527 = vector.extract_strided_slice %505 {offsets = [0, 8], sizes = [8, 8], strides = [1, 1]} : vector<8x32xbf16> to vector<8x8xbf16>
    %528 = vector.extract_strided_slice %506 {offsets = [0, 8], sizes = [16, 8], strides = [1, 1]} : vector<16x32xbf16> to vector<16x8xbf16>
    %cst_240 = arith.constant dense<0.000000e+00> : vector<8x16xf32>
    %529 = tpu.matmul %527, %528, %cst_240 {dimension_numbers = #tpu.dot_dimension_numbers<[1], [1], [0], [0], [0, 0, 1, 0], [], []>} : vector<8x8xbf16>, vector<16x8xbf16>, vector<8x16xf32> -> vector<8x16xf32>
    %cst_241 = arith.constant dense<0xFF800000> : vector<8xf32>
    %530 = vector.multi_reduction <maximumf>, %529, %cst_241 [1] : vector<8x16xf32> to vector<8xf32>
    %531 = vector.shape_cast %530 : vector<8xf32> to vector<8x1xf32>
    %532 = vector.broadcast %531 : vector<8x1xf32> to vector<8x16xf32>
    %533 = arith.subf %529, %532 : vector<8x16xf32>
    %534 = math.exp %533 : vector<8x16xf32>
    %cst_242 = arith.constant dense<0.000000e+00> : vector<8xf32>
    %535 = vector.multi_reduction <add>, %534, %cst_242 [1] : vector<8x16xf32> to vector<8xf32>
    %536 = vector.shape_cast %535 : vector<8xf32> to vector<8x1xf32>
    %537 = tpu.reciprocal %536 : vector<8x1xf32> -> vector<8x1xf32>
    %538 = vector.broadcast %537 : vector<8x1xf32> to vector<8x16xf32>
    %539 = arith.mulf %534, %538 : vector<8x16xf32>
    %540 = arith.addf %522, %539 : vector<8x16xf32>
    %541 = arith.truncf %539 : vector<8x16xf32> to vector<8x16xbf16>
    %542 = vector.extract_strided_slice %507 {offsets = [0, 8], sizes = [16, 8], strides = [1, 1]} : vector<16x32xbf16> to vector<16x8xbf16>
    %cst_243 = arith.constant dense<0.000000e+00> : vector<8x8xf32>
    %543 = tpu.matmul %541, %542, %cst_243 {dimension_numbers = #tpu.dot_dimension_numbers<[1], [0], [0], [1], [0, 0, 1, 1], [], []>} : vector<8x16xbf16>, vector<16x8xbf16>, vector<8x8xf32> -> vector<8x8xf32>
    %c0_244 = arith.constant 0 : index
    %c8_245 = arith.constant 8 : index
    %544 = vector.load %arg30[%c0_244, %c8_245] : memref<8x32xf32, #tpu.memory_space<vmem>>, vector<8x8xf32>
    tpu.vector_store %arg30[%c0_244, %c8_245], %543 {strides = array<i32>} : memref<8x32xf32, #tpu.memory_space<vmem>>, vector<8x8xf32>,
    %545 = vector.extract_strided_slice %505 {offsets = [0, 16], sizes = [8, 8], strides = [1, 1]} : vector<8x32xbf16> to vector<8x8xbf16>
    %546 = vector.extract_strided_slice %506 {offsets = [0, 16], sizes = [16, 8], strides = [1, 1]} : vector<16x32xbf16> to vector<16x8xbf16>
    %cst_246 = arith.constant dense<0.000000e+00> : vector<8x16xf32>
    %547 = tpu.matmul %545, %546, %cst_246 {dimension_numbers = #tpu.dot_dimension_numbers<[1], [1], [0], [0], [0, 0, 1, 0], [], []>} : vector<8x8xbf16>, vector<16x8xbf16>, vector<8x16xf32> -> vector<8x16xf32>
    %cst_247 = arith.constant dense<0xFF800000> : vector<8xf32>
    %548 = vector.multi_reduction <maximumf>, %547, %cst_247 [1] : vector<8x16xf32> to vector<8xf32>
    %549 = vector.shape_cast %548 : vector<8xf32> to vector<8x1xf32>
    %550 = vector.broadcast %549 : vector<8x1xf32> to vector<8x16xf32>
    %551 = arith.subf %547, %550 : vector<8x16xf32>
    %552 = math.exp %551 : vector<8x16xf32>
    %cst_248 = arith.constant dense<0.000000e+00> : vector<8xf32>
    %553 = vector.multi_reduction <add>, %552, %cst_248 [1] : vector<8x16xf32> to vector<8xf32>
    %554 = vector.shape_cast %553 : vector<8xf32> to vector<8x1xf32>
    %555 = tpu.reciprocal %554 : vector<8x1xf32> -> vector<8x1xf32>
    %556 = vector.broadcast %555 : vector<8x1xf32> to vector<8x16xf32>
    %557 = arith.mulf %552, %556 : vector<8x16xf32>
    %558 = arith.addf %540, %557 : vector<8x16xf32>
    %559 = arith.truncf %557 : vector<8x16xf32> to vector<8x16xbf16>
    %560 = vector.extract_strided_slice %507 {offsets = [0, 16], sizes = [16, 8], strides = [1, 1]} : vector<16x32xbf16> to vector<16x8xbf16>
    %cst_249 = arith.constant dense<0.000000e+00> : vector<8x8xf32>
    %561 = tpu.matmul %559, %560, %cst_249 {dimension_numbers = #tpu.dot_dimension_numbers<[1], [0], [0], [1], [0, 0, 1, 1], [], []>} : vector<8x16xbf16>, vector<16x8xbf16>, vector<8x8xf32> -> vector<8x8xf32>
    %c0_250 = arith.constant 0 : index
    %c16_251 = arith.constant 16 : index
    %562 = vector.load %arg30[%c0_250, %c16_251] : memref<8x32xf32, #tpu.memory_space<vmem>>, vector<8x8xf32>
    tpu.vector_store %arg30[%c0_250, %c16_251], %561 {strides = array<i32>} : memref<8x32xf32, #tpu.memory_space<vmem>>, vector<8x8xf32>,
    %563 = vector.extract_strided_slice %505 {offsets = [0, 24], sizes = [8, 8], strides = [1, 1]} : vector<8x32xbf16> to vector<8x8xbf16>
    %564 = vector.extract_strided_slice %506 {offsets = [0, 24], sizes = [16, 8], strides = [1, 1]} : vector<16x32xbf16> to vector<16x8xbf16>
    %cst_252 = arith.constant dense<0.000000e+00> : vector<8x16xf32>
    %565 = tpu.matmul %563, %564, %cst_252 {dimension_numbers = #tpu.dot_dimension_numbers<[1], [1], [0], [0], [0, 0, 1, 0], [], []>} : vector<8x8xbf16>, vector<16x8xbf16>, vector<8x16xf32> -> vector<8x16xf32>
    %cst_253 = arith.constant dense<0xFF800000> : vector<8xf32>
    %566 = vector.multi_reduction <maximumf>, %565, %cst_253 [1] : vector<8x16xf32> to vector<8xf32>
    %567 = vector.shape_cast %566 : vector<8xf32> to vector<8x1xf32>
    %568 = vector.broadcast %567 : vector<8x1xf32> to vector<8x16xf32>
    %569 = arith.subf %565, %568 : vector<8x16xf32>
    %570 = math.exp %569 : vector<8x16xf32>
    %cst_254 = arith.constant dense<0.000000e+00> : vector<8xf32>
    %571 = vector.multi_reduction <add>, %570, %cst_254 [1] : vector<8x16xf32> to vector<8xf32>
    %572 = vector.shape_cast %571 : vector<8xf32> to vector<8x1xf32>
    %573 = tpu.reciprocal %572 : vector<8x1xf32> -> vector<8x1xf32>
    %574 = vector.broadcast %573 : vector<8x1xf32> to vector<8x16xf32>
    %575 = arith.mulf %570, %574 : vector<8x16xf32>
    %576 = arith.addf %558, %575 : vector<8x16xf32>
    %577 = arith.truncf %575 : vector<8x16xf32> to vector<8x16xbf16>
    %578 = vector.extract_strided_slice %507 {offsets = [0, 24], sizes = [16, 8], strides = [1, 1]} : vector<16x32xbf16> to vector<16x8xbf16>
    %cst_255 = arith.constant dense<0.000000e+00> : vector<8x8xf32>
    %579 = tpu.matmul %577, %578, %cst_255 {dimension_numbers = #tpu.dot_dimension_numbers<[1], [0], [0], [1], [0, 0, 1, 1], [], []>} : vector<8x16xbf16>, vector<16x8xbf16>, vector<8x8xf32> -> vector<8x8xf32>
    %c0_256 = arith.constant 0 : index
    %c24_257 = arith.constant 24 : index
    %580 = vector.load %arg30[%c0_256, %c24_257] : memref<8x32xf32, #tpu.memory_space<vmem>>, vector<8x8xf32>
    tpu.vector_store %arg30[%c0_256, %c24_257], %579 {strides = array<i32>} : memref<8x32xf32, #tpu.memory_space<vmem>>, vector<8x8xf32>,
    %c0_258 = arith.constant 0 : index
    %c0_259 = arith.constant 0 : index
    %581 = vector.load %arg30[%c0_258, %c0_259] : memref<8x32xf32, #tpu.memory_space<vmem>>, vector<8x32xf32>
    %cst_260 = arith.constant 2.500000e-01 : f32
    %582 = vector.broadcast %cst_260 : f32 to vector<8x16xf32>
    %583 = arith.mulf %576, %582 : vector<8x16xf32>
    %584 = arith.truncf %581 : vector<8x32xf32> to vector<8x32xbf16>
    %c1_261 = arith.constant 1 : index
    %c0_262 = arith.constant 0 : index
    %c0_263 = arith.constant 0 : index
    %585 = vector.load %arg15[%c1_261, %c0_262, %c0_263] : memref<2x32x32xbf16, #tpu.memory_space<vmem>>, vector<1x32x32xbf16>
    %586 = vector.shape_cast %585 : vector<1x32x32xbf16> to vector<32x32xbf16>
    %cst_264 = arith.constant dense<0.000000e+00> : vector<8x32xf32>
    %587 = tpu.matmul %584, %586, %cst_264 {dimension_numbers = #tpu.dot_dimension_numbers<[1], [0], [0], [1], [0, 0, 1, 1], [], []>} : vector<8x32xbf16>, vector<32x32xbf16>, vector<8x32xf32> -> vector<8x32xf32>
    %c1_265 = arith.constant 1 : index
    %c0_266 = arith.constant 0 : index
    %c0_267 = arith.constant 0 : index
    %588 = vector.load %arg16[%c1_265, %c0_266, %c0_267] : memref<2x1x32xf32, #tpu.memory_space<vmem>>, vector<1x1x32xf32>
    %589 = vector.shape_cast %588 : vector<1x1x32xf32> to vector<1x32xf32>
    %590 = vector.broadcast %589 : vector<1x32xf32> to vector<8x32xf32>
    %591 = arith.addf %587, %590 : vector<8x32xf32>
    %592 = arith.addf %476, %591 : vector<8x32xf32>
    %593 = vector.extract_strided_slice %345 {offsets = [1, 0, 0], sizes = [1, 1, 32], strides = [1, 1, 1]} : vector<3x1x32xf32> to vector<1x1x32xf32>
    %594 = vector.shape_cast %593 : vector<1x1x32xf32> to vector<1x32xf32>
    %595 = vector.extract_strided_slice %347 {offsets = [1, 0, 0], sizes = [1, 1, 32], strides = [1, 1, 1]} : vector<3x1x32xf32> to vector<1x1x32xf32>
    %596 = vector.shape_cast %595 : vector<1x1x32xf32> to vector<1x32xf32>
    %cst_268 = arith.constant dense<0.000000e+00> : vector<8xf32>
    %597 = vector.multi_reduction <add>, %592, %cst_268 [1] : vector<8x32xf32> to vector<8xf32>
    %598 = vector.shape_cast %597 : vector<8xf32> to vector<8x1xf32>
    %cst_269 = arith.constant 3.200000e+01 : f32
    %599 = vector.broadcast %cst_269 : f32 to vector<8x1xf32>
    %600 = arith.divf %598, %599 : vector<8x1xf32>
    %601 = vector.broadcast %600 : vector<8x1xf32> to vector<8x32xf32>
    %602 = arith.subf %592, %601 : vector<8x32xf32>
    %603 = arith.mulf %602, %602 : vector<8x32xf32>
    %cst_270 = arith.constant dense<0.000000e+00> : vector<8xf32>
    %604 = vector.multi_reduction <add>, %603, %cst_270 [1] : vector<8x32xf32> to vector<8xf32>
    %605 = vector.shape_cast %604 : vector<8xf32> to vector<8x1xf32>
    %cst_271 = arith.constant 3.200000e+01 : f32
    %606 = vector.broadcast %cst_271 : f32 to vector<8x1xf32>
    %607 = arith.divf %605, %606 : vector<8x1xf32>
    %608 = vector.broadcast %600 : vector<8x1xf32> to vector<8x32xf32>
    %609 = arith.subf %592, %608 : vector<8x32xf32>
    %cst_272 = arith.constant 9.99999974E-6 : f32
    %610 = vector.broadcast %cst_272 : f32 to vector<8x1xf32>
    %611 = arith.addf %607, %610 : vector<8x1xf32>
    %612 = math.rsqrt %611 : vector<8x1xf32>
    %613 = vector.broadcast %612 : vector<8x1xf32> to vector<8x32xf32>
    %614 = arith.mulf %609, %613 : vector<8x32xf32>
    %615 = vector.broadcast %594 : vector<1x32xf32> to vector<8x32xf32>
    %616 = arith.mulf %614, %615 : vector<8x32xf32>
    %617 = vector.broadcast %596 : vector<1x32xf32> to vector<8x32xf32>
    %618 = arith.addf %616, %617 : vector<8x32xf32>
    %619 = vector.shape_cast %583 : vector<8x16xf32> to vector<1x8x16xf32>
    %c1_273 = arith.constant 1 : index
    %c0_274 = arith.constant 0 : index
    %c0_275 = arith.constant 0 : index
    %c0_276 = arith.constant 0 : index
    %620 = vector.load %arg29[%c1_273, %c0_274, %c0_275, %c0_276] : memref<2x1x8x16xf32, #tpu.memory_space<vmem>>, vector<1x1x8x16xf32>
    %621 = vector.shape_cast %620 : vector<1x1x8x16xf32> to vector<1x8x16xf32>
    %622 = vector.shape_cast %619 : vector<1x8x16xf32> to vector<1x1x8x16xf32>
    tpu.vector_store %arg29[%c1_273, %c0_274, %c0_275, %c0_276], %622 {strides = array<i32>} : memref<2x1x8x16xf32, #tpu.memory_space<vmem>>, vector<1x1x8x16xf32>,
    %623 = arith.truncf %618 : vector<8x32xf32> to vector<8x32xbf16>
    %c1_277 = arith.constant 1 : index
    %c0_278 = arith.constant 0 : index
    %c0_279 = arith.constant 0 : index
    %624 = vector.load %arg17[%c1_277, %c0_278, %c0_279] : memref<2x32x64xbf16, #tpu.memory_space<vmem>>, vector<1x32x64xbf16>
    %625 = vector.shape_cast %624 : vector<1x32x64xbf16> to vector<32x64xbf16>
    %cst_280 = arith.constant dense<0.000000e+00> : vector<8x64xf32>
    %626 = tpu.matmul %623, %625, %cst_280 {dimension_numbers = #tpu.dot_dimension_numbers<[1], [0], [0], [1], [0, 0, 1, 1], [], []>} : vector<8x32xbf16>, vector<32x64xbf16>, vector<8x64xf32> -> vector<8x64xf32>
    %c1_281 = arith.constant 1 : index
    %c0_282 = arith.constant 0 : index
    %c0_283 = arith.constant 0 : index
    %627 = vector.load %arg18[%c1_281, %c0_282, %c0_283] : memref<2x1x64xf32, #tpu.memory_space<vmem>>, vector<1x1x64xf32>
    %628 = vector.shape_cast %627 : vector<1x1x64xf32> to vector<1x64xf32>
    %629 = vector.broadcast %628 : vector<1x64xf32> to vector<8x64xf32>
    %630 = arith.addf %626, %629 : vector<8x64xf32>
    %cst_284 = arith.constant 0.000000e+00 : f32
    %631 = vector.broadcast %cst_284 : f32 to vector<8x64xf32>
    %632 = arith.maximumf %630, %631 : vector<8x64xf32>
    %633 = arith.truncf %632 : vector<8x64xf32> to vector<8x64xbf16>
    %c1_285 = arith.constant 1 : index
    %c0_286 = arith.constant 0 : index
    %c0_287 = arith.constant 0 : index
    %634 = vector.load %arg19[%c1_285, %c0_286, %c0_287] : memref<2x64x32xbf16, #tpu.memory_space<vmem>>, vector<1x64x32xbf16>
    %635 = vector.shape_cast %634 : vector<1x64x32xbf16> to vector<64x32xbf16>
    %cst_288 = arith.constant dense<0.000000e+00> : vector<8x32xf32>
    %636 = tpu.matmul %633, %635, %cst_288 {dimension_numbers = #tpu.dot_dimension_numbers<[1], [0], [0], [1], [0, 0, 1, 1], [], []>} : vector<8x64xbf16>, vector<64x32xbf16>, vector<8x32xf32> -> vector<8x32xf32>
    %c1_289 = arith.constant 1 : index
    %c0_290 = arith.constant 0 : index
    %c0_291 = arith.constant 0 : index
    %637 = vector.load %arg20[%c1_289, %c0_290, %c0_291] : memref<2x1x32xf32, #tpu.memory_space<vmem>>, vector<1x1x32xf32>
    %638 = vector.shape_cast %637 : vector<1x1x32xf32> to vector<1x32xf32>
    %639 = vector.broadcast %638 : vector<1x32xf32> to vector<8x32xf32>
    %640 = arith.addf %636, %639 : vector<8x32xf32>
    %641 = arith.addf %618, %640 : vector<8x32xf32>
    %642 = vector.extract_strided_slice %345 {offsets = [2, 0, 0], sizes = [1, 1, 32], strides = [1, 1, 1]} : vector<3x1x32xf32> to vector<1x1x32xf32>
    %643 = vector.shape_cast %642 : vector<1x1x32xf32> to vector<1x32xf32>
    %644 = vector.extract_strided_slice %347 {offsets = [2, 0, 0], sizes = [1, 1, 32], strides = [1, 1, 1]} : vector<3x1x32xf32> to vector<1x1x32xf32>
    %645 = vector.shape_cast %644 : vector<1x1x32xf32> to vector<1x32xf32>
    %cst_292 = arith.constant dense<0.000000e+00> : vector<8xf32>
    %646 = vector.multi_reduction <add>, %641, %cst_292 [1] : vector<8x32xf32> to vector<8xf32>
    %647 = vector.shape_cast %646 : vector<8xf32> to vector<8x1xf32>
    %cst_293 = arith.constant 3.200000e+01 : f32
    %648 = vector.broadcast %cst_293 : f32 to vector<8x1xf32>
    %649 = arith.divf %647, %648 : vector<8x1xf32>
    %650 = vector.broadcast %649 : vector<8x1xf32> to vector<8x32xf32>
    %651 = arith.subf %641, %650 : vector<8x32xf32>
    %652 = arith.mulf %651, %651 : vector<8x32xf32>
    %cst_294 = arith.constant dense<0.000000e+00> : vector<8xf32>
    %653 = vector.multi_reduction <add>, %652, %cst_294 [1] : vector<8x32xf32> to vector<8xf32>
    %654 = vector.shape_cast %653 : vector<8xf32> to vector<8x1xf32>
    %cst_295 = arith.constant 3.200000e+01 : f32
    %655 = vector.broadcast %cst_295 : f32 to vector<8x1xf32>
    %656 = arith.divf %654, %655 : vector<8x1xf32>
    %657 = vector.broadcast %649 : vector<8x1xf32> to vector<8x32xf32>
    %658 = arith.subf %641, %657 : vector<8x32xf32>
    %cst_296 = arith.constant 9.99999974E-6 : f32
    %659 = vector.broadcast %cst_296 : f32 to vector<8x1xf32>
    %660 = arith.addf %656, %659 : vector<8x1xf32>
    %661 = math.rsqrt %660 : vector<8x1xf32>
    %662 = vector.broadcast %661 : vector<8x1xf32> to vector<8x32xf32>
    %663 = arith.mulf %658, %662 : vector<8x32xf32>
    %664 = vector.broadcast %643 : vector<1x32xf32> to vector<8x32xf32>
    %665 = arith.mulf %663, %664 : vector<8x32xf32>
    %666 = vector.broadcast %645 : vector<1x32xf32> to vector<8x32xf32>
    %667 = arith.addf %665, %666 : vector<8x32xf32>
    %668 = vector.shape_cast %667 : vector<8x32xf32> to vector<1x8x32xf32>
    %c1_297 = arith.constant 1 : index
    %c0_298 = arith.constant 0 : index
    %c0_299 = arith.constant 0 : index
    %c0_300 = arith.constant 0 : index
    %669 = vector.load %arg27[%c1_297, %c0_298, %c0_299, %c0_300] : memref<2x1x8x32xf32, #tpu.memory_space<vmem>>, vector<1x1x8x32xf32>
    %670 = vector.shape_cast %669 : vector<1x1x8x32xf32> to vector<1x8x32xf32>
    %671 = vector.shape_cast %668 : vector<1x8x32xf32> to vector<1x1x8x32xf32>
    tpu.vector_store %arg27[%c1_297, %c0_298, %c0_299, %c0_300], %671 {strides = array<i32>} : memref<2x1x8x32xf32, #tpu.memory_space<vmem>>, vector<1x1x8x32xf32>,
    %c0_301 = arith.constant 0 : index
    %c0_302 = arith.constant 0 : index
    %c0_303 = arith.constant 0 : index
    %672 = vector.load %arg25[%c0_301, %c0_302, %c0_303] : memref<1x8x32xf32, #tpu.memory_space<vmem>>, vector<1x8x32xf32>
    %673 = vector.shape_cast %672 : vector<1x8x32xf32> to vector<8x32xf32>
    %674 = vector.shape_cast %667 : vector<8x32xf32> to vector<1x8x32xf32>
    tpu.vector_store %arg25[%c0_301, %c0_302, %c0_303], %674 {strides = array<i32>} : memref<1x8x32xf32, #tpu.memory_space<vmem>>, vector<1x8x32xf32>,
    %cst_304 = arith.constant 0.000000e+00 : f32
    %675 = vector.broadcast %cst_304 : f32 to vector<8x32xf32>
    %676 = arith.maximumf %667, %675 : vector<8x32xf32>
    %677 = arith.truncf %676 : vector<8x32xf32> to vector<8x32xbf16>
    %c0_305 = arith.constant 0 : index
    %c0_306 = arith.constant 0 : index
    %678 = vector.load %arg23[%c0_305, %c0_306] : memref<32x128xbf16, #tpu.memory_space<vmem>>, vector<32x128xbf16>
    %cst_307 = arith.constant dense<0.000000e+00> : vector<8x128xf32>
    %679 = tpu.matmul %677, %678, %cst_307 {dimension_numbers = #tpu.dot_dimension_numbers<[1], [0], [0], [1], [0, 0, 1, 1], [], []>} : vector<8x32xbf16>, vector<32x128xbf16>, vector<8x128xf32> -> vector<8x128xf32>
    %c0_308 = arith.constant 0 : index
    %c0_309 = arith.constant 0 : index
    %680 = vector.load %arg24[%c0_308, %c0_309] : memref<1x128xf32, #tpu.memory_space<vmem>>, vector<1x128xf32>
    %681 = vector.broadcast %680 : vector<1x128xf32> to vector<8x128xf32>
    %682 = arith.addf %679, %681 : vector<8x128xf32>
    %c0_310 = arith.constant 0 : index
    %c0_311 = arith.constant 0 : index
    %c0_312 = arith.constant 0 : index
    %683 = vector.load %arg26[%c0_310, %c0_311, %c0_312] : memref<1x8x128xf32, #tpu.memory_space<vmem>>, vector<1x8x128xf32>
    %684 = vector.shape_cast %683 : vector<1x8x128xf32> to vector<8x128xf32>
    %685 = vector.shape_cast %682 : vector<8x128xf32> to vector<1x8x128xf32>
    tpu.vector_store %arg26[%c0_310, %c0_311, %c0_312], %685 {strides = array<i32>} : memref<1x8x128xf32, #tpu.memory_space<vmem>>, vector<1x8x128xf32>,
    return
  }
  func.func @transform_0(%arg0: i32) -> (i32, i32, i32) {
    %c0_i32 = arith.constant 0 : i32
    %c0_i32_0 = arith.constant 0 : i32
    %c0_i32_1 = arith.constant 0 : i32
    return %arg0, %c0_i32, %c0_i32_0 : i32, i32, i32
  }
  func.func @transform_1(%arg0: i32) -> (i32, i32, i32) {
    %c0_i32 = arith.constant 0 : i32
    %c0_i32_0 = arith.constant 0 : i32
    %c0_i32_1 = arith.constant 0 : i32
    %c0_i32_2 = arith.constant 0 : i32
    return %c0_i32, %c0_i32_0, %c0_i32_1 : i32, i32, i32
  }
  func.func @transform_2(%arg0: i32) -> (i32, i32, i32) {
    %c0_i32 = arith.constant 0 : i32
    %c0_i32_0 = arith.constant 0 : i32
    %c0_i32_1 = arith.constant 0 : i32
    %c0_i32_2 = arith.constant 0 : i32
    return %c0_i32, %c0_i32_0, %c0_i32_1 : i32, i32, i32
  }
  func.func @transform_3(%arg0: i32) -> (i32, i32) {
    %c0_i32 = arith.constant 0 : i32
    %c0_i32_0 = arith.constant 0 : i32
    %c0_i32_1 = arith.constant 0 : i32
    return %c0_i32, %c0_i32_0 : i32, i32
  }
  func.func @transform_4(%arg0: i32) -> (i32, i32, i32) {
    %c0_i32 = arith.constant 0 : i32
    %c0_i32_0 = arith.constant 0 : i32
    %c0_i32_1 = arith.constant 0 : i32
    %c0_i32_2 = arith.constant 0 : i32
    return %c0_i32, %c0_i32_0, %c0_i32_1 : i32, i32, i32
  }
  func.func @transform_5(%arg0: i32) -> (i32, i32, i32) {
    %c0_i32 = arith.constant 0 : i32
    %c0_i32_0 = arith.constant 0 : i32
    %c0_i32_1 = arith.constant 0 : i32
    %c0_i32_2 = arith.constant 0 : i32
    return %c0_i32, %c0_i32_0, %c0_i32_1 : i32, i32, i32
  }
  func.func @transform_6(%arg0: i32) -> (i32, i32, i32) {
    %c0_i32 = arith.constant 0 : i32
    %c0_i32_0 = arith.constant 0 : i32
    %c0_i32_1 = arith.constant 0 : i32
    %c0_i32_2 = arith.constant 0 : i32
    return %c0_i32, %c0_i32_0, %c0_i32_1 : i32, i32, i32
  }
  func.func @transform_7(%arg0: i32) -> (i32, i32, i32) {
    %c0_i32 = arith.constant 0 : i32
    %c0_i32_0 = arith.constant 0 : i32
    %c0_i32_1 = arith.constant 0 : i32
    %c0_i32_2 = arith.constant 0 : i32
    return %c0_i32, %c0_i32_0, %c0_i32_1 : i32, i32, i32
  }
  func.func @transform_8(%arg0: i32) -> (i32, i32, i32) {
    %c0_i32 = arith.constant 0 : i32
    %c0_i32_0 = arith.constant 0 : i32
    %c0_i32_1 = arith.constant 0 : i32
    %c0_i32_2 = arith.constant 0 : i32
    return %c0_i32, %c0_i32_0, %c0_i32_1 : i32, i32, i32
  }
  func.func @transform_9(%arg0: i32) -> (i32, i32, i32) {
    %c0_i32 = arith.constant 0 : i32
    %c0_i32_0 = arith.constant 0 : i32
    %c0_i32_1 = arith.constant 0 : i32
    %c0_i32_2 = arith.constant 0 : i32
    return %c0_i32, %c0_i32_0, %c0_i32_1 : i32, i32, i32
  }
  func.func @transform_10(%arg0: i32) -> (i32, i32, i32) {
    %c0_i32 = arith.constant 0 : i32
    %c0_i32_0 = arith.constant 0 : i32
    %c0_i32_1 = arith.constant 0 : i32
    %c0_i32_2 = arith.constant 0 : i32
    return %c0_i32, %c0_i32_0, %c0_i32_1 : i32, i32, i32
  }
  func.func @transform_11(%arg0: i32) -> (i32, i32, i32) {
    %c0_i32 = arith.constant 0 : i32
    %c0_i32_0 = arith.constant 0 : i32
    %c0_i32_1 = arith.constant 0 : i32
    %c0_i32_2 = arith.constant 0 : i32
    return %c0_i32, %c0_i32_0, %c0_i32_1 : i32, i32, i32
  }
  func.func @transform_12(%arg0: i32) -> (i32, i32, i32) {
    %c0_i32 = arith.constant 0 : i32
    %c0_i32_0 = arith.constant 0 : i32
    %c0_i32_1 = arith.constant 0 : i32
    %c0_i32_2 = arith.constant 0 : i32
    return %c0_i32, %c0_i32_0, %c0_i32_1 : i32, i32, i32
  }
  func.func @transform_13(%arg0: i32) -> (i32, i32, i32) {
    %c0_i32 = arith.constant 0 : i32
    %c0_i32_0 = arith.constant 0 : i32
    %c0_i32_1 = arith.constant 0 : i32
    %c0_i32_2 = arith.constant 0 : i32
    return %c0_i32, %c0_i32_0, %c0_i32_1 : i32, i32, i32
  }
  func.func @transform_14(%arg0: i32) -> (i32, i32, i32) {
    %c0_i32 = arith.constant 0 : i32
    %c0_i32_0 = arith.constant 0 : i32
    %c0_i32_1 = arith.constant 0 : i32
    %c0_i32_2 = arith.constant 0 : i32
    return %c0_i32, %c0_i32_0, %c0_i32_1 : i32, i32, i32
  }
  func.func @transform_15(%arg0: i32) -> (i32, i32, i32) {
    %c0_i32 = arith.constant 0 : i32
    %c0_i32_0 = arith.constant 0 : i32
    %c0_i32_1 = arith.constant 0 : i32
    %c0_i32_2 = arith.constant 0 : i32
    return %c0_i32, %c0_i32_0, %c0_i32_1 : i32, i32, i32
  }
  func.func @transform_16(%arg0: i32) -> (i32, i32, i32) {
    %c0_i32 = arith.constant 0 : i32
    %c0_i32_0 = arith.constant 0 : i32
    %c0_i32_1 = arith.constant 0 : i32
    %c0_i32_2 = arith.constant 0 : i32
    return %c0_i32, %c0_i32_0, %c0_i32_1 : i32, i32, i32
  }
  func.func @transform_17(%arg0: i32) -> (i32, i32, i32) {
    %c0_i32 = arith.constant 0 : i32
    %c0_i32_0 = arith.constant 0 : i32
    %c0_i32_1 = arith.constant 0 : i32
    %c0_i32_2 = arith.constant 0 : i32
    return %c0_i32, %c0_i32_0, %c0_i32_1 : i32, i32, i32
  }
  func.func @transform_18(%arg0: i32) -> (i32, i32, i32) {
    %c0_i32 = arith.constant 0 : i32
    %c0_i32_0 = arith.constant 0 : i32
    %c0_i32_1 = arith.constant 0 : i32
    %c0_i32_2 = arith.constant 0 : i32
    return %c0_i32, %c0_i32_0, %c0_i32_1 : i32, i32, i32
  }
  func.func @transform_19(%arg0: i32) -> (i32, i32, i32) {
    %c0_i32 = arith.constant 0 : i32
    %c0_i32_0 = arith.constant 0 : i32
    %c0_i32_1 = arith.constant 0 : i32
    %c0_i32_2 = arith.constant 0 : i32
    return %c0_i32, %c0_i32_0, %c0_i32_1 : i32, i32, i32
  }
  func.func @transform_20(%arg0: i32) -> (i32, i32, i32, i32) {
    %c0_i32 = arith.constant 0 : i32
    %c0_i32_0 = arith.constant 0 : i32
    %c0_i32_1 = arith.constant 0 : i32
    %c0_i32_2 = arith.constant 0 : i32
    %c0_i32_3 = arith.constant 0 : i32
    return %c0_i32, %c0_i32_0, %c0_i32_1, %c0_i32_2 : i32, i32, i32, i32
  }
  func.func @transform_21(%arg0: i32) -> (i32, i32, i32, i32) {
    %c0_i32 = arith.constant 0 : i32
    %c0_i32_0 = arith.constant 0 : i32
    %c0_i32_1 = arith.constant 0 : i32
    %c0_i32_2 = arith.constant 0 : i32
    %c0_i32_3 = arith.constant 0 : i32
    return %c0_i32, %c0_i32_0, %c0_i32_1, %c0_i32_2 : i32, i32, i32, i32
  }
  func.func @transform_22(%arg0: i32) -> (i32, i32) {
    %c0_i32 = arith.constant 0 : i32
    %c0_i32_0 = arith.constant 0 : i32
    %c0_i32_1 = arith.constant 0 : i32
    return %c0_i32, %c0_i32_0 : i32, i32
  }
  func.func @transform_23(%arg0: i32) -> (i32, i32) {
    %c0_i32 = arith.constant 0 : i32
    %c0_i32_0 = arith.constant 0 : i32
    %c0_i32_1 = arith.constant 0 : i32
    return %c0_i32, %c0_i32_0 : i32, i32
  }
  func.func @transform_24(%arg0: i32) -> (i32, i32, i32) {
    %c0_i32 = arith.constant 0 : i32
    %c0_i32_0 = arith.constant 0 : i32
    %c0_i32_1 = arith.constant 0 : i32
    return %arg0, %c0_i32, %c0_i32_0 : i32, i32, i32
  }
  func.func @transform_25(%arg0: i32) -> (i32, i32, i32) {
    %c0_i32 = arith.constant 0 : i32
    %c0_i32_0 = arith.constant 0 : i32
    %c0_i32_1 = arith.constant 0 : i32
    return %arg0, %c0_i32, %c0_i32_0 : i32, i32, i32
  }
  func.func @transform_26(%arg0: i32) -> (i32, i32, i32, i32) {
    %c0_i32 = arith.constant 0 : i32
    %c0_i32_0 = arith.constant 0 : i32
    %c0_i32_1 = arith.constant 0 : i32
    %c0_i32_2 = arith.constant 0 : i32
    return %c0_i32, %arg0, %c0_i32_0, %c0_i32_1 : i32, i32, i32, i32
  }
  func.func @transform_27(%arg0: i32) -> (i32, i32, i32, i32) {
    %c0_i32 = arith.constant 0 : i32
    %c0_i32_0 = arith.constant 0 : i32
    %c0_i32_1 = arith.constant 0 : i32
    %c0_i32_2 = arith.constant 0 : i32
    return %c0_i32, %arg0, %c0_i32_0, %c0_i32_1 : i32, i32, i32, i32
  }
  func.func @transform_28(%arg0: i32) -> (i32, i32, i32, i32) {
    %c0_i32 = arith.constant 0 : i32
    %c0_i32_0 = arith.constant 0 : i32
    %c0_i32_1 = arith.constant 0 : i32
    %c0_i32_2 = arith.constant 0 : i32
    return %c0_i32, %arg0, %c0_i32_0, %c0_i32_1 : i32, i32, i32, i32
  }
}

</mosaic_0001>

<bundles_post_ra>
// kernel: fwd.1
= control target key start
LH: loop header
LB: loop body
LE: loop exit
PB: predicated region body
PF: predicated region fallthrough
CT: control target
= control target key end

     0   :  { %s7008_s0 = inlined_call_operand.vmem [shape: f32[2,8,32], index: 0, kind: input, shape index: {}]   ;;  %s7009_s1 = inlined_call_operand.vmem [shape: f32[16,2,32], index: 1, kind: input, shape index: {}]   ;;  %s7010_s2 = inlined_call_operand.vmem [shape: f32[16,2,32], index: 2, kind: input, shape index: {}]   ;;  %s7011_s3 = inlined_call_operand.vmem [shape: f32[8,8], index: 3, kind: input, shape index: {}]   ;;  %s7012_s4 = inlined_call_operand.vmem [shape: bf16[2,32,96], index: 4, kind: input, shape index: {}]   ;;  %s7013_s5 = inlined_call_operand.vmem [shape: f32[2,1,96], index: 5, kind: input, shape index: {}]   ;;  %s7014_s6 = inlined_call_operand.vmem [shape: bf16[2,32,32], index: 6, kind: input, shape index: {}]   ;;  %s7015_s7 = inlined_call_operand.vmem [shape: f32[2,1,32], index: 7, kind: input, shape index: {}]   ;;  %s7016_s8 = inlined_call_operand.vmem [shape: bf16[2,32,32], index: 8, kind: input, shape index: {}]   ;;  %s7017_s9 = inlined_call_operand.vmem [shape: f32[2,1,32], index: 9, kind: input, shape index: {}]   ;;  %s7018_s10 = inlined_call_operand.vmem [shape: bf16[2,32,32], index: 10, kind: input, shape index: {}]   ;;  %s7019_s11 = inlined_call_operand.hbm [shape: f32[2,1,32], index: 11, kind: input, shape index: {}]   ;;  %s7020_s12 = inlined_call_operand.vmem [shape: bf16[2,32,32], index: 12, kind: input, shape index: {}]   ;;  %s7021_s13 = inlined_call_operand.vmem [shape: f32[2,1,32], index: 13, kind: input, shape index: {}]   ;;  %s7022_s14 = inlined_call_operand.vmem [shape: bf16[2,32,32], index: 14, kind: input, shape index: {}]   ;;  %s7023_s15 = inlined_call_operand.vmem [shape: f32[2,1,32], index: 15, kind: input, shape index: {}]   ;;  %s7024_s16 = inlined_call_operand.vmem [shape: bf16[2,32,64], index: 16, kind: input, shape index: {}]   ;;  %s7025_s17 = inlined_call_operand.hbm [shape: f32[2,1,64], index: 17, kind: input, shape index: {}]   ;;  %s7026_s18 = inlined_call_operand.vmem [shape: bf16[2,64,32], index: 18, kind: input, shape index: {}]   ;;  %s7027_s19 = inlined_call_operand.hbm [shape: f32[2,1,32], index: 19, kind: input, shape index: {}]   ;;  %s7028_s20 = inlined_call_operand.vmem [shape: f32[2,3,1,32], index: 20, kind: input, shape index: {}]   ;;  %s7029_s21 = inlined_call_operand.vmem [shape: f32[2,3,1,32], index: 21, kind: input, shape index: {}]   ;;  %s7030_s22 = inlined_call_operand.vmem [shape: bf16[32,128], index: 22, kind: input, shape index: {}]   ;;  %s7031_s23 = inlined_call_operand.hbm [shape: f32[1,128], index: 23, kind: input, shape index: {}]   ;;  %s7032_s24 = inlined_call_operand.vmem [shape: f32[2,8,32], index: 24, kind: output, shape index: {0}]   ;;  %s7033_s25 = inlined_call_operand.vmem [shape: f32[2,8,128], index: 25, kind: output, shape index: {1}]   ;;  %s7034_s26 = inlined_call_operand.vmem [shape: f32[2,2,8,32], index: 26, kind: output, shape index: {2}]   ;;  %s7035_s27 = inlined_call_operand.vmem [shape: f32[2,2,8,8], index: 27, kind: output, shape index: {3}]   ;;  %s7036_s28 = inlined_call_operand.vmem [shape: f32[2,2,8,16], index: 28, kind: output, shape index: {4}]  }
   0x1   :  { %7084 = sst [smem:[#allocation22_spill]] %s7008_s0 }
   0x2   :  { %7085 = sst [smem:[#allocation23_spill]] %s7009_s1 }
   0x3   :  { %7086 = sst [smem:[#allocation24_spill]] %s7010_s2 }
   0x4   :  { %7087 = sst [smem:[#allocation25_spill]] %s7011_s3 }
   0x5   :  { %7088 = sst [smem:[#allocation26_spill]] %s7012_s4 }
   0x6   :  { %7089 = sst [smem:[#allocation27_spill]] %s7013_s5 }
   0x7   :  { %7090 = sst [smem:[#allocation28_spill]] %s7014_s6 }
   0x8   :  { %7091 = sst [smem:[#allocation29_spill]] %s7015_s7 }
   0x9   :  { %7092 = sst [smem:[#allocation30_spill]] %s7016_s8 }
   0xa   :  { %7093 = sst [smem:[#allocation31_spill]] %s7017_s9 }
   0xb   :  { %7094 = sst [smem:[#allocation32_spill]] %s7018_s10 }
   0xc   :  { %7095 = sst [smem:[#allocation33_spill]] %s7019_s11 }
   0xd   :  { %7096 = sst [smem:[#allocation34_spill]] %s7020_s12 }
   0xe   :  { %7097 = sst [smem:[#allocation35_spill]] %s7025_s17 }
   0xf   :  { %7098 = sst [smem:[#allocation36_spill]] %s7027_s19 }
  0x10   :  { %7099 = sst [smem:[#allocation37_spill]] %s7030_s22 }
  0x11   :  { %7100 = sst [smem:[#allocation38_spill]] %s7031_s23 }
  0x12   :  { %7101 = sst [smem:[#allocation39_spill]] %s7032_s24 }
  0x13   :  { %7102 = sst [smem:[#allocation40_spill]] %s7033_s25 }
  0x14   :  { %7103 = sst [smem:[#allocation41_spill]] %s7034_s26 }
  0x15   :  { %7104 = sst [smem:[#allocation42_spill]] %s7035_s27 }
  0x16   :  { %7105 = sst [smem:[#allocation43_spill]] %s7036_s28 }
  0x17   :  { %34 = vsyncpa [#allocation4], 0 }
  0x18   :  { %35 = vsyncpa [#allocation6], 0 }
  0x19   :  { %36 = vsyncpa [#allocation9], 0  ;;  %s5976_s8 = smov 0   ;;  %s5978_s5 = smov 0  }
  0x1a   :  { %s5980_s9 = smov 0  }
  0x1b LB: > { %7106 = sst [smem:[#allocation16_spill]] %s5803_s5  ;;  %s5989_s30 = sadd.s32 4294967295, %s5807_s9   ;;  %s5807_s9 = sphi %s5980_s9, %s7178_s9   ;;  %s5803_s5 = sphi %s5978_s5, %s7180_s5   ;;  %s5799_s8 = sphi %s5976_s8, %s7179_s8  }
  0x1c   : > { %7107 = sst [smem:[#allocation17_spill]] %s5989_s30  ;;  %s5991_s3 = sadd.s32 1, %s5807_s9  }
  0x1d   : > { %7108 = sst [smem:[#allocation18_spill]] %s5991_s3  ;;  %s607_s6 = ssub.s32 %s5807_s9, %s5991_s3 }
  0x1e   : > { %s610_s10 = sadd.s32 1, %s5803_s5  ;;  %p608_p0 = scmp.eq.s32.totalorder %s607_s6, 0 }
  0x1f   : > { %p620_p1 = scmp.ne.s32.totalorder %s5803_s5, %s5799_s8  ;;  %p7052_p2 = scmp.eq.s32.totalorder %s5989_s30, 1 }
  0x20   : > { %p4817_p3 = scmp.ge.s32.totalorder %s5807_s9, 1  ;;  %p686_p5 = scmp.lt.s32.totalorder %s5807_s9, 3 }
  0x21   : > { %s5999_s0 = scalar_select %p608_p0, %s5803_s5, %s610_s10  }
  0x22   : > { %p6003_p4 = por %p7052_p2, %p620_p1  ;;  %p7053_p6 = scmp.eq.s32.totalorder %s5989_s30, 0 }
  0x23   : > { %7109 = sst [smem:[#allocation19_spill]] %s5999_s0  ;;  %p6008_p7 = pnand %p4817_p3, %p686_p5 }
  0x24   : > { %s7110_s11 = scalar_select %p6003_p4, 1, 0 }
  0x25   : > { %s7112_s29 = scalar_select %p6008_p7, 1, 0 }
  0x26   : > { %7111 = sst [smem:[#allocation20_spill]] %s7110_s11  ;;  %p5479_p8 = pneg %p6008_p7 }
  0x27   : > { %s5809_s2 = smov [#allocation5]   ;;  %s5810_s1 = smov [#allocation3]  }
  0x28   : > { %s756_s7 = sshll.u32 %s5809_s2, 4  ;;  %p6018_p9 = pnand %p7053_p6, %p5479_p8  ;;  %s6014_s7 = int_to_ptr.vmem [resolvable:$true] %s756_s7 }
  0x29   : > { %s728_s4 = sshll.u32 %s5810_s1, 4  ;;  %s5811_s9 = smov [#allocation7]   ;;  %s6022_s4 = int_to_ptr.vmem [resolvable:$true] %s728_s4 }
  0x2a   : > { %s6024_s6 = sshll.u32 %s5811_s9, 4  ;;  %s7114_s17 = sld [smem:[#allocation35_spill]]  ;;  %s773_s6 = int_to_ptr.vmem [resolvable:$true] %s6024_s6 }
  0x2b   : > { %p6034_p11 = pneg %p6018_p9 }
  0x30   : > { %s5661_s5 = scalar_lea.hbm %s7114_s17, 32 }
  0x31   : > { %p5662_p10 = scmp.ne.s32.totalorder %s7114_s17, %s5661_s5  ;;  %p5668_p0 = scmp.lt.u32.totalorder %s5661_s5, %s7114_s17 }
  0x33   : > { %p5664_p12 = pnand %p6034_p11, %p5662_p10 }
  0x35   : > { %p5665_p13 = pneg %p5664_p12 }
  0x37   : > { %p5670_p1 = pnand %p5668_p0, %p5665_p13 }
  0x39   : > { %5673 = shalt.err (!%p5670_p1)
}
  0x3a   : > { %s5674_s3 = scalar_lea.vmem %s6014_s7, 32  ;;  %p5682_p2 = scmp.lt.s32.totalorder %s6014_s7, %s6014_s7 }
  0x3b   : > { %p5675_p3 = scmp.ne.s32.totalorder %s6014_s7, %s5674_s3  ;;  %p5683_p6 = scmp.lt.s32.totalorder %s5674_s3, %s5674_s3 }
  0x3d   : > { %p5677_p5 = pnand %p5675_p3, %p6034_p11  ;;  %p5684_p10 = por %p5683_p6, %p5682_p2 }
  0x3f   : > { %p5678_p8 = pneg %p5677_p5 }
  0x41   : > { %p5685_p12 = pnand %p5684_p10, %p5678_p8 }
  0x43   : > { %5688 = shalt.err (!%p5685_p12)
}
  0x44   : > { %s5812_s0 = smov 16   ;;  %s5813_s5 = smov 1  }
  0x45   : > { %5485 = dma.hbm_to_vmem [thread:$0]  (!%p6018_p9), %s7114_s17, 32, %s6014_s7, [#allocation6], %s5812_s0, %s5812_s0, %s5813_s5  }
  0x46   : > { %s7116_s27 = sld [smem:[#allocation33_spill]] }
  0x4c   : > { %s5689_s3 = scalar_lea.hbm %s7116_s27, 32 }
  0x4d   : > { %p5690_p2 = scmp.ne.s32.totalorder %s7116_s27, %s5689_s3  ;;  %p5696_p0 = scmp.lt.u32.totalorder %s5689_s3, %s7116_s27 }
  0x4f   : > { %p5692_p6 = pnand %p5690_p2, %p6034_p11 }
  0x51   : > { %p5693_p13 = pneg %p5692_p6 }
  0x53   : > { %p5698_p1 = pnand %p5696_p0, %p5693_p13 }
  0x55   : > { %5701 = shalt.err (!%p5698_p1)
}
  0x56   : > { %s5702_s7 = scalar_lea.vmem %s6022_s4, 32  ;;  %p5710_p10 = scmp.lt.s32.totalorder %s6022_s4, %s6022_s4 }
  0x57   : > { %p5703_p3 = scmp.ne.s32.totalorder %s6022_s4, %s5702_s7  ;;  %p5711_p12 = scmp.lt.s32.totalorder %s5702_s7, %s5702_s7 }
  0x59   : > { %p5705_p5 = pnand %p5703_p3, %p6034_p11  ;;  %p5712_p2 = por %p5711_p12, %p5710_p10 }
  0x5b   : > { %p5706_p8 = pneg %p5705_p5 }
  0x5d   : > { %p5713_p6 = pnand %p5712_p2, %p5706_p8 }
  0x5f   : > { %5716 = shalt.err (!%p5713_p6)
}
  0x60   : > { %5482 = dma.hbm_to_vmem [thread:$0]  (!%p6018_p9), %s7116_s27, 32, %s6022_s4, [#allocation4], %s5812_s0, %s5812_s0, %s5813_s5  }
  0x61   : > { %s7117_s19 = sld [smem:[#allocation36_spill]] }
  0x67   : > { %s5717_s10 = scalar_lea.hbm %s7117_s19, 32 }
  0x68   : > { %p5718_p13 = scmp.ne.s32.totalorder %s7117_s19, %s5717_s10  ;;  %p5724_p3 = scmp.lt.u32.totalorder %s5717_s10, %s7117_s19 }
  0x6a   : > { %p5720_p0 = pnand %p5718_p13, %p6034_p11 }
  0x6c   : > { %p5721_p1 = pneg %p5720_p0 }
  0x6e   : > { %p5726_p5 = pnand %p5724_p3, %p5721_p1 }
  0x70   : > { %5729 = shalt.err (!%p5726_p5)
}
  0x71   : > { %s5730_s7 = scalar_lea.vmem %s773_s6, 32  ;;  %p5738_p2 = scmp.lt.s32.totalorder %s773_s6, %s773_s6 }
  0x72   : > { %p5731_p8 = scmp.ne.s32.totalorder %s773_s6, %s5730_s7  ;;  %p5739_p6 = scmp.lt.s32.totalorder %s5730_s7, %s5730_s7 }
  0x74   : > { %p5733_p10 = pnand %p5731_p8, %p6034_p11  ;;  %p5740_p4 = por %p5739_p6, %p5738_p2 }
  0x76   : > { %p5734_p12 = pneg %p5733_p10 }
  0x78   : > { %p5741_p7 = pnand %p5740_p4, %p5734_p12 }
  0x7a   : > { %5744 = shalt.err (!%p5741_p7)
}
  0x7b   : > { %5488 = dma.hbm_to_vmem [thread:$0]  (!%p6018_p9), %s7117_s19, 32, %s773_s6, [#allocation6], %s5812_s0, %s5812_s0, %s5813_s5  }
  0x7c   : > { %s5814_s25 = smov [#allocation8]   ;;  %s7118_s23 = sld [smem:[#allocation38_spill]] }
  0x7d   : > { %s795_s26 = sshll.u32 %s5814_s25, 4  ;;  %s796_s26 = int_to_ptr.vmem [resolvable:$true] %s795_s26 }
  0x82   : > { %s5745_s2 = scalar_lea.hbm %s7118_s23, 16 }
  0x83   : > { %p5746_p4 = scmp.ne.s32.totalorder %s7118_s23, %s5745_s2  ;;  %p5752_p0 = scmp.lt.u32.totalorder %s5745_s2, %s7118_s23 }
  0x85   : > { %p5748_p7 = pnand %p5746_p4, %p6034_p11 }
  0x87   : > { %p5749_p13 = pneg %p5748_p7 }
  0x89   : > { %p5754_p1 = pnand %p5752_p0, %p5749_p13 }
  0x8b   : > { %5757 = shalt.err (!%p5754_p1)
}
  0x8c   : > { %s5758_s6 = scalar_lea.vmem %s796_s26, 16  ;;  %s5765_s0 = scalar_lea.vmem %s796_s26, 32 }
  0x8d   : > { %p5759_p3 = scmp.ne.s32.totalorder %s796_s26, %s5758_s6  ;;  %p5766_p10 = scmp.lt.s32.totalorder %s796_s26, %s796_s26 }
  0x8e   : > { %p5767_p12 = scmp.lt.s32.totalorder %s5765_s0, %s5758_s6 }
  0x8f   : > { %p5761_p5 = pnand %p5759_p3, %p6034_p11 }
  0x90   : > { %p5768_p2 = por %p5767_p12, %p5766_p10 }
  0x91   : > { %p5762_p8 = pneg %p5761_p5 }
  0x93   : > { %p5769_p6 = pnand %p5768_p2, %p5762_p8 }
  0x95   : > { %5772 = shalt.err (!%p5769_p6)
}
  0x96   : > { %5491 = dma.hbm_to_vmem [thread:$0]  (!%p6018_p9), %s7118_s23, 16, %s796_s26, [#allocation9]  }
  0x97   : > { %p7119_p4 = scmp.ne.s32.totalorder %s7112_s29, 0 }
  0x99   : > { %815 = sbr.rel (%p7119_p4) target bundleno = 9016 (0x2338), region = 116 }
  0xa0   : > { %p7120_p7 = scmp.eq.s32.totalorder %s5989_s30, 0 }
  0xa2   : > { %5786 = dma.done.wait (%p7120_p7), [#allocation4], 32   ;;  %p7121_p11 = pmov %p7120_p7 }
  0xa3   : > { %p7122_p13 = pmov %p7120_p7 }
  0xa4   : > { %5788 = vsyncadd (%p7121_p11), [#allocation4], 4294967264 }
  0xa5   : > { %5790 = dma.done.wait (%p7122_p13), [#allocation6], 64   ;;  %p7123_p0 = pmov %p7120_p7 }
  0xa7   : > { %5792 = vsyncadd (%p7123_p0), [#allocation6], 4294967232  ;;  %p7124_p1 = pmov %p7123_p0 }
  0xa8   : > { %p7125_p9 = pmov %p7123_p0 }
  0xa9   : > { %5794 = dma.done.wait (%p7124_p1), [#allocation9], 16  }
  0xaa   : > { %5796 = vsyncadd (%p7125_p9), [#allocation9], 4294967280  ;;  %p915_p3 = scmp.lt.s32.totalorder %s5989_s30, 1  ;;  %v5815_v0 = vmov 0.0   ;;  %vm5816_vm0 = vmmov 0   ;;  %s7127_s25 = sld [smem:[#allocation22_spill]] }
  0xab   : > { %5127 = vmatprep.subr.bf16.mxu0 %v5815_v0  ;;  %5131 = vmatprep.mubr.msk.bf16.mxu0 %vm5816_vm0, %v5815_v0  ;;  %s7128_s2 = sld [smem:[#allocation26_spill]]  ;;  %vm1124_vm1 = vcmask 261120   ;;  %s7129_s6 = sld [smem:[#allocation27_spill]]  ;;  %vm1172_vm2 = vcmask 64512   ;;  %vm1237_vm3 = vcmask 1043456   ;;  %vm1397_vm4 = vcmask 130112  }
  0xac   : > { %s916_s28 = scalar_select %p915_p3, %s5989_s30, 1  ;;  %5135 = vmatprep.subr.bf16.mxu1 %v5815_v0  ;;  %5137 = vmatprep.mubr.msk.bf16.mxu1 %vm5816_vm0, %v5815_v0  ;;  %vm1514_vm5 = vcmask 195712   ;;  %vm1631_vm6 = vcmask 261312   ;;  %vm1859_vm8 = vcmask 1041409   ;;  %vm1862_vm9 = vcmask 1042434  }
  0xad   : > { %s7074_s0 = smov 120   ;;  %s7062_s5 = smov 96   ;;  %vm1865_vm10 = vcmask 1043459   ;;  %vm1868_vm11 = vcmask 1044484   ;;  %vm1871_vm12 = vcmask 1045509   ;;  %vm1874_vm13 = vcmask 1046534  }
  0xae   : > { %s6146_s29 = sshll.u32 %s916_s28, 3  ;;  %s7061_s4 = smov 80   ;;  %vm1877_vm14 = vcmask 1047559   ;;  %vm2143_vm15 = vcmask 130048  }
  0xaf   : > { %7126 = sst [smem:[#allocation21_spill]] %s6146_s29  ;;  %s7063_s28 = smov 88  }
  0xb0   : > { %s918_s26 = scalar_lea.vmem %s7127_s25, %s6146_s29  ;;  %s7060_s12 = smov 72  }
  0xb1   : > { %v5546_v1 = vld [vmem:[%s7128_s2] sm:$0xff]   ;;  %v5547_v2 = vld [vmem:[%s7128_s2 + $0x8] sm:$0xff]   ;;  %s7072_s24 = smov 112   ;;  %s7070_s25 = smov 104  }
  0xb2   : > { %5128 = vmatpush3.bf16.msra.mxu0 %v5546_v1  ;;  %v6158_v3 = vld [vmem:[%s918_s26] sm:$0xff]  ;;  %s7130_s10 = sld [smem:[#allocation25_spill]]  ;;  %s7059_s1 = smov 56  }
  0xb3   : > { %5129 = vmatprep.subr.bf16.mxu0 %v5815_v0  ;;  %v1100_v4 = vpack.c.bf16 %v6158_v3, %v6158_v3  ;;  %v4834_v5 = vld [vmem:[%s7129_s6] ss:$0 sm:$0xff]  ;;  %s7058_s9 = smov 64   ;;  %s7057_s3 = smov 40  }
  0xb4   : > { %s7056_s7 = smov 48   ;;  %s900_s26 = sand.u32 1, %s5799_s8  }
  0xb5   : > { %s6244_s11 = sshll.u32 %s900_s26, 4  ;;  %s7068_s26 = smov 8  }
  0xb6   : > { %5130 = vmatpush3.bf16.msra.mxu0 %v5547_v2  ;;  %s6248_s8 = scalar_lea.vmem [#allocation11], %s6244_s11  ;;  %p7137_p5 = scmp.eq.s32.totalorder %s5989_s30, 1 }
  0xb7   : > { %5141 = vmatprep.subr.bf16.mxu0 %v5815_v0  ;;  %s7141_s27 = sld [smem:[#allocation30_spill]]  ;;  %s7143_s19 = smov 112  }
  0xb8   : > { %v929_v23 = vld [vmem:[%s7130_s10] sm:$0xff]  ;;  %s6586_s17 = scalar_lea.vmem [#allocation12], %s6244_s11  ;;  %s7148_s23 = smov 8  }
  0xb9   : > { %5132 = vmatmul.mubr.msk.bf16.vlgmr.msra.gmra.mrb[0].mxu0 %vm1124_vm1, %v1100_v4  ;;  %s7152_s30 = smov 96   ;;  %s7153_s29 = smov 80  }
  0xba   : > { %5143 = vmatprep.mubr.msk.bf16.mxu0 %vm5816_vm0, %v5815_v0  ;;  %s7156_s22 = smov 64  }
 0x18c   : > { %v1162_v6 = vpop.f32.mrb[0].mxu0 }
 0x18d   : > { %v1163_v7 = vadd.f32 %v4834_v5, %v1162_v6  ;;  %v5133_v8 = vpop.f32.mrb[1].mxu0 }
 0x18e   : > { %v1165_v9 = vpop.f32.mrb[2].mxu0 }
 0x18f   : > { %v6170_v10 = vpack.c.bf16 %v1163_v7, %v1163_v7  ;;  %v5134_v11 = vpop.f32.mrb[3].mxu0 }
 0x191   : > { %1282 = vrot.lane.b32.xlu1 %v6170_v10, %s7074_s0  ;;  %1170 = vrot.lane.b32.xlu0 %v6170_v10, %s7062_s5  ;;  %s7066_s5 = smov 16   ;;  %s7142_s0 = smov 120  }
 0x195   : > { %1401 = vrot.lane.b32.xlu1 %v6170_v10, %s7061_s4  ;;  %1284 = vrot.lane.b32.xlu0 %v6170_v10, %s7063_s28  ;;  %s963_s4 = scalar_select %p7137_p5, 1, 0 }
 0x196   : > { %s7145_s28 = sld [smem:[#allocation31_spill]] }
 0x199   : > { %1518 = vrot.lane.b32.xlu1 %v6170_v10, %s7060_s12  ;;  %1399 = vrot.lane.b32.xlu0 %v6170_v10, %s7072_s24  ;;  %s7144_s12 = smov 104   ;;  %s7146_s24 = sld [smem:[#allocation34_spill]] }
 0x19d   : > { %1516 = vrot.lane.b32.xlu0 %v6170_v10, %s7070_s25  ;;  %s7138_s25 = sld [smem:[#allocation23_spill]] }
 0x203   : > { %v1171_v12 = vpop.permute.xlu0 %1170  ;;  %v1283_v15 = vpop.permute.xlu1 %1282 }
 0x204   : > { %v1177_v13 = vsel %vm1172_vm2, %v1171_v12, 0 }
 0x205   : > { %5136 = vmatpush3.bf16.xpose.msra.mxu1 %v1177_v13 }
 0x206   : > { %5147 = vmatprep.subr.bf16.mxu1 %v5815_v0 }
 0x207   : > { %v1285_v14 = vpop.permute.xlu0 %1284  ;;  %v1402_v17 = vpop.permute.xlu1 %1401 }
 0x208   : > { %v1290_v16 = vsel %vm1172_vm2, %v1285_v14, 0  ;;  %v1407_v18 = vsel %vm1172_vm2, %v1402_v17, 0 }
 0x20b   : > { %v1519_v19 = vpop.permute.xlu1 %1518  ;;  %v1400_v20 = vpop.permute.xlu0 %1399 }
 0x20c   : > { %5138 = vmatmul.mubr.msk.bf16.vlgmr.msra.gmra.mrb[0].mxu1 %vm1172_vm2, %v6170_v10  ;;  %v1524_v21 = vsel %vm1172_vm2, %v1519_v19, 0 }
 0x20d   : > { %5148 = vmatpush3.bf16.xpose.msra.mxu1 %v1290_v16  ;;  %5149 = vmatprep.mubr.msk.bf16.mxu1 %vm5816_vm0, %v5815_v0 }
 0x20e   : > { %5159 = vmatprep.subr.bf16.mxu1 %v5815_v0 }
 0x20f   : > { %v1517_v22 = vpop.permute.xlu0 %1516 }
 0x214   : > { %5150 = vmatmul.mubr.msk.bf16.vlgmr.msra.gmra.mrb[4].mxu1 %vm1172_vm2, %v1283_v15 }
 0x215   : > { %5160 = vmatpush3.bf16.xpose.msra.mxu1 %v1407_v18  ;;  %5161 = vmatprep.mubr.msk.bf16.mxu1 %vm5816_vm0, %v5815_v0 }
 0x216   : > { %5171 = vmatprep.subr.bf16.mxu1 %v5815_v0 }
 0x21c   : > { %5162 = vmatmul.mubr.msk.bf16.vlgmr.msra.gmra.mrb[8].mxu1 %vm1172_vm2, %v1400_v20 }
 0x21d   : > { %5172 = vmatpush3.bf16.xpose.msra.mxu1 %v1524_v21  ;;  %5173 = vmatprep.mubr.msk.bf16.mxu1 %vm5816_vm0, %v5815_v0 }
 0x21e   : > { %5183 = vmatprep.subr.bf16.mxu1 %v5815_v0 }
 0x224   : > { %5174 = vmatmul.mubr.msk.bf16.vlgmr.msra.gmra.mrb[12].mxu1 %vm1172_vm2, %v1517_v22 }
 0x225   : > { %5187 = vmatprep.mubr.msk.bf16.mxu1 %vm5816_vm0, %v5815_v0 }
 0x2df   : > { %v1213_v24 = vpop.f32.mrb[0].mxu1 }
 0x2e0   : > { %v1214_v25 = vadd.f32 %v1213_v24, %v929_v23  ;;  %v5139_v26 = vpop.f32.mrb[1].mxu1 }
 0x2e1   : > { %v1216_v27 = vpop.f32.mrb[2].mxu1 }
 0x2e2   : > { %v5140_v28 = vpop.f32.mrb[3].mxu1  ;;  %v1219_v29 = vsel %vm1172_vm2, %v1214_v25, -inf }
 0x2e3   : > { %1220 = vmax.xlane.f32.xlu1 %v1219_v29 }
 0x2e7   : > { %v1326_v30 = vpop.f32.mrb[4].mxu1 }
 0x2e8   : > { %v1327_v31 = vadd.f32 %v1326_v30, %v929_v23  ;;  %v5151_v32 = vpop.f32.mrb[5].mxu1 }
 0x2e9   : > { %v1329_v33 = vpop.f32.mrb[6].mxu1 }
 0x2ea   : > { %v5152_v34 = vpop.f32.mrb[7].mxu1  ;;  %v1332_v35 = vsel %vm1172_vm2, %v1327_v31, -inf }
 0x2eb   : > { %1333 = vmax.xlane.f32.xlu0 %v1332_v35 }
 0x2ef   : > { %v1443_v36 = vpop.f32.mrb[8].mxu1 }
 0x2f0   : > { %v1444_v37 = vadd.f32 %v1443_v36, %v929_v23  ;;  %v5163_v38 = vpop.f32.mrb[9].mxu1 }
 0x2f1   : > { %v1446_v39 = vpop.f32.mrb[10].mxu1 }
 0x2f2   : > { %v5164_v40 = vpop.f32.mrb[11].mxu1  ;;  %v1449_v41 = vsel %vm1172_vm2, %v1444_v37, -inf }
 0x2f3   : > { %1450 = vmax.xlane.f32.xlu0 %v1449_v41 }
 0x2f7   : > { %v1560_v42 = vpop.f32.mrb[12].mxu1 }
 0x2f8   : > { %v1561_v43 = vadd.f32 %v1560_v42, %v929_v23  ;;  %v5175_v44 = vpop.f32.mrb[13].mxu1 }
 0x2f9   : > { %v1563_v45 = vpop.f32.mrb[14].mxu1 }
 0x2fa   : > { %v5176_v46 = vpop.f32.mrb[15].mxu1  ;;  %v1566_v47 = vsel %vm1172_vm2, %v1561_v43, -inf }
 0x2fb   : > { %1567 = vmax.xlane.f32.xlu1 %v1566_v47 }
 0x370   : > { %v1221_v48 = vpop.xlane.xlu1 %1220 }
 0x371   : > { %v1222_v49 = vsub.f32 %v1214_v25, %v1221_v48 }
 0x373   : > { %v1223_v50 = vmul.f32 1.442695, %v1222_v49 }
 0x375   : > { %5584 = vpow2.f32 %v1223_v50 }
 0x378   : > { %v1334_v51 = vpop.xlane.xlu0 %1333 }
 0x379   : > { %v1335_v52 = vsub.f32 %v1327_v31, %v1334_v51 }
 0x37b   : > { %v1336_v53 = vmul.f32 1.442695, %v1335_v52 }
 0x37d   : > { %5586 = vpow2.f32 %v1336_v53 }
 0x37f   : > { %v5585_v54 = vpop.eup %5584 }
 0x380   : > { %v1451_v55 = vpop.xlane.xlu0 %1450  ;;  %v1225_v56 = vsel %vm1172_vm2, %v5585_v54, 0.0 }
 0x381   : > { %v1452_v57 = vsub.f32 %v1444_v37, %v1451_v55  ;;  %1226 = vadd.xlane.f32.xlu0 %v1225_v56 }
 0x383   : > { %v1453_v58 = vmul.f32 1.442695, %v1452_v57 }
 0x385   : > { %5588 = vpow2.f32 %v1453_v58 }
 0x387   : > { %v5587_v59 = vpop.eup %5586 }
 0x388   : > { %v1338_v60 = vsel %vm1172_vm2, %v5587_v59, 0.0  ;;  %v1568_v63 = vpop.xlane.xlu1 %1567 }
 0x389   : > { %1339 = vadd.xlane.f32.xlu1 %v1338_v60  ;;  %v1569_v1 = vsub.f32 %v1561_v43, %v1568_v63 }
 0x38b   : > { %v1570_v2 = vmul.f32 1.442695, %v1569_v1 }
 0x38d   : > { %5590 = vpow2.f32 %v1570_v2 }
 0x38f   : > { %v5589_v61 = vpop.eup %5588 }
 0x390   : > { %v1455_v62 = vsel %vm1172_vm2, %v5589_v61, 0.0 }
 0x391   : > { %1456 = vadd.xlane.f32.xlu0 %v1455_v62 }
 0x397   : > { %v5591_v4 = vpop.eup %5590 }
 0x398   : > { %v1572_v5 = vsel %vm1172_vm2, %v5591_v4, 0.0 }
 0x39a   : > { %1345 = vrot.lane.b32.xlu1 %v6170_v10, %s7059_s1 }
 0x3a7   : > { %1232 = vrot.lane.b32.xlu0 %v6170_v10, %s7058_s9  ;;  %s7131_s9 = sld [smem:[#allocation28_spill]] }
 0x3ab   : > { %1579 = vrot.lane.b32.xlu0 %v6170_v10, %s7057_s3  ;;  %s7064_s3 = smov 24  }
 0x3ad   : > { %s7132_s1 = smov %s7131_s9  ;;  %v5548_v42 = vld [vmem:[%s7131_s9] sm:$0xff]   ;;  %s7133_s9 = sld [smem:[#allocation29_spill]] }
 0x3ae   : > { %5184 = vmatpush3.bf16.msra.mxu1 %v5548_v42  ;;  %v5549_v43 = vld [vmem:[%s7132_s1 + $0x8] sm:$0xff]  }
 0x3af   : > { %5185 = vmatprep.subr.bf16.mxu1 %v5815_v0 }
 0x3b2   : > { %5186 = vmatpush3.bf16.msra.mxu1 %v5549_v43 }
 0x3b3   : > { %5199 = vmatprep.subr.bf16.mxu1 %v5815_v0  ;;  %v4846_v57 = vld [vmem:[%s7133_s9] ss:$0 sm:$0xff] }
 0x3be   : > { %1573 = vadd.xlane.f32.xlu1 %v1572_v5 }
 0x3cf   : > { %1462 = vrot.lane.b32.xlu1 %v6170_v10, %s7056_s7  ;;  %s7134_s7 = smov %s7133_s9 }
 0x40e   : > { %v1227_v6 = vpop.xlane.xlu0 %1226 }
 0x40f   : > { %5592 = vrcp.f32 %v1227_v6 }
 0x416   : > { %v1340_v7 = vpop.xlane.xlu1 %1339 }
 0x417   : > { %5594 = vrcp.f32 %v1340_v7 }
 0x419   : > { %v5593_v8 = vpop.eup %5592 }
 0x41a   : > { %v1229_v11 = vmul.f32 %v5593_v8, %v5585_v54  ;;  %v1346_v14 = vpop.permute.xlu1 %1345 }
 0x41b   : > { %v1351_v17 = vsel %vm1237_vm3, %v1346_v14, 0  ;;  %v933_v14 = vld [vmem:[%s7138_s25 + $0x6] sm:$0x3] }
 0x41c   : > { %v1231_v15 = vpack.c.bf16 %v1229_v11, %v1229_v11 }
 0x41e   : > { %v1457_v9 = vpop.xlane.xlu0 %1456 }
 0x41f   : > { %5596 = vrcp.f32 %v1457_v9  ;;  %v932_v9 = vld [vmem:[%s7138_s25 + $0x4] sm:$0x3] }
 0x421   : > { %v5595_v16 = vpop.eup %5594 }
 0x422   : > { %v1233_v12 = vpop.permute.xlu0 %1232  ;;  %v1342_v10 = vmul.f32 %v5595_v16, %v5587_v59  ;;  %v939_v16 = vld [vmem:[%s7138_s25 + $0x12] sm:$0x3] }
 0x423   : > { %v1239_v13 = vsel %vm1237_vm3, %v1233_v12, 0 }
 0x424   : > { %5142 = vmatpush3.bf16.msra.mxu0 %v1239_v13  ;;  %v1344_v18 = vpack.c.bf16 %v1342_v10, %v1342_v10  ;;  %v1343_v27 = vadd.f32 %v1342_v10, %v1229_v11  ;;  %v964_v11 = vstv %s963_s4  ;;  %v931_v13 = vld [vmem:[%s7138_s25 + $0x2] sm:$0x3]  ;;  %v940_v10 = vld [vmem:[%s7138_s25 + $0x14] sm:$0x3] }
 0x425   : > { %5153 = vmatprep.subr.bf16.mxu0 %v5815_v0  ;;  %vm6324_vm7 = vcmp.eq.s32.totalorder %v964_v11, 1 }
 0x426   : > { %v1580_v24 = vpop.permute.xlu0 %1579 }
 0x427   : > { %5144 = vmatmul.mubr.msk.bf16.vlgmr.msra.gmra.mrb[4].mxu0 %vm1172_vm2, %v1231_v15  ;;  %v1585_v26 = vsel %vm1237_vm3, %v1580_v24, 0  ;;  %v938_v15 = vld [vmem:[%s7138_s25 + $0x10] sm:$0x3]  ;;  %v936_v24 = vld [vmem:[%s7138_s25 + $0xc] sm:$0x3] }
 0x428   : > { %5154 = vmatpush3.bf16.msra.mxu0 %v1351_v17  ;;  %5155 = vmatprep.mubr.msk.bf16.mxu0 %vm5816_vm0, %v5815_v0  ;;  %v934_v17 = vld [vmem:[%s7138_s25 + $0x8] sm:$0x3] }
 0x429   : > { %5165 = vmatprep.subr.bf16.mxu0 %v5815_v0  ;;  %v5597_v19 = vpop.eup %5596 }
 0x42a   : > { %v1459_v21 = vmul.f32 %v5597_v19, %v5589_v61  ;;  %v942_v19 = vld [vmem:[%s7138_s25 + $0x18] sm:$0x3] }
 0x42c   : > { %v1461_v25 = vpack.c.bf16 %v1459_v21, %v1459_v21  ;;  %v1460_v29 = vadd.f32 %v1459_v21, %v1343_v27  ;;  %v943_v21 = vld [vmem:[%s7138_s25 + $0x1a] sm:$0x3]  ;;  %v985_v27 = vrot.slane %v933_v14, 7 }
 0x42f   : > { %5156 = vmatmul.mubr.msk.bf16.vlgmr.msra.gmra.mrb[8].mxu0 %vm1172_vm2, %v1344_v18  ;;  %v941_v18 = vld [vmem:[%s7138_s25 + $0x16] sm:$0x3] }
 0x430   : > { %5167 = vmatprep.mubr.msk.bf16.mxu0 %vm5816_vm0, %v5815_v0 }
 0x44b   : > { %v1574_v20 = vpop.xlane.xlu1 %1573 }
 0x44c   : > { %5598 = vrcp.f32 %v1574_v20  ;;  %v935_v20 = vld [vmem:[%s7138_s25 + $0xa] sm:$0x3] }
 0x44f   : > { %v1463_v22 = vpop.permute.xlu1 %1462 }
 0x450   : > { %v1468_v23 = vsel %vm1237_vm3, %v1463_v22, 0 }
 0x451   : > { %5166 = vmatpush3.bf16.msra.mxu0 %v1468_v23  ;;  %v983_v23 = vrot.slane %v931_v13, 7 }
 0x452   : > { %5177 = vmatprep.subr.bf16.mxu0 %v5815_v0 }
 0x453   : > { %v1015_v43 = vsel %vm6324_vm7, %v931_v13, %v983_v23 }
 0x454   : > { %5168 = vmatmul.mubr.msk.bf16.vlgmr.msra.gmra.mrb[12].mxu0 %vm1172_vm2, %v1461_v25  ;;  %v944_v25 = vld [vmem:[%s7138_s25 + $0x1c] sm:$0x3] }
 0x455   : > { %5178 = vmatpush3.bf16.msra.mxu0 %v1585_v26  ;;  %5179 = vmatprep.mubr.msk.bf16.mxu0 %vm5816_vm0, %v5815_v0  ;;  %v984_v26 = vrot.slane %v932_v9, 7 }
 0x456   : > { %v5599_v28 = vpop.eup %5598  ;;  %5191 = vmatprep.subr.bf16.mxu0 %v5815_v0 }
 0x457   : > { %v1576_v30 = vmul.f32 %v5599_v28, %v5591_v4  ;;  %v937_v28 = vld [vmem:[%s7138_s25 + $0xe] sm:$0x3] }
 0x459   : > { %v1577_v31 = vadd.f32 %v1576_v30, %v1460_v29  ;;  %v1578_v32 = vpack.c.bf16 %v1576_v30, %v1576_v30  ;;  %v945_v29 = vld [vmem:[%s7138_s25 + $0x1e] sm:$0x3]  ;;  %v986_v30 = vrot.slane %v934_v17, 7 }
 0x45a   : > { %v997_v42 = vrot.slane %v945_v29, 7 }
 0x45b   : > { %v1634_v33 = vmul.f32 0.25, %v1577_v31  ;;  %v987_v31 = vrot.slane %v935_v20, 7 }
 0x45c   : > { %5180 = vmatmul.mubr.msk.bf16.vlgmr.msra.gmra.mrb[16].mxu0 %vm1172_vm2, %v1578_v32 }
 0x45d   : > { %1731 = vst.msk [vmem:[%s6248_s8] sm:$0xff] %vm1172_vm2, %v1634_v33  ;;  %5195 = vmatprep.mubr.msk.bf16.mxu0 %vm5816_vm0, %v5815_v0  ;;  %v988_v33 = vrot.slane %v936_v24, 7 }
 0x4fa   : > { %v1275_v34 = vpop.f32.mrb[4].mxu0 }
 0x4fb   : > { %1281 = vst.msk [vmem:[#allocation2] sm:$0xff] %vm1172_vm2, %v1275_v34  ;;  %v5145_v35 = vpop.f32.mrb[5].mxu0  ;;  %v989_v34 = vrot.slane %v937_v28, 7 }
 0x4fc   : > { %v1278_v36 = vpop.f32.mrb[6].mxu0  ;;  %v990_v35 = vrot.slane %v938_v15, 7 }
 0x4fd   : > { %v5146_v37 = vpop.f32.mrb[7].mxu0  ;;  %v991_v36 = vrot.slane %v939_v16, 7 }
 0x4fe   : > { %v992_v37 = vrot.slane %v940_v10, 7 }
 0x502   : > { %v1387_v38 = vpop.f32.mrb[8].mxu0 }
 0x503   : > { %1394 = vrot.lane.b32.xlu1 %v1387_v38, %s7068_s26  ;;  %v5157_v39 = vpop.f32.mrb[9].mxu0  ;;  %v993_v38 = vrot.slane %v941_v18, 7 }
 0x504   : > { %v1390_v40 = vpop.f32.mrb[10].mxu0  ;;  %v994_v39 = vrot.slane %v942_v19, 7 }
 0x505   : > { %v5158_v41 = vpop.f32.mrb[11].mxu0  ;;  %v995_v40 = vrot.slane %v943_v21, 7 }
 0x506   : > { %v996_v41 = vrot.slane %v944_v25, 7 }
 0x527   : > { %v1504_v44 = vpop.f32.mrb[12].mxu0 }
 0x528   : > { %1511 = vrot.lane.b32.xlu0 %v1504_v44, %s7066_s5  ;;  %v5169_v45 = vpop.f32.mrb[13].mxu0  ;;  %s7135_s5 = sld [smem:[#allocation32_spill]] }
 0x529   : > { %v1507_v46 = vpop.f32.mrb[14].mxu0  ;;  %v1016_v45 = vsel %vm6324_vm7, %v932_v9, %v984_v26 }
 0x52a   : > { %v5170_v47 = vpop.f32.mrb[15].mxu0  ;;  %v1017_v46 = vsel %vm6324_vm7, %v933_v14, %v985_v27 }
 0x52b   : > { %v1018_v47 = vsel %vm6324_vm7, %v934_v17, %v986_v30 }
 0x52e   : > { %s7136_s26 = smov %s7135_s5  ;;  %v5550_v2 = vld [vmem:[%s7135_s5] sm:$0xff]   ;;  %s6669_s5 = scalar_lea.vmem [#allocation10], %s6244_s11 }
 0x52f   : > { %v1621_v48 = vpop.f32.mrb[16].mxu0  ;;  %s7151_s11 = smov 88  }
 0x530   : > { %1628 = vrot.lane.b32.xlu1 %v1621_v48, %s7064_s3  ;;  %v5181_v49 = vpop.f32.mrb[17].mxu0  ;;  %v1019_v48 = vsel %vm6324_vm7, %v935_v20, %v987_v31  ;;  %s7155_s3 = smov 56  }
 0x531   : > { %v1624_v50 = vpop.f32.mrb[18].mxu0  ;;  %v1020_v49 = vsel %vm6324_vm7, %v936_v24, %v988_v33 }
 0x532   : > { %v5182_v51 = vpop.f32.mrb[19].mxu0  ;;  %v1021_v50 = vsel %vm6324_vm7, %v937_v28, %v989_v34 }
 0x533   : > { %v1022_v51 = vsel %vm6324_vm7, %v938_v15, %v990_v35 }
 0x575   : > { %v1395_v52 = vpop.permute.xlu1 %1394 }
 0x576   : > { %1398 = vst.msk [vmem:[#allocation2] sm:$0xff] %vm1397_vm4, %v1395_v52  ;;  %v1023_v52 = vsel %vm6324_vm7, %v939_v16, %v991_v36 }
 0x59a   : > { %v1512_v53 = vpop.permute.xlu0 %1511 }
 0x59b   : > { %1515 = vst.msk [vmem:[#allocation2] sm:$0xff] %vm1514_vm5, %v1512_v53  ;;  %v1024_v53 = vsel %vm6324_vm7, %v940_v10, %v992_v37 }
 0x5a2   : > { %v1629_v54 = vpop.permute.xlu1 %1628 }
 0x5a3   : > { %1632 = vst.msk [vmem:[#allocation2] sm:$0xff] %vm1631_vm6, %v1629_v54  ;;  %v1025_v54 = vsel %vm6324_vm7, %v941_v18, %v993_v38 }
 0x5aa   : > { %v1633_v55 = vld [vmem:[#allocation2] sm:$0xff] }
 0x5ab   : > { %v1635_v56 = vpack.c.bf16 %v1633_v55, %v1633_v55  ;;  %v1026_v55 = vsel %vm6324_vm7, %v942_v19, %v994_v39 }
 0x5ac   : > { %v1811_v9 = vpack.c.bf16 %v1026_v55, %v1026_v55 }
 0x5ad   : > { %5188 = vmatmul.mubr.msk.bf16.vlgmr.msra.gmra.mrb[16].mxu1 %vm1124_vm1, %v1635_v56  ;;  %v1027_v56 = vsel %vm6324_vm7, %v943_v21, %v995_v40 }
 0x5ae   : > { %5203 = vmatprep.mubr.msk.bf16.mxu1 %vm5816_vm0, %v5815_v0  ;;  %5200 = vmatpush3.bf16.msra.mxu1 %v5550_v2  ;;  %v1805_v2 = vpack.c.bf16 %v1020_v49, %v1020_v49  ;;  %v1812_v11 = vpack.c.bf16 %v1027_v56, %v1027_v56  ;;  %v1854_v26 = vunpack.c.l.b16 %v1811_v9  ;;  %v4856_v9 = vld [vmem:[#allocation3] ss:$0 sm:$0xff] }
 0x5af   : > { %5201 = vmatprep.subr.bf16.mxu1 %v5815_v0 }
 0x5b0   : > { %v1848_v19 = vunpack.c.l.b16 %v1805_v2  ;;  %v1855_v27 = vunpack.c.l.b16 %v1812_v11  ;;  %v4850_v2 = vld [vmem:[%s7028_s20] ss:$0 sm:$0xff] }
 0x5b2   : > { %v1873_v38 = vrot.slane %v1848_v19, 3 }
 0x680   : > { %v1696_v58 = vpop.f32.mrb[16].mxu1 }
 0x681   : > { %v1697_v59 = vadd.f32 %v4846_v57, %v1696_v58  ;;  %v5189_v60 = vpop.f32.mrb[17].mxu1  ;;  %v1028_v57 = vsel %vm6324_vm7, %v944_v25, %v996_v41  ;;  %v1029_v58 = vsel %vm6324_vm7, %v945_v29, %v997_v42 }
 0x682   : > { %v1699_v61 = vpop.f32.mrb[18].mxu1  ;;  %v1802_v60 = vpack.c.bf16 %v1017_v46, %v1017_v46  ;;  %v1813_v13 = vpack.c.bf16 %v1028_v57, %v1028_v57  ;;  %v1814_v14 = vpack.c.bf16 %v1029_v58, %v1029_v58 }
 0x683   : > { %v5190_v62 = vpop.f32.mrb[19].mxu1  ;;  %v1702_v63 = vadd.f32 %v1697_v59, %v6158_v3  ;;  %v930_v3 = vld [vmem:[%s7138_s25] sm:$0x3]  ;;  %v1801_v59 = vpack.c.bf16 %v1016_v45, %v1016_v45  ;;  %v5551_v61 = vld [vmem:[%s7136_s26 + $0x8] sm:$0xff]   ;;  %s7147_s25 = sld [smem:[#allocation24_spill]] }
 0x684   : > { %v982_v12 = vrot.slane %v930_v3, 7  ;;  %v1800_v62 = vpack.c.bf16 %v1015_v43, %v1015_v43  ;;  %5202 = vmatpush3.bf16.msra.mxu1 %v5551_v61  ;;  %v1845_v16 = vunpack.c.l.b16 %v1802_v60  ;;  %v1856_v33 = vunpack.c.l.b16 %v1813_v13 }
 0x685   : > { %v1703_v1 = vsel %vm1124_vm1, %v1702_v63, 0.0  ;;  %v1844_v15 = vunpack.c.l.b16 %v1801_v59  ;;  %5215 = vmatprep.subr.bf16.mxu1 %v5815_v0  ;;  %v1857_v36 = vunpack.c.l.b16 %v1814_v14  ;;  %v5553_v59 = vld [vmem:[%s7141_s27 + $0x8] sm:$0xff]  }
 0x686   : > { %1704 = vadd.xlane.f32.xlu0 %v1703_v1  ;;  %v1014_v32 = vsel %vm6324_vm7, %v930_v3, %v982_v12  ;;  %v1804_v1 = vpack.c.bf16 %v1019_v48, %v1019_v48  ;;  %v1809_v3 = vpack.c.bf16 %v1024_v53, %v1024_v53  ;;  %v1843_v17 = vunpack.c.l.b16 %v1800_v62 }
 0x687   : > { %v1799_v44 = vpack.c.bf16 %v1014_v32, %v1014_v32  ;;  %v1861_v29 = vrot.slane %v1844_v15, 7  ;;  %v1864_v30 = vrot.slane %v1845_v16, 6 }
 0x688   : > { %v1847_v18 = vunpack.c.l.b16 %v1804_v1  ;;  %v1852_v24 = vunpack.c.l.b16 %v1809_v3 }
 0x689   : > { %v1842_v12 = vunpack.c.l.b16 %v1799_v44  ;;  %v1885_v44 = vrot.slane %v1854_v26, 5 }
 0x68a   : > { %v1870_v35 = vrot.slane %v1847_v18, 4  ;;  %v1881_v41 = vrot.slane %v1852_v24, 7 }
 0x68b   : > { %v1858_v28 = vrot.slane %v1842_v12, 1 }
 0x68d   : > { %v1860_v31 = vsel %vm1859_vm8, %v1843_v17, %v1858_v28  ;;  %v5555_v28 = vld [vmem:[%s7146_s24 + $0x8] sm:$0xff]  }
 0x68e   : > { %v1863_v34 = vsel %vm1862_vm9, %v1861_v29, %v1860_v31  ;;  %v946_v29 = vld [vmem:[%s7147_s25] sm:$0x3]  ;;  %v948_v31 = vld [vmem:[%s7147_s25 + $0x4] sm:$0x3] }
 0x68f   : > { %v1866_v37 = vsel %vm1865_vm10, %v1864_v30, %v1863_v34  ;;  %v947_v30 = vld [vmem:[%s7147_s25 + $0x2] sm:$0x3]  ;;  %v951_v34 = vld [vmem:[%s7147_s25 + $0xa] sm:$0x3] }
 0x713   : > { %v1705_v4 = vpop.xlane.xlu0 %1704 }
 0x714   : > { %v1707_v5 = vmul.f32 0.03125, %v1705_v4  ;;  %v1806_v4 = vpack.c.bf16 %v1021_v50, %v1021_v50  ;;  %v1889_v50 = vrot.slane %v1856_v33, 3  ;;  %v950_v33 = vld [vmem:[%s7147_s25 + $0x8] sm:$0x3] }
 0x716   : > { %v6281_v6 = vsub.f32 %v1702_v63, %v1707_v5  ;;  %v1803_v63 = vpack.c.bf16 %v1018_v47, %v1018_v47  ;;  %v1807_v5 = vpack.c.bf16 %v1022_v51, %v1022_v51  ;;  %v1849_v20 = vunpack.c.l.b16 %v1806_v4 }
 0x717   : > { %v1887_v47 = vrot.slane %v1855_v27, 4  ;;  %v5554_v27 = vld [vmem:[%s7146_s24] sm:$0xff]   ;;  %s7150_s24 = smov 24  }
 0x718   : > { %v1709_v7 = vmul.f32 %v6281_v6, %v6281_v6  ;;  %v1846_v10 = vunpack.c.l.b16 %v1803_v63  ;;  %v1850_v21 = vunpack.c.l.b16 %v1807_v5  ;;  %v1876_v45 = vrot.slane %v1849_v20, 2  ;;  %v4851_v5 = vld [vmem:[%s7029_s21] ss:$0 sm:$0xff] }
 0x71a   : > { %v1710_v8 = vsel %vm1124_vm1, %v1709_v7, 0.0  ;;  %v1808_v7 = vpack.c.bf16 %v1023_v52, %v1023_v52  ;;  %v1867_v32 = vrot.slane %v1846_v10, 5  ;;  %v1879_v40 = vrot.slane %v1850_v21, 1  ;;  %v4852_v10 = vld [vmem:[%s7145_s28] ss:$0 sm:$0xff]  ;;  %s7154_s28 = smov 72  }
 0x71b   : > { %1711 = vadd.xlane.f32.xlu1 %v1710_v8  ;;  %v1810_v8 = vpack.c.bf16 %v1025_v54, %v1025_v54  ;;  %v1891_v52 = vrot.slane %v1857_v36, 2  ;;  %v5552_v54 = vld [vmem:[%s7141_s27] sm:$0xff]   ;;  %v953_v36 = vld [vmem:[%s7147_s25 + $0xe] sm:$0x3]  ;;  %s7149_s27 = smov 16  }
 0x71c   : > { %v1851_v23 = vunpack.c.l.b16 %v1808_v7  ;;  %v1869_v39 = vsel %vm1868_vm11, %v1867_v32, %v1866_v37  ;;  %5192 = vmatpush3.bf16.msra.mxu0 %v5552_v54  ;;  %v949_v32 = vld [vmem:[%s7147_s25 + $0x6] sm:$0x3]  ;;  %v954_v37 = vld [vmem:[%s7147_s25 + $0x10] sm:$0x3] }
 0x71d   : > { %v1853_v25 = vunpack.c.l.b16 %v1810_v8  ;;  %v1872_v43 = vsel %vm1871_vm12, %v1870_v35, %v1869_v39  ;;  %5193 = vmatprep.subr.bf16.mxu0 %v5815_v0  ;;  %v952_v35 = vld [vmem:[%s7147_s25 + $0xc] sm:$0x3]  ;;  %v956_v39 = vld [vmem:[%s7147_s25 + $0x14] sm:$0x3] }
 0x71e   : > { %v1880_v46 = vsel %vm1859_vm8, %v1851_v23, %v1879_v40  ;;  %v1875_v48 = vsel %vm1874_vm13, %v1873_v38, %v1872_v43  ;;  %v955_v38 = vld [vmem:[%s7147_s25 + $0x12] sm:$0x3]  ;;  %v957_v40 = vld [vmem:[%s7147_s25 + $0x16] sm:$0x3]  ;;  %v960_v43 = vld [vmem:[%s7147_s25 + $0x1c] sm:$0x3] }
 0x71f   : > { %v1883_v42 = vrot.slane %v1853_v25, 6  ;;  %v1882_v49 = vsel %vm1862_vm9, %v1881_v41, %v1880_v46  ;;  %v1878_v55 = vsel %vm1877_vm14, %v1876_v45, %v1875_v48  ;;  %v958_v41 = vld [vmem:[%s7147_s25 + $0x18] sm:$0x3]  ;;  %v1047_v45 = vrot.slane %v947_v30, 7  ;;  %v961_v46 = vld [vmem:[%s7147_s25 + $0x1e] sm:$0x3] }
 0x720   : > { %5194 = vmatpush3.bf16.msra.mxu0 %v5553_v59  ;;  %v1049_v48 = vrot.slane %v949_v32, 7  ;;  %v1055_v54 = vrot.slane %v955_v38, 7  ;;  %v1060_v59 = vrot.slane %v960_v43, 7 }
 0x721   : > { %v1884_v51 = vsel %vm1865_vm10, %v1883_v42, %v1882_v49  ;;  %5207 = vmatprep.subr.bf16.mxu0 %v5815_v0  ;;  %v959_v42 = vld [vmem:[%s7147_s25 + $0x1a] sm:$0x3]  ;;  %v1050_v49 = vrot.slane %v950_v33, 7 }
 0x722   : > { %v1886_v53 = vsel %vm1868_vm11, %v1885_v44, %v1884_v51  ;;  %v1046_v44 = vrot.slane %v946_v29, 7  ;;  %v1052_v51 = vrot.slane %v952_v35, 7 }
 0x723   : > { %v1888_v56 = vsel %vm1871_vm12, %v1887_v47, %v1886_v53  ;;  %v1048_v47 = vrot.slane %v948_v31, 7  ;;  %v1054_v53 = vrot.slane %v954_v37, 7 }
 0x724   : > { %v1890_v57 = vsel %vm1874_vm13, %v1889_v50, %v1888_v56  ;;  %v1051_v50 = vrot.slane %v951_v34, 7  ;;  %v1057_v56 = vrot.slane %v957_v40, 7 }
 0x725   : > { %v1892_v58 = vsel %vm1877_vm14, %v1891_v52, %v1890_v57  ;;  %v1053_v52 = vrot.slane %v953_v36, 7  ;;  %v1058_v57 = vrot.slane %v958_v41, 7 }
 0x726   : > { %v6397_v60 = vpack.c.b16 %v1892_v58, %v1878_v55  ;;  %v1056_v55 = vrot.slane %v956_v39, 7  ;;  %v1059_v58 = vrot.slane %v959_v42, 7 }
 0x728   : > { %5204 = vmatmul.mubr.msk.bf16.vlgmr.msra.gmra.mrb[20].mxu1 %vm1124_vm1, %v6397_v60 }
 0x729   : > { %5217 = vmatprep.mubr.msk.bf16.mxu1 %vm5816_vm0, %v5815_v0 }
 0x7a8   : > { %v1712_v61 = vpop.xlane.xlu1 %1711 }
 0x7a9   : > { %v1713_v62 = vmul.f32 0.03125, %v1712_v61  ;;  %v1061_v61 = vrot.slane %v961_v46, 7 }
 0x7ab   : > { %v1714_v63 = vadd.f32 1e-05, %v1713_v62  ;;  %v1078_v62 = vsel %vm6324_vm7, %v946_v29, %v1046_v44 }
 0x7ad   : > { %5600 = vrsqrt.f32 %v1714_v63  ;;  %v1079_v63 = vsel %vm6324_vm7, %v947_v30, %v1047_v45 }
 0x7b7   : > { %v5601_v1 = vpop.eup %5600 }
 0x7b8   : > { %v1716_v4 = vmul.f32 %v5601_v1, %v6281_v6  ;;  %v1080_v1 = vsel %vm6324_vm7, %v948_v31, %v1048_v47 }
 0x7ba   : > { %v1723_v7 = vmul.f32 %v4850_v2, %v1716_v4  ;;  %v1081_v2 = vsel %vm6324_vm7, %v949_v32, %v1049_v48  ;;  %v1082_v4 = vsel %vm6324_vm7, %v950_v33, %v1050_v49 }
 0x7bc   : > { %v6411_v3 = vadd.f32 %v4851_v5, %v1723_v7  ;;  %v1083_v5 = vsel %vm6324_vm7, %v951_v34, %v1051_v50  ;;  %v1084_v7 = vsel %vm6324_vm7, %v952_v35, %v1052_v51 }
 0x7be   : > { %v1732_v8 = vpack.c.bf16 %v6411_v3, %v6411_v3 }
 0x7c0   : > { %5196 = vmatmul.mubr.msk.bf16.vlgmr.msra.gmra.mrb[20].mxu0 %vm1124_vm1, %v1732_v8  ;;  %v1085_v8 = vsel %vm6324_vm7, %v953_v36, %v1053_v52 }
 0x7c1   : > { %5211 = vmatprep.mubr.msk.bf16.mxu0 %vm5816_vm0, %v5815_v0  ;;  %5208 = vmatpush3.bf16.msra.mxu0 %v5554_v27  ;;  %v1957_v27 = vpack.c.bf16 %v1085_v8, %v1085_v8 }
 0x7c2   : > { %5209 = vmatprep.subr.bf16.mxu0 %v5815_v0 }
 0x7c5   : > { %5210 = vmatpush3.bf16.msra.mxu0 %v5555_v28 }
 0x7c6   : > { %5221 = vmatprep.subr.bf16.mxu0 %v5815_v0 }
 0x7fb   : > { %v1943_v11 = vpop.f32.mrb[20].mxu1 }
 0x7fc   : > { %v1944_v12 = vadd.f32 %v4856_v9, %v1943_v11  ;;  %v5205_v13 = vpop.f32.mrb[21].mxu1  ;;  %v1087_v11 = vsel %vm6324_vm7, %v955_v38, %v1055_v54 }
 0x7fd   : > { %v1946_v6 = vpop.f32.mrb[22].mxu1  ;;  %v1089_v13 = vsel %vm6324_vm7, %v957_v40, %v1057_v56  ;;  %v1959_v28 = vpack.c.bf16 %v1087_v11, %v1087_v11 }
 0x7fe   : > { %v1947_v14 = vadd.f32 %v4856_v9, %v1946_v6  ;;  %v5206_v15 = vpop.f32.mrb[23].mxu1  ;;  %v1086_v9 = vsel %vm6324_vm7, %v954_v37, %v1054_v53  ;;  %v1090_v6 = vsel %vm6324_vm7, %v958_v41, %v1058_v57 }
 0x7ff   : > { %v1092_v15 = vsel %vm6324_vm7, %v960_v43, %v1060_v59  ;;  %v1962_v29 = vpack.c.bf16 %v1090_v6, %v1090_v6  ;;  %v2002_v43 = vunpack.c.l.b16 %v1959_v28 }
 0x800   : > { %v2095_v16 = vpack.c.bf16 %v1947_v14, %v1944_v12  ;;  %v1088_v12 = vsel %vm6324_vm7, %v956_v39, %v1056_v55  ;;  %v1091_v14 = vsel %vm6324_vm7, %v959_v42, %v1059_v58  ;;  %v1964_v31 = vpack.c.bf16 %v1092_v15, %v1092_v15 }
 0x801   : > { %v1963_v30 = vpack.c.bf16 %v1091_v14, %v1091_v14  ;;  %v2000_v42 = vunpack.c.l.b16 %v1957_v27  ;;  %v2005_v44 = vunpack.c.l.b16 %v1962_v29 }
 0x802   : > { %2205 = vrot.lane.b32.xlu0 %v2095_v16, %s7142_s0  ;;  %v2101_v17 = vsel %vm1172_vm2, %v2095_v16, 0 }
 0x803   : > { %5216 = vmatpush3.bf16.xpose.msra.mxu1 %v2101_v17  ;;  %v1952_v17 = vpack.c.bf16 %v1080_v1, %v1080_v1  ;;  %v2006_v45 = vunpack.c.l.b16 %v1963_v30  ;;  %v2029_v57 = vrot.slane %v2005_v44, 5  ;;  %v2021_v1 = vrot.slane %v2000_v42, 2 }
 0x804   : > { %5227 = vmatprep.subr.bf16.mxu1 %v5815_v0 }
 0x805   : > { %v1995_v33 = vunpack.c.l.b16 %v1952_v17 }
 0x806   : > { %2320 = vrot.lane.b32.xlu0 %v2095_v16, %s7143_s19 }
 0x807   : > { %v2011_v48 = vrot.slane %v1995_v33, 7 }
 0x80a   : > { %2434 = vrot.lane.b32.xlu0 %v2095_v16, %s7144_s12  ;;  %v1950_v16 = vpack.c.bf16 %v1078_v62, %v1078_v62  ;;  %v2031_v62 = vrot.slane %v2006_v45, 4 }
 0x80c   : > { %v1993_v32 = vunpack.c.l.b16 %v1950_v16 }
 0x80e   : > { %v2009_v47 = vrot.slane %v1993_v32, 1 }
 0x874   : > { %v2206_v23 = vpop.permute.xlu0 %2205 }
 0x875   : > { %v2211_v26 = vsel %vm1172_vm2, %v2206_v23, 0  ;;  %v1956_v23 = vpack.c.bf16 %v1084_v7, %v1084_v7 }
 0x877   : > { %v1999_v38 = vunpack.c.l.b16 %v1956_v23 }
 0x879   : > { %v2019_v59 = vrot.slane %v1999_v38, 3 }
 0x893   : > { %v1793_v18 = vpop.f32.mrb[20].mxu0 }
 0x894   : > { %v1794_v19 = vadd.f32 %v4852_v10, %v1793_v18  ;;  %v5197_v20 = vpop.f32.mrb[21].mxu0  ;;  %v1953_v10 = vpack.c.bf16 %v1081_v2, %v1081_v2  ;;  %v1093_v18 = vsel %vm6324_vm7, %v961_v46, %v1061_v61  ;;  %v2007_v46 = vunpack.c.l.b16 %v1964_v31 }
 0x895   : > { %v1796_v21 = vpop.f32.mrb[22].mxu0  ;;  %v1954_v20 = vpack.c.bf16 %v1082_v4, %v1082_v4  ;;  %v1965_v35 = vpack.c.bf16 %v1093_v18, %v1093_v18  ;;  %vm2752_vm7 = vcmask 523264  }
 0x896   : > { %v2094_v24 = vpack.c.bf16 %v1794_v19, %v1794_v19  ;;  %v5198_v25 = vpop.f32.mrb[23].mxu0  ;;  %v1951_v19 = vpack.c.bf16 %v1079_v63, %v1079_v63  ;;  %v1955_v21 = vpack.c.bf16 %v1083_v5, %v1083_v5  ;;  %v1996_v34 = vunpack.c.l.b16 %v1953_v10 }
 0x897   : > { %v1960_v25 = vpack.c.bf16 %v1088_v12, %v1088_v12  ;;  %v1997_v37 = vunpack.c.l.b16 %v1954_v20  ;;  %v2008_v50 = vunpack.c.l.b16 %v1965_v35  ;;  %v2033_v4 = vrot.slane %v2007_v46, 3 }
 0x898   : > { %2202 = vrot.lane.b32.xlu1 %v2094_v24, %s7142_s0  ;;  %5218 = vmatmul.mubr.msk.bf16.vlgmr.msra.gmra.mrb[24].mxu1 %vm1172_vm2, %v2094_v24  ;;  %v1994_v36 = vunpack.c.l.b16 %v1951_v19  ;;  %v1998_v22 = vunpack.c.l.b16 %v1955_v21  ;;  %v2013_v49 = vrot.slane %v1996_v34, 6  ;;  %v4860_v34 = vld [vmem:[%s7021_s13] ss:$0 sm:$0xff] }
 0x899   : > { %5228 = vmatpush3.bf16.xpose.msra.mxu1 %v2211_v26  ;;  %5229 = vmatprep.mubr.msk.bf16.mxu1 %vm5816_vm0, %v5815_v0  ;;  %v1961_v26 = vpack.c.bf16 %v1089_v13, %v1089_v13  ;;  %v2003_v40 = vunpack.c.l.b16 %v1960_v25  ;;  %v2015_v51 = vrot.slane %v1997_v37, 5  ;;  %v2035_v8 = vrot.slane %v2008_v50, 2 }
 0x89a   : > { %5239 = vmatprep.subr.bf16.mxu1 %v5815_v0  ;;  %v2017_v52 = vrot.slane %v1998_v22, 4  ;;  %v2010_v54 = vsel %vm1859_vm8, %v1994_v36, %v2009_v47 }
 0x89b   : > { %v2004_v41 = vunpack.c.l.b16 %v1961_v26  ;;  %v2025_v55 = vrot.slane %v2003_v40, 7  ;;  %v2012_v58 = vsel %vm1862_vm9, %v2011_v48, %v2010_v54 }
 0x89c   : > { %2318 = vrot.lane.b32.xlu1 %v2094_v24, %s7143_s19  ;;  %v2014_v63 = vsel %vm1865_vm10, %v2013_v49, %v2012_v58 }
 0x89d   : > { %v2027_v56 = vrot.slane %v2004_v41, 6  ;;  %v2016_v5 = vsel %vm1868_vm11, %v2015_v51, %v2014_v63 }
 0x89e   : > { %v2018_v12 = vsel %vm1871_vm12, %v2017_v52, %v2016_v5 }
 0x89f   : > { %v2020_v14 = vsel %vm1874_vm13, %v2019_v59, %v2018_v12 }
 0x8a0   : > { %2432 = vrot.lane.b32.xlu1 %v2094_v24, %s7144_s12  ;;  %v1958_v24 = vpack.c.bf16 %v1086_v9, %v1086_v9  ;;  %v2321_v9 = vpop.permute.xlu0 %2320  ;;  %v2022_v16 = vsel %vm1877_vm14, %v2021_v1, %v2020_v14 }
 0x8a1   : > { %v2326_v6 = vsel %vm1172_vm2, %v2321_v9, 0 }
 0x8a2   : > { %v2001_v39 = vunpack.c.l.b16 %v1958_v24 }
 0x8a4   : > { %v2023_v53 = vrot.slane %v2001_v39, 1  ;;  %v2435_v19 = vpop.permute.xlu0 %2434 }
 0x8a5   : > { %v2440_v21 = vsel %vm1172_vm2, %v2435_v19, 0 }
 0x8a6   : > { %v2024_v61 = vsel %vm1859_vm8, %v2002_v43, %v2023_v53 }
 0x8a7   : > { %v2026_v2 = vsel %vm1862_vm9, %v2025_v55, %v2024_v61 }
 0x8a8   : > { %v2028_v7 = vsel %vm1865_vm10, %v2027_v56, %v2026_v2 }
 0x8a9   : > { %v2030_v13 = vsel %vm1868_vm11, %v2029_v57, %v2028_v7 }
 0x8aa   : > { %v2032_v15 = vsel %vm1871_vm12, %v2031_v62, %v2030_v13 }
 0x8ab   : > { %v2034_v17 = vsel %vm1874_vm13, %v2033_v4, %v2032_v15 }
 0x8ac   : > { %v2036_v10 = vsel %vm1877_vm14, %v2035_v8, %v2034_v17 }
 0x8ad   : > { %v6541_v18 = vpack.c.b16 %v2036_v10, %v2022_v16 }
 0x8af   : > { %5212 = vmatmul.mubr.msk.bf16.vlgmr.msra.gmra.mrb[24].mxu0 %vm1124_vm1, %v6541_v18 }
 0x8b0   : > { %5223 = vmatprep.mubr.msk.bf16.mxu0 %vm5816_vm0, %v5815_v0 }
 0x90a   : > { %v2203_v11 = vpop.permute.xlu1 %2202 }
 0x90b   : > { %5230 = vmatmul.mubr.msk.bf16.vlgmr.msra.gmra.mrb[28].mxu1 %vm1172_vm2, %v2203_v11 }
 0x90c   : > { %5240 = vmatpush3.bf16.xpose.msra.mxu1 %v2326_v6  ;;  %5241 = vmatprep.mubr.msk.bf16.mxu1 %vm5816_vm0, %v5815_v0 }
 0x90d   : > { %5251 = vmatprep.subr.bf16.mxu1 %v5815_v0 }
 0x90e   : > { %v2319_v20 = vpop.permute.xlu1 %2318 }
 0x912   : > { %v2433_v23 = vpop.permute.xlu1 %2432 }
 0x913   : > { %5242 = vmatmul.mubr.msk.bf16.vlgmr.msra.gmra.mrb[32].mxu1 %vm1172_vm2, %v2319_v20 }
 0x914   : > { %5252 = vmatpush3.bf16.xpose.msra.mxu1 %v2440_v21  ;;  %5253 = vmatprep.mubr.msk.bf16.mxu1 %vm5816_vm0, %v5815_v0 }
 0x915   : > { %5263 = vmatprep.subr.bf16.mxu1 %v5815_v0 }
 0x91b   : > { %5254 = vmatmul.mubr.msk.bf16.vlgmr.msra.gmra.mrb[36].mxu1 %vm1172_vm2, %v2433_v23 }
 0x91c   : > { %5267 = vmatprep.mubr.msk.bf16.mxu1 %vm5816_vm0, %v5815_v0 }
 0x96b   : > { %v2137_v24 = vpop.f32.mrb[24].mxu1 }
 0x96c   : > { %v5219_v25 = vpop.f32.mrb[25].mxu1  ;;  %v2144_v26 = vsel %vm2143_vm15, %v2137_v24, -inf }
 0x96d   : > { %2145 = vmax.xlane.f32.xlu0 %v2144_v26  ;;  %v2140_v27 = vpop.f32.mrb[26].mxu1 }
 0x96e   : > { %v5220_v28 = vpop.f32.mrb[27].mxu1 }
 0x982   : > { %v2087_v35 = vpop.f32.mrb[24].mxu0 }
 0x983   : > { %v2088_v36 = vadd.f32 %v4860_v34, %v2087_v35  ;;  %v5213_v37 = vpop.f32.mrb[25].mxu0 }
 0x984   : > { %v2090_v22 = vpop.f32.mrb[26].mxu0 }
 0x985   : > { %v2091_v39 = vadd.f32 %v4860_v34, %v2090_v22  ;;  %v5214_v40 = vpop.f32.mrb[27].mxu0 }
 0x987   : > { %v2096_v44 = vpack.c.bf16 %v2091_v39, %v2088_v36 }
 0x989   : > { %5222 = vmatpush3.bf16.msra.mxu0 %v2096_v44 }
 0x98a   : > { %5233 = vmatprep.subr.bf16.mxu0 %v5815_v0 }
 0x9de   : > { %v2247_v29 = vpop.f32.mrb[28].mxu1 }
 0x9df   : > { %v5231_v30 = vpop.f32.mrb[29].mxu1  ;;  %v2253_v31 = vsel %vm2143_vm15, %v2247_v29, -inf }
 0x9e0   : > { %2254 = vmax.xlane.f32.xlu1 %v2253_v31  ;;  %v2250_v32 = vpop.f32.mrb[30].mxu1 }
 0x9e1   : > { %v5232_v33 = vpop.f32.mrb[31].mxu1 }
 0x9e6   : > { %v2362_v38 = vpop.f32.mrb[32].mxu1 }
 0x9e7   : > { %v5243_v41 = vpop.f32.mrb[33].mxu1  ;;  %v2368_v42 = vsel %vm2143_vm15, %v2362_v38, -inf }
 0x9e8   : > { %2369 = vmax.xlane.f32.xlu0 %v2368_v42  ;;  %v2365_v43 = vpop.f32.mrb[34].mxu1  ;;  %v5556_v42 = vld [vmem:[%s7022_s14] sm:$0xff]  }
 0x9e9   : > { %v5244_v45 = vpop.f32.mrb[35].mxu1  ;;  %5264 = vmatpush3.bf16.msra.mxu1 %v5556_v42  ;;  %v5557_v43 = vld [vmem:[%s7022_s14 + $0x8] sm:$0xff]  }
 0x9ea   : > { %5265 = vmatprep.subr.bf16.mxu1 %v5815_v0 }
 0x9ed   : > { %5266 = vmatpush3.bf16.msra.mxu1 %v5557_v43 }
 0x9ee   : > { %v2476_v46 = vpop.f32.mrb[36].mxu1  ;;  %5279 = vmatprep.subr.bf16.mxu1 %v5815_v0 }
 0x9ef   : > { %v5255_v47 = vpop.f32.mrb[37].mxu1  ;;  %v2482_v48 = vsel %vm2143_vm15, %v2476_v46, -inf }
 0x9f0   : > { %2483 = vmax.xlane.f32.xlu0 %v2482_v48  ;;  %v2479_v49 = vpop.f32.mrb[38].mxu1 }
 0x9f1   : > { %v5256_v50 = vpop.f32.mrb[39].mxu1 }
 0x9fa   : > { %v2146_v51 = vpop.xlane.xlu0 %2145 }
 0x9fb   : > { %v2147_v52 = vsub.f32 %v2137_v24, %v2146_v51 }
 0x9fd   : > { %v2148_v53 = vmul.f32 1.442695, %v2147_v52 }
 0x9ff   : > { %5602 = vpow2.f32 %v2148_v53 }
 0xa09   : > { %v5603_v54 = vpop.eup %5602 }
 0xa0a   : > { %v2150_v55 = vsel %vm2143_vm15, %v5603_v54, 0.0 }
 0xa0b   : > { %2151 = vadd.xlane.f32.xlu1 %v2150_v55 }
 0xa1c   : > { %2267 = vrot.lane.b32.xlu1 %v2096_v44, %s7142_s0 }
 0xa6d   : > { %v2255_v56 = vpop.xlane.xlu1 %2254 }
 0xa6e   : > { %v2256_v57 = vsub.f32 %v2247_v29, %v2255_v56 }
 0xa70   : > { %v2257_v58 = vmul.f32 1.442695, %v2256_v57  ;;  %v4872_v57 = vld [vmem:[%s7023_s15] ss:$0 sm:$0xff] }
 0xa72   : > { %5604 = vpow2.f32 %v2257_v58 }
 0xa75   : > { %v2370_v59 = vpop.xlane.xlu0 %2369 }
 0xa76   : > { %v2371_v61 = vsub.f32 %v2362_v38, %v2370_v59 }
 0xa78   : > { %v2372_v62 = vmul.f32 1.442695, %v2371_v61 }
 0xa7a   : > { %5606 = vpow2.f32 %v2372_v62 }
 0xa7c   : > { %v5605_v63 = vpop.eup %5604 }
 0xa7d   : > { %v2484_v1 = vpop.xlane.xlu0 %2483  ;;  %v2259_v2 = vsel %vm2143_vm15, %v5605_v63, 0.0 }
 0xa7e   : > { %v2485_v4 = vsub.f32 %v2476_v46, %v2484_v1  ;;  %2260 = vadd.xlane.f32.xlu0 %v2259_v2 }
 0xa80   : > { %v2486_v5 = vmul.f32 1.442695, %v2485_v4 }
 0xa82   : > { %5608 = vpow2.f32 %v2486_v5 }
 0xa84   : > { %v5607_v7 = vpop.eup %5606 }
 0xa85   : > { %v2374_v8 = vsel %vm2143_vm15, %v5607_v7, 0.0 }
 0xa86   : > { %2375 = vadd.xlane.f32.xlu1 %v2374_v8 }
 0xa8c   : > { %v5609_v9 = vpop.eup %5608 }
 0xa8d   : > { %v2488_v11 = vsel %vm2143_vm15, %v5609_v9, 0.0 }
 0xa8e   : > { %2489 = vadd.xlane.f32.xlu0 %v2488_v11  ;;  %v5558_v11 = vld [vmem:[%s7024_s16] sm:$0xff]  }
 0xa97   : > { %2495 = vrot.lane.b32.xlu1 %v2096_v44, %s7144_s12 }
 0xa98   : > { %v2152_v12 = vpop.xlane.xlu1 %2151 }
 0xa99   : > { %5610 = vrcp.f32 %v2152_v12  ;;  %v5559_v12 = vld [vmem:[%s7024_s16 + $0x8] sm:$0xff]  }
 0xa9c   : > { %v2268_v15 = vpop.permute.xlu1 %2267 }
 0xaa3   : > { %v5611_v13 = vpop.eup %5610 }
 0xaa4   : > { %v2154_v6 = vmul.f32 %v5611_v13, %v5603_v54  ;;  %2381 = vrot.lane.b32.xlu0 %v2096_v44, %s7143_s19  ;;  %v5561_v13 = vld [vmem:[%s7026_s18 + $0x8] sm:$0xff]  }
 0xaa6   : > { %v2156_v14 = vpack.c.bf16 %v2154_v6, %v2154_v6 }
 0xaa8   : > { %5224 = vmatmul.mubr.msk.bf16.vlgmr.msra.gmra.mrb[28].mxu0 %vm2143_vm15, %v2156_v14 }
 0xaa9   : > { %5234 = vmatpush3.bf16.msra.mxu0 %v2268_v15  ;;  %5235 = vmatprep.mubr.msk.bf16.mxu0 %vm5816_vm0, %v5815_v0 }
 0xaaa   : > { %5245 = vmatprep.subr.bf16.mxu0 %v5815_v0 }
 0xb0b   : > { %v2261_v16 = vpop.xlane.xlu0 %2260 }
 0xb0c   : > { %5612 = vrcp.f32 %v2261_v16 }
 0xb13   : > { %v2376_v17 = vpop.xlane.xlu1 %2375 }
 0xb14   : > { %5614 = vrcp.f32 %v2376_v17  ;;  %v4876_v17 = vld [vmem:[%s7028_s20 + $0x1] ss:$0 sm:$0xff] }
 0xb16   : > { %v5613_v10 = vpop.eup %5612 }
 0xb17   : > { %v2263_v19 = vmul.f32 %v5613_v10, %v5605_v63  ;;  %v2496_v27 = vpop.permute.xlu1 %2495 }
 0xb19   : > { %v2265_v20 = vpack.c.bf16 %v2263_v19, %v2263_v19  ;;  %v2264_v28 = vadd.f32 %v2263_v19, %v2154_v6  ;;  %v4877_v19 = vld [vmem:[%s7029_s21 + $0x1] ss:$0 sm:$0xff] }
 0xb1b   : > { %v2490_v21 = vpop.xlane.xlu0 %2489  ;;  %5236 = vmatmul.mubr.msk.bf16.vlgmr.msra.gmra.mrb[32].mxu0 %vm2143_vm15, %v2265_v20 }
 0xb1c   : > { %5616 = vrcp.f32 %v2490_v21  ;;  %5247 = vmatprep.mubr.msk.bf16.mxu0 %vm5816_vm0, %v5815_v0 }
 0xb1e   : > { %v5615_v23 = vpop.eup %5614 }
 0xb1f   : > { %v2378_v24 = vmul.f32 %v5615_v23, %v5607_v7  ;;  %v2382_v25 = vpop.permute.xlu0 %2381 }
 0xb20   : > { %5246 = vmatpush3.bf16.msra.mxu0 %v2382_v25  ;;  %v5563_v25 = vld [vmem:[%s7026_s18 + $0x18] sm:$0xff]  }
 0xb21   : > { %v2380_v26 = vpack.c.bf16 %v2378_v24, %v2378_v24  ;;  %5257 = vmatprep.subr.bf16.mxu0 %v5815_v0  ;;  %v2379_v30 = vadd.f32 %v2378_v24, %v2264_v28  ;;  %v5562_v24 = vld [vmem:[%s7026_s18 + $0x10] sm:$0xff]  }
 0xb23   : > { %5248 = vmatmul.mubr.msk.bf16.vlgmr.msra.gmra.mrb[36].mxu0 %vm2143_vm15, %v2380_v26  ;;  %v4878_v26 = vld [vmem:[#allocation5] ss:$0 sm:$0xff] }
 0xb24   : > { %5258 = vmatpush3.bf16.msra.mxu0 %v2496_v27  ;;  %5259 = vmatprep.mubr.msk.bf16.mxu0 %vm5816_vm0, %v5815_v0 }
 0xb25   : > { %5271 = vmatprep.subr.bf16.mxu0 %v5815_v0 }
 0xb26   : > { %v5617_v29 = vpop.eup %5616 }
 0xb27   : > { %v2492_v31 = vmul.f32 %v5617_v29, %v5609_v9 }
 0xb29   : > { %v2493_v32 = vadd.f32 %v2492_v31, %v2379_v30  ;;  %v2494_v33 = vpack.c.bf16 %v2492_v31, %v2492_v31 }
 0xb2b   : > { %v2547_v34 = vmul.f32 0.25, %v2493_v32  ;;  %5260 = vmatmul.mubr.msk.bf16.vlgmr.msra.gmra.mrb[40].mxu0 %vm2143_vm15, %v2494_v33 }
 0xb2c   : > { %5275 = vmatprep.mubr.msk.bf16.mxu0 %vm5816_vm0, %v5815_v0  ;;  %5272 = vmatpush3.bf16.msra.mxu0 %v5558_v11 }
 0xb2d   : > { %2643 = vst.msk [vmem:[%s6586_s17] sm:$0xff] %vm2143_vm15, %v2547_v34  ;;  %5273 = vmatprep.subr.bf16.mxu0 %v5815_v0  ;;  %v4882_v34 = vld [vmem:[#allocation7] ss:$0 sm:$0xff] }
 0xb30   : > { %5274 = vmatpush3.bf16.msra.mxu0 %v5559_v12 }
 0xb31   : > { %5291 = vmatprep.subr.bf16.mxu0 %v5815_v0 }
 0xb7b   : > { %v2194_v35 = vpop.f32.mrb[28].mxu0 }
 0xb7c   : > { %2200 = vst.msk [vmem:[#allocation2] sm:$0xff] %vm1172_vm2, %v2194_v35  ;;  %v5225_v36 = vpop.f32.mrb[29].mxu0 }
 0xb7d   : > { %v2197_v37 = vpop.f32.mrb[30].mxu0 }
 0xb7e   : > { %v5226_v22 = vpop.f32.mrb[31].mxu0 }
 0xbee   : > { %v2307_v38 = vpop.f32.mrb[32].mxu0 }
 0xbef   : > { %2314 = vrot.lane.b32.xlu1 %v2307_v38, %s7148_s23  ;;  %v5237_v39 = vpop.f32.mrb[33].mxu0 }
 0xbf0   : > { %v2310_v40 = vpop.f32.mrb[34].mxu0 }
 0xbf1   : > { %v5238_v41 = vpop.f32.mrb[35].mxu0 }
 0xbf6   : > { %v2421_v44 = vpop.f32.mrb[36].mxu0 }
 0xbf7   : > { %2428 = vrot.lane.b32.xlu0 %v2421_v44, %s7149_s27  ;;  %v5249_v45 = vpop.f32.mrb[37].mxu0 }
 0xbf8   : > { %v2424_v46 = vpop.f32.mrb[38].mxu0 }
 0xbf9   : > { %v5250_v47 = vpop.f32.mrb[39].mxu0  ;;  %v5564_v46 = vld [vmem:[%s7128_s2 + $0x10] sm:$0xff]  }
 0xbfa   : > { %v5565_v47 = vld [vmem:[%s7128_s2 + $0x18] sm:$0xff]  }
 0xbfe   : > { %v2535_v48 = vpop.f32.mrb[40].mxu0 }
 0xbff   : > { %2542 = vrot.lane.b32.xlu1 %v2535_v48, %s7150_s24  ;;  %v5261_v49 = vpop.f32.mrb[41].mxu0 }
 0xc00   : > { %v2538_v50 = vpop.f32.mrb[42].mxu0 }
 0xc01   : > { %v5262_v51 = vpop.f32.mrb[43].mxu0 }
 0xc61   : > { %v2315_v52 = vpop.permute.xlu1 %2314 }
 0xc62   : > { %2317 = vst.msk [vmem:[#allocation2] sm:$0xff] %vm1397_vm4, %v2315_v52  ;;  %v4888_v52 = vld [vmem:[%s7028_s20 + $0x2] ss:$0 sm:$0xff] }
 0xc69   : > { %v2429_v53 = vpop.permute.xlu0 %2428 }
 0xc6a   : > { %2431 = vst.msk [vmem:[#allocation2] sm:$0xff] %vm1514_vm5, %v2429_v53 }
 0xc71   : > { %v2543_v54 = vpop.permute.xlu1 %2542 }
 0xc72   : > { %2545 = vst.msk [vmem:[#allocation2] sm:$0xff] %vm1631_vm6, %v2543_v54  ;;  %v4889_v54 = vld [vmem:[%s7029_s21 + $0x2] ss:$0 sm:$0xff] }
 0xc79   : > { %v2546_v55 = vld [vmem:[#allocation2] sm:$0xff] }
 0xc7a   : > { %v2548_v56 = vpack.c.bf16 %v2546_v55, %v2546_v55 }
 0xc7c   : > { %5268 = vmatmul.mubr.msk.bf16.vlgmr.msra.gmra.mrb[40].mxu1 %vm1124_vm1, %v2548_v56 }
 0xc7d   : > { %5287 = vmatprep.mubr.msk.bf16.mxu1 %vm5816_vm0, %v5815_v0 }
 0xd4f   : > { %v2609_v58 = vpop.f32.mrb[40].mxu1 }
 0xd50   : > { %v2610_v59 = vadd.f32 %v4872_v57, %v2609_v58  ;;  %v5269_v61 = vpop.f32.mrb[41].mxu1  ;;  %v4901_v58 = vld [vmem:[%s7129_s6 + $0x1] ss:$0 sm:$0xff] }
 0xd51   : > { %v2612_v62 = vpop.f32.mrb[42].mxu1 }
 0xd52   : > { %v5270_v63 = vpop.f32.mrb[43].mxu1  ;;  %v2615_v1 = vadd.f32 %v2610_v59, %v6411_v3  ;;  %v5560_v3 = vld [vmem:[%s7026_s18] sm:$0xff]  }
 0xd53   : > { %5280 = vmatpush3.bf16.msra.mxu1 %v5560_v3 }
 0xd54   : > { %v2616_v2 = vsel %vm1124_vm1, %v2615_v1, 0.0  ;;  %5281 = vmatprep.subr.bf16.mxu1 %v5815_v0 }
 0xd55   : > { %2617 = vadd.xlane.f32.xlu0 %v2616_v2 }
 0xd57   : > { %5282 = vmatpush3.bf16.msra.mxu1 %v5561_v13 }
 0xd58   : > { %5283 = vmatprep.subr.bf16.mxu1 %v5815_v0 }
 0xd5b   : > { %5284 = vmatpush3.bf16.msra.mxu1 %v5562_v24 }
 0xd5c   : > { %5285 = vmatprep.subr.bf16.mxu1 %v5815_v0 }
 0xd5f   : > { %5286 = vmatpush3.bf16.msra.mxu1 %v5563_v25 }
 0xd60   : > { %5305 = vmatprep.subr.bf16.mxu1 %v5815_v0 }
 0xde2   : > { %v2618_v4 = vpop.xlane.xlu0 %2617 }
 0xde3   : > { %v2619_v5 = vmul.f32 0.03125, %v2618_v4 }
 0xde5   : > { %v2620_v7 = vsub.f32 %v2615_v1, %v2619_v5 }
 0xde7   : > { %v2621_v8 = vmul.f32 %v2620_v7, %v2620_v7 }
 0xde9   : > { %v2622_v9 = vsel %vm1124_vm1, %v2621_v8, 0.0 }
 0xdea   : > { %2623 = vadd.xlane.f32.xlu1 %v2622_v9 }
 0xe77   : > { %v2624_v6 = vpop.xlane.xlu1 %2623 }
 0xe78   : > { %v2625_v14 = vmul.f32 0.03125, %v2624_v6 }
 0xe7a   : > { %v2626_v15 = vadd.f32 1e-05, %v2625_v14 }
 0xe7c   : > { %5618 = vrsqrt.f32 %v2626_v15 }
 0xe86   : > { %v5619_v16 = vpop.eup %5618 }
 0xe87   : > { %v2628_v10 = vmul.f32 %v5619_v16, %v2620_v7  ;;  %v5660_v16 = vld [vmem:[%s7130_s10] sm:$0xff] }
 0xe89   : > { %v2635_v20 = vmul.f32 %v4876_v17, %v2628_v10 }
 0xe8b   : > { %v2642_v21 = vadd.f32 %v4877_v19, %v2635_v20 }
 0xe8d   : > { %v2644_v23 = vpack.c.bf16 %v2642_v21, %v2642_v21 }
 0xe8f   : > { %5276 = vmatmul.mubr.msk.bf16.vlgmr.msra.gmra.mrb[44].mxu0 %vm1124_vm1, %v2644_v23 }
 0xe90   : > { %5295 = vmatprep.mubr.msk.bf16.mxu0 %vm5816_vm0, %v5815_v0  ;;  %5292 = vmatpush3.bf16.msra.mxu0 %v5564_v46 }
 0xe91   : > { %5293 = vmatprep.subr.bf16.mxu0 %v5815_v0 }
 0xe94   : > { %5294 = vmatpush3.bf16.msra.mxu0 %v5565_v47 }
 0xe95   : > { %5299 = vmatprep.subr.bf16.mxu0 %v5815_v0 }
 0xf62   : > { %v2705_v27 = vpop.f32.mrb[44].mxu0 }
 0xf63   : > { %v2706_v28 = vadd.f32 %v4878_v26, %v2705_v27  ;;  %v5277_v29 = vpop.f32.mrb[45].mxu0 }
 0xf64   : > { %v2708_v30 = vpop.f32.mrb[46].mxu0 }
 0xf65   : > { %v2711_v31 = vmax.f32 %v2706_v28, 0.0  ;;  %v5278_v32 = vpop.f32.mrb[47].mxu0 }
 0xf67   : > { %v2712_v33 = vpack.c.bf16 %v2711_v31, %v2711_v31 }
 0xf69   : > { %5288 = vmatmul.mubr.msk.bf16.vlgmr.msra.gmra.mrb[44].mxu1 %vm2752_vm7, %v2712_v33 }
 0xf6a   : > { %5307 = vmatprep.mubr.msk.bf16.mxu1 %vm5816_vm0, %v5815_v0 }
0x103c   : > { %v2790_v35 = vpop.f32.mrb[44].mxu1 }
0x103d   : > { %v2791_v36 = vadd.f32 %v4882_v34, %v2790_v35  ;;  %v5289_v37 = vpop.f32.mrb[45].mxu1 }
0x103e   : > { %v2793_v22 = vpop.f32.mrb[46].mxu1 }
0x103f   : > { %v5290_v38 = vpop.f32.mrb[47].mxu1  ;;  %v2796_v39 = vadd.f32 %v2791_v36, %v2642_v21 }
0x1041   : > { %v2797_v40 = vsel %vm1124_vm1, %v2796_v39, 0.0 }
0x1042   : > { %2798 = vadd.xlane.f32.xlu0 %v2797_v40 }
0x10cf   : > { %v2799_v41 = vpop.xlane.xlu0 %2798 }
0x10d0   : > { %v2800_v42 = vmul.f32 0.03125, %v2799_v41 }
0x10d2   : > { %v2801_v43 = vsub.f32 %v2796_v39, %v2800_v42 }
0x10d4   : > { %v2802_v44 = vmul.f32 %v2801_v43, %v2801_v43 }
0x10d6   : > { %v2803_v45 = vsel %vm1124_vm1, %v2802_v44, 0.0 }
0x10d7   : > { %2804 = vadd.xlane.f32.xlu0 %v2803_v45 }
0x1164   : > { %v2805_v48 = vpop.xlane.xlu0 %2804 }
0x1165   : > { %v2806_v49 = vmul.f32 0.03125, %v2805_v48 }
0x1167   : > { %v2807_v50 = vadd.f32 1e-05, %v2806_v49 }
0x1169   : > { %5620 = vrsqrt.f32 %v2807_v50 }
0x1173   : > { %v5621_v51 = vpop.eup %5620 }
0x1174   : > { %v2809_v53 = vmul.f32 %v5621_v51, %v2801_v43 }
0x1176   : > { %v2816_v55 = vmul.f32 %v4888_v52, %v2809_v53 }
0x1178   : > { %v6666_v56 = vadd.f32 %v4889_v54, %v2816_v55 }
0x117a   : > { %2824 = vst.msk [vmem:[%s6669_s5] sm:$0xff] %vm1124_vm1, %v6666_v56  ;;  %v2833_v57 = vpack.c.bf16 %v6666_v56, %v6666_v56 }
0x117c   : > { %5296 = vmatmul.mubr.msk.bf16.vlgmr.msra.gmra.mrb[48].mxu0 %vm1124_vm1, %v2833_v57 }
0x117d   : > { %5301 = vmatprep.mubr.msk.bf16.mxu0 %vm5816_vm0, %v5815_v0 }
0x124f   : > { %v2896_v59 = vpop.f32.mrb[48].mxu0 }
0x1250   : > { %v2897_v61 = vadd.f32 %v4901_v58, %v2896_v59  ;;  %v5297_v62 = vpop.f32.mrb[49].mxu0 }
0x1251   : > { %v2899_v63 = vpop.f32.mrb[50].mxu0 }
0x1252   : > { %v6682_v1 = vpack.c.bf16 %v2897_v61, %v2897_v61  ;;  %v5298_v2 = vpop.f32.mrb[51].mxu0 }
0x1254   : > { %3016 = vrot.lane.b32.xlu0 %v6682_v1, %s7151_s11  ;;  %2904 = vrot.lane.b32.xlu1 %v6682_v1, %s7152_s30  ;;  %s7157_s11 = smov 40   ;;  %s7158_s30 = smov 48  }
0x1258   : > { %3130 = vrot.lane.b32.xlu0 %v6682_v1, %s7143_s19  ;;  %3014 = vrot.lane.b32.xlu1 %v6682_v1, %s7142_s0 }
0x125c   : > { %3246 = vrot.lane.b32.xlu0 %v6682_v1, %s7144_s12  ;;  %3132 = vrot.lane.b32.xlu1 %v6682_v1, %s7153_s29 }
0x1260   : > { %3248 = vrot.lane.b32.xlu1 %v6682_v1, %s7154_s28  ;;  %s7161_s28 = sld [smem:[#allocation34_spill]] }
0x12c6   : > { %v2905_v4 = vpop.permute.xlu1 %2904  ;;  %v3017_v7 = vpop.permute.xlu0 %3016 }
0x12c7   : > { %v2910_v5 = vsel %vm1172_vm2, %v2905_v4, 0  ;;  %v3022_v9 = vsel %vm1172_vm2, %v3017_v7, 0 }
0x12c8   : > { %5300 = vmatpush3.bf16.xpose.msra.mxu0 %v2910_v5 }
0x12c9   : > { %5311 = vmatprep.subr.bf16.mxu0 %v5815_v0 }
0x12ca   : > { %v3015_v8 = vpop.permute.xlu1 %3014  ;;  %v3131_v13 = vpop.permute.xlu0 %3130 }
0x12ce   : > { %v3133_v11 = vpop.permute.xlu1 %3132  ;;  %v3247_v14 = vpop.permute.xlu0 %3246 }
0x12cf   : > { %5302 = vmatmul.mubr.msk.bf16.vlgmr.msra.gmra.mrb[52].mxu0 %vm1172_vm2, %v6682_v1  ;;  %v3138_v12 = vsel %vm1172_vm2, %v3133_v11, 0 }
0x12d0   : > { %5312 = vmatpush3.bf16.xpose.msra.mxu0 %v3022_v9  ;;  %5313 = vmatprep.mubr.msk.bf16.mxu0 %vm5816_vm0, %v5815_v0 }
0x12d1   : > { %5323 = vmatprep.subr.bf16.mxu0 %v5815_v0 }
0x12d2   : > { %v3249_v3 = vpop.permute.xlu1 %3248 }
0x12d3   : > { %v3254_v6 = vsel %vm1172_vm2, %v3249_v3, 0 }
0x12d7   : > { %5314 = vmatmul.mubr.msk.bf16.vlgmr.msra.gmra.mrb[56].mxu0 %vm1172_vm2, %v3015_v8 }
0x12d8   : > { %5324 = vmatpush3.bf16.xpose.msra.mxu0 %v3138_v12  ;;  %5325 = vmatprep.mubr.msk.bf16.mxu0 %vm5816_vm0, %v5815_v0 }
0x12d9   : > { %5335 = vmatprep.subr.bf16.mxu0 %v5815_v0 }
0x12df   : > { %5326 = vmatmul.mubr.msk.bf16.vlgmr.msra.gmra.mrb[60].mxu0 %vm1172_vm2, %v3131_v13 }
0x12e0   : > { %5336 = vmatpush3.bf16.xpose.msra.mxu0 %v3254_v6  ;;  %5337 = vmatprep.mubr.msk.bf16.mxu0 %vm5816_vm0, %v5815_v0 }
0x12e1   : > { %5347 = vmatprep.subr.bf16.mxu0 %v5815_v0 }
0x12e7   : > { %5338 = vmatmul.mubr.msk.bf16.vlgmr.msra.gmra.mrb[64].mxu0 %vm1172_vm2, %v3247_v14 }
0x12e8   : > { %5351 = vmatprep.mubr.msk.bf16.mxu0 %vm5816_vm0, %v5815_v0 }
0x13a2   : > { %v2946_v15 = vpop.f32.mrb[52].mxu0 }
0x13a3   : > { %v2947_v17 = vadd.f32 %v5660_v16, %v2946_v15  ;;  %v5303_v10 = vpop.f32.mrb[53].mxu0 }
0x13a4   : > { %v2949_v19 = vpop.f32.mrb[54].mxu0 }
0x13a5   : > { %v5304_v20 = vpop.f32.mrb[55].mxu0  ;;  %v2952_v21 = vsel %vm1172_vm2, %v2947_v17, -inf }
0x13a6   : > { %2953 = vmax.xlane.f32.xlu1 %v2952_v21 }
0x13aa   : > { %v3058_v23 = vpop.f32.mrb[56].mxu0 }
0x13ab   : > { %v3059_v24 = vadd.f32 %v5660_v16, %v3058_v23  ;;  %v5315_v25 = vpop.f32.mrb[57].mxu0 }
0x13ac   : > { %v3061_v26 = vpop.f32.mrb[58].mxu0 }
0x13ad   : > { %v5316_v27 = vpop.f32.mrb[59].mxu0  ;;  %v3064_v28 = vsel %vm1172_vm2, %v3059_v24, -inf }
0x13ae   : > { %3065 = vmax.xlane.f32.xlu0 %v3064_v28 }
0x13b2   : > { %v3174_v29 = vpop.f32.mrb[60].mxu0 }
0x13b3   : > { %v3175_v30 = vadd.f32 %v5660_v16, %v3174_v29  ;;  %v5327_v31 = vpop.f32.mrb[61].mxu0 }
0x13b4   : > { %v3177_v32 = vpop.f32.mrb[62].mxu0 }
0x13b5   : > { %v5328_v33 = vpop.f32.mrb[63].mxu0  ;;  %v3180_v34 = vsel %vm1172_vm2, %v3175_v30, -inf }
0x13b6   : > { %3181 = vmax.xlane.f32.xlu0 %v3180_v34 }
0x13ba   : > { %v3290_v35 = vpop.f32.mrb[64].mxu0 }
0x13bb   : > { %v3291_v36 = vadd.f32 %v5660_v16, %v3290_v35  ;;  %v5339_v37 = vpop.f32.mrb[65].mxu0 }
0x13bc   : > { %v3293_v22 = vpop.f32.mrb[66].mxu0  ;;  %v5566_v37 = vld [vmem:[%s7132_s1 + $0x10] sm:$0xff]  }
0x13bd   : > { %v5340_v38 = vpop.f32.mrb[67].mxu0  ;;  %v3296_v39 = vsel %vm1172_vm2, %v3291_v36, -inf  ;;  %5348 = vmatpush3.bf16.msra.mxu0 %v5566_v37  ;;  %v5567_v22 = vld [vmem:[%s7132_s1 + $0x18] sm:$0xff]  }
0x13be   : > { %3297 = vmax.xlane.f32.xlu1 %v3296_v39  ;;  %5349 = vmatprep.subr.bf16.mxu0 %v5815_v0 }
0x13c1   : > { %5350 = vmatpush3.bf16.msra.mxu0 %v5567_v22 }
0x13c2   : > { %5363 = vmatprep.subr.bf16.mxu0 %v5815_v0 }
0x1433   : > { %v2954_v40 = vpop.xlane.xlu1 %2953 }
0x1434   : > { %v2955_v41 = vsub.f32 %v2947_v17, %v2954_v40 }
0x1436   : > { %v2956_v42 = vmul.f32 1.442695, %v2955_v41 }
0x1438   : > { %5622 = vpow2.f32 %v2956_v42 }
0x143b   : > { %v3066_v43 = vpop.xlane.xlu0 %3065 }
0x143c   : > { %v3067_v44 = vsub.f32 %v3059_v24, %v3066_v43 }
0x143e   : > { %v3068_v45 = vmul.f32 1.442695, %v3067_v44 }
0x1440   : > { %5624 = vpow2.f32 %v3068_v45 }
0x1442   : > { %v5623_v46 = vpop.eup %5622 }
0x1443   : > { %v3182_v47 = vpop.xlane.xlu0 %3181  ;;  %v2958_v48 = vsel %vm1172_vm2, %v5623_v46, 0.0 }
0x1444   : > { %v3183_v49 = vsub.f32 %v3175_v30, %v3182_v47  ;;  %2959 = vadd.xlane.f32.xlu0 %v2958_v48 }
0x1446   : > { %v3184_v50 = vmul.f32 1.442695, %v3183_v49 }
0x1448   : > { %5626 = vpow2.f32 %v3184_v50 }
0x144a   : > { %v5625_v51 = vpop.eup %5624 }
0x144b   : > { %v3070_v52 = vsel %vm1172_vm2, %v5625_v51, 0.0  ;;  %v3298_v55 = vpop.xlane.xlu1 %3297 }
0x144c   : > { %3071 = vadd.xlane.f32.xlu1 %v3070_v52  ;;  %v3299_v57 = vsub.f32 %v3291_v36, %v3298_v55 }
0x144e   : > { %v3300_v58 = vmul.f32 1.442695, %v3299_v57 }
0x1450   : > { %5628 = vpow2.f32 %v3300_v58 }
0x1452   : > { %v5627_v53 = vpop.eup %5626 }
0x1453   : > { %v3186_v54 = vsel %vm1172_vm2, %v5627_v53, 0.0 }
0x1454   : > { %3187 = vadd.xlane.f32.xlu0 %v3186_v54 }
0x145a   : > { %v5629_v59 = vpop.eup %5628 }
0x145b   : > { %v3302_v61 = vsel %vm1172_vm2, %v5629_v59, 0.0 }
0x145d   : > { %3077 = vrot.lane.b32.xlu1 %v6682_v1, %s7155_s3  ;;  %s7159_s3 = sld [smem:[#allocation30_spill]] }
0x146a   : > { %2965 = vrot.lane.b32.xlu0 %v6682_v1, %s7156_s22  ;;  %s7162_s22 = sld [smem:[#allocation21_spill]] }
0x146e   : > { %3309 = vrot.lane.b32.xlu0 %v6682_v1, %s7157_s11  ;;  %s7160_s11 = sld [smem:[#allocation31_spill]] }
0x1481   : > { %3303 = vadd.xlane.f32.xlu1 %v3302_v61  ;;  %v5568_v61 = vld [vmem:[%s7136_s26 + $0x10] sm:$0xff]  }
0x1492   : > { %3193 = vrot.lane.b32.xlu1 %v6682_v1, %s7158_s30 }
0x14d1   : > { %v2960_v62 = vpop.xlane.xlu0 %2959 }
0x14d2   : > { %5630 = vrcp.f32 %v2960_v62 }
0x14d9   : > { %v3072_v63 = vpop.xlane.xlu1 %3071 }
0x14da   : > { %5632 = vrcp.f32 %v3072_v63 }
0x14dc   : > { %v5631_v2 = vpop.eup %5630 }
0x14dd   : > { %v2962_v5 = vmul.f32 %v5631_v2, %v5623_v46  ;;  %v3078_v9 = vpop.permute.xlu1 %3077 }
0x14de   : > { %v3083_v3 = vsel %vm1237_vm3, %v3078_v9, 0 }
0x14df   : > { %v2964_v11 = vpack.c.bf16 %v2962_v5, %v2962_v5 }
0x14e1   : > { %v3188_v4 = vpop.xlane.xlu0 %3187 }
0x14e2   : > { %5634 = vrcp.f32 %v3188_v4 }
0x14e4   : > { %v5633_v12 = vpop.eup %5632 }
0x14e5   : > { %v2966_v7 = vpop.permute.xlu0 %2965  ;;  %v3074_v1 = vmul.f32 %v5633_v12, %v5625_v51  ;;  %v4918_v51 = vld [vmem:[%s7134_s7 + $0x1] ss:$0 sm:$0xff] }
0x14e6   : > { %v2971_v8 = vsel %vm1237_vm3, %v2966_v7, 0  ;;  %v5570_v7 = vld [vmem:[%s7159_s3 + $0x10] sm:$0xff]  }
0x14e7   : > { %5306 = vmatpush3.bf16.msra.mxu1 %v2971_v8  ;;  %v3076_v13 = vpack.c.bf16 %v3074_v1, %v3074_v1  ;;  %v3075_v21 = vadd.f32 %v3074_v1, %v2962_v5  ;;  %v5571_v8 = vld [vmem:[%s7159_s3 + $0x18] sm:$0xff]  }
0x14e8   : > { %5317 = vmatprep.subr.bf16.mxu1 %v5815_v0 }
0x14e9   : > { %v3310_v10 = vpop.permute.xlu0 %3309 }
0x14ea   : > { %5308 = vmatmul.mubr.msk.bf16.vlgmr.msra.gmra.mrb[48].mxu1 %vm1172_vm2, %v2964_v11  ;;  %v3315_v20 = vsel %vm1237_vm3, %v3310_v10, 0 }
0x14eb   : > { %5318 = vmatpush3.bf16.msra.mxu1 %v3083_v3  ;;  %5319 = vmatprep.mubr.msk.bf16.mxu1 %vm5816_vm0, %v5815_v0  ;;  %v4922_v3 = vld [vmem:[%s7028_s20 + $0x3] ss:$0 sm:$0xff] }
0x14ec   : > { %5329 = vmatprep.subr.bf16.mxu1 %v5815_v0  ;;  %v5635_v6 = vpop.eup %5634 }
0x14ed   : > { %v3190_v15 = vmul.f32 %v5635_v6, %v5627_v53 }
0x14ef   : > { %v3192_v19 = vpack.c.bf16 %v3190_v15, %v3190_v15  ;;  %v3191_v24 = vadd.f32 %v3190_v15, %v3075_v21 }
0x14f2   : > { %5320 = vmatmul.mubr.msk.bf16.vlgmr.msra.gmra.mrb[52].mxu1 %vm1172_vm2, %v3076_v13  ;;  %v4923_v13 = vld [vmem:[%s7029_s21 + $0x3] ss:$0 sm:$0xff] }
0x14f3   : > { %5331 = vmatprep.mubr.msk.bf16.mxu1 %vm5816_vm0, %v5815_v0 }
0x150e   : > { %v3304_v14 = vpop.xlane.xlu1 %3303 }
0x150f   : > { %5636 = vrcp.f32 %v3304_v14 }
0x1512   : > { %v3194_v16 = vpop.permute.xlu1 %3193 }
0x1513   : > { %v3199_v17 = vsel %vm1237_vm3, %v3194_v16, 0  ;;  %v4938_v16 = vld [vmem:[#allocation3 + $0x1] ss:$0 sm:$0xff] }
0x1514   : > { %5330 = vmatpush3.bf16.msra.mxu1 %v3199_v17 }
0x1515   : > { %5341 = vmatprep.subr.bf16.mxu1 %v5815_v0 }
0x1517   : > { %5332 = vmatmul.mubr.msk.bf16.vlgmr.msra.gmra.mrb[56].mxu1 %vm1172_vm2, %v3192_v19 }
0x1518   : > { %5342 = vmatpush3.bf16.msra.mxu1 %v3315_v20  ;;  %5343 = vmatprep.mubr.msk.bf16.mxu1 %vm5816_vm0, %v5815_v0 }
0x1519   : > { %v5637_v23 = vpop.eup %5636  ;;  %5355 = vmatprep.subr.bf16.mxu1 %v5815_v0 }
0x151a   : > { %v3306_v25 = vmul.f32 %v5637_v23, %v5629_v59 }
0x151c   : > { %v3307_v26 = vadd.f32 %v3306_v25, %v3191_v24  ;;  %v3308_v27 = vpack.c.bf16 %v3306_v25, %v3306_v25 }
0x151e   : > { %v3363_v28 = vmul.f32 0.25, %v3307_v26  ;;  %v4930_v26 = vld [vmem:[%s7160_s11 + $0x1] ss:$0 sm:$0xff]  ;;  %s7164_s11 = sld [smem:[#allocation39_spill]] }
0x151f   : > { %5344 = vmatmul.mubr.msk.bf16.vlgmr.msra.gmra.mrb[60].mxu1 %vm1172_vm2, %v3308_v27 }
0x1520   : > { %4924 = vst.msk [vmem:[%s6248_s8 + $0x8] sm:$0xff] %vm1172_vm2, %v3363_v28  ;;  %5359 = vmatprep.mubr.msk.bf16.mxu1 %vm5816_vm0, %v5815_v0  ;;  %5356 = vmatpush3.bf16.msra.mxu1 %v5570_v7 }
0x1521   : > { %5357 = vmatprep.subr.bf16.mxu1 %v5815_v0 }
0x1524   : > { %5358 = vmatpush3.bf16.msra.mxu1 %v5571_v8 }
0x1525   : > { %5371 = vmatprep.subr.bf16.mxu1 %v5815_v0 }
0x15bd   : > { %v3007_v29 = vpop.f32.mrb[48].mxu1 }
0x15be   : > { %3013 = vst.msk [vmem:[#allocation2] sm:$0xff] %vm1172_vm2, %v3007_v29  ;;  %v5309_v30 = vpop.f32.mrb[49].mxu1 }
0x15bf   : > { %v3010_v31 = vpop.f32.mrb[50].mxu1 }
0x15c0   : > { %v5310_v32 = vpop.f32.mrb[51].mxu1 }
0x15c5   : > { %v3119_v33 = vpop.f32.mrb[52].mxu1 }
0x15c6   : > { %3126 = vrot.lane.b32.xlu1 %v3119_v33, %s7148_s23  ;;  %v5321_v34 = vpop.f32.mrb[53].mxu1 }
0x15c7   : > { %v3122_v35 = vpop.f32.mrb[54].mxu1 }
0x15c8   : > { %v5322_v36 = vpop.f32.mrb[55].mxu1  ;;  %v5572_v35 = vld [vmem:[%s7161_s28 + $0x10] sm:$0xff]  }
0x15c9   : > { %v5573_v36 = vld [vmem:[%s7161_s28 + $0x18] sm:$0xff]  }
0x15ea   : > { %v3235_v38 = vpop.f32.mrb[56].mxu1 }
0x15eb   : > { %3242 = vrot.lane.b32.xlu0 %v3235_v38, %s7149_s27  ;;  %v5333_v39 = vpop.f32.mrb[57].mxu1 }
0x15ec   : > { %v3238_v40 = vpop.f32.mrb[58].mxu1 }
0x15ed   : > { %v5334_v41 = vpop.f32.mrb[59].mxu1 }
0x15f2   : > { %v3351_v42 = vpop.f32.mrb[60].mxu1 }
0x15f3   : > { %3358 = vrot.lane.b32.xlu1 %v3351_v42, %s7150_s24  ;;  %v5345_v43 = vpop.f32.mrb[61].mxu1 }
0x15f4   : > { %v3354_v44 = vpop.f32.mrb[62].mxu1 }
0x15f5   : > { %v5346_v45 = vpop.f32.mrb[63].mxu1 }
0x1638   : > { %v3127_v46 = vpop.permute.xlu1 %3126 }
0x1639   : > { %3129 = vst.msk [vmem:[#allocation2] sm:$0xff] %vm1397_vm4, %v3127_v46 }
0x165d   : > { %v3243_v47 = vpop.permute.xlu0 %3242 }
0x165e   : > { %3245 = vst.msk [vmem:[#allocation2] sm:$0xff] %vm1514_vm5, %v3243_v47  ;;  %v4947_v47 = vld [vmem:[%s7021_s13 + $0x1] ss:$0 sm:$0xff] }
0x1665   : > { %v3359_v48 = vpop.permute.xlu1 %3358 }
0x1666   : > { %3361 = vst.msk [vmem:[#allocation2] sm:$0xff] %vm1631_vm6, %v3359_v48 }
0x166d   : > { %v3362_v49 = vld [vmem:[#allocation2] sm:$0xff] }
0x166e   : > { %v3364_v50 = vpack.c.bf16 %v3362_v49, %v3362_v49 }
0x1670   : > { %5352 = vmatmul.mubr.msk.bf16.vlgmr.msra.gmra.mrb[68].mxu0 %vm1124_vm1, %v3364_v50 }
0x1671   : > { %5367 = vmatprep.mubr.msk.bf16.mxu0 %vm5816_vm0, %v5815_v0  ;;  %5364 = vmatpush3.bf16.msra.mxu0 %v5568_v61 }
0x1672   : > { %5365 = vmatprep.subr.bf16.mxu0 %v5815_v0 }
0x1743   : > { %v3427_v52 = vpop.f32.mrb[68].mxu0 }
0x1744   : > { %v3428_v53 = vadd.f32 %v4918_v51, %v3427_v52  ;;  %v5353_v54 = vpop.f32.mrb[69].mxu0 }
0x1745   : > { %v3430_v55 = vpop.f32.mrb[70].mxu0 }
0x1746   : > { %v5354_v57 = vpop.f32.mrb[71].mxu0  ;;  %v3433_v58 = vadd.f32 %v3428_v53, %v6666_v56  ;;  %v5569_v56 = vld [vmem:[%s7136_s26 + $0x18] sm:$0xff]  }
0x1747   : > { %5366 = vmatpush3.bf16.msra.mxu0 %v5569_v56 }
0x1748   : > { %v3434_v59 = vsel %vm1124_vm1, %v3433_v58, 0.0  ;;  %5379 = vmatprep.subr.bf16.mxu0 %v5815_v0 }
0x1749   : > { %3435 = vadd.xlane.f32.xlu0 %v3434_v59 }
0x174a   : > { %5368 = vmatmul.mubr.msk.bf16.vlgmr.msra.gmra.mrb[72].mxu0 %vm1124_vm1, %v6397_v60 }
0x174b   : > { %5381 = vmatprep.mubr.msk.bf16.mxu0 %vm5816_vm0, %v5815_v0 }
0x17d6   : > { %v3436_v62 = vpop.xlane.xlu0 %3435 }
0x17d7   : > { %v3437_v63 = vmul.f32 0.03125, %v3436_v62 }
0x17d9   : > { %v3438_v2 = vsub.f32 %v3433_v58, %v3437_v63 }
0x17db   : > { %v3439_v4 = vmul.f32 %v3438_v2, %v3438_v2 }
0x17dd   : > { %v3440_v5 = vsel %vm1124_vm1, %v3439_v4, 0.0 }
0x17de   : > { %3441 = vadd.xlane.f32.xlu1 %v3440_v5 }
0x181d   : > { %v3591_v17 = vpop.f32.mrb[72].mxu0 }
0x181e   : > { %v3592_v10 = vadd.f32 %v4938_v16, %v3591_v17  ;;  %v5369_v19 = vpop.f32.mrb[73].mxu0 }
0x181f   : > { %v3594_v20 = vpop.f32.mrb[74].mxu0 }
0x1820   : > { %v3595_v21 = vadd.f32 %v4938_v16, %v3594_v20  ;;  %v5370_v23 = vpop.f32.mrb[75].mxu0 }
0x1822   : > { %v3665_v24 = vpack.c.bf16 %v3595_v21, %v3592_v10 }
0x1824   : > { %3774 = vrot.lane.b32.xlu0 %v3665_v24, %s7142_s0  ;;  %v3671_v25 = vsel %vm1172_vm2, %v3665_v24, 0 }
0x1825   : > { %5380 = vmatpush3.bf16.xpose.msra.mxu0 %v3671_v25 }
0x1826   : > { %5391 = vmatprep.subr.bf16.mxu0 %v5815_v0 }
0x1828   : > { %3889 = vrot.lane.b32.xlu0 %v3665_v24, %s7143_s19 }
0x182c   : > { %4003 = vrot.lane.b32.xlu0 %v3665_v24, %s7144_s12 }
0x186b   : > { %v3442_v9 = vpop.xlane.xlu1 %3441 }
0x186c   : > { %v3443_v11 = vmul.f32 0.03125, %v3442_v9 }
0x186e   : > { %v3444_v60 = vadd.f32 1e-05, %v3443_v11 }
0x1870   : > { %5638 = vrsqrt.f32 %v3444_v60 }
0x187a   : > { %v5639_v12 = vpop.eup %5638 }
0x187b   : > { %v3446_v1 = vmul.f32 %v5639_v12, %v3438_v2 }
0x187d   : > { %v3453_v6 = vmul.f32 %v4922_v3, %v3446_v1 }
0x187f   : > { %v6810_v14 = vadd.f32 %v4923_v13, %v3453_v6 }
0x1881   : > { %v3463_v15 = vpack.c.bf16 %v6810_v14, %v6810_v14 }
0x1883   : > { %5360 = vmatmul.mubr.msk.bf16.vlgmr.msra.gmra.mrb[64].mxu1 %vm1124_vm1, %v3463_v15 }
0x1884   : > { %5375 = vmatprep.mubr.msk.bf16.mxu1 %vm5816_vm0, %v5815_v0  ;;  %5372 = vmatpush3.bf16.msra.mxu1 %v5572_v35 }
0x1885   : > { %5373 = vmatprep.subr.bf16.mxu1 %v5815_v0 }
0x1888   : > { %5374 = vmatpush3.bf16.msra.mxu1 %v5573_v36 }
0x1889   : > { %5385 = vmatprep.subr.bf16.mxu1 %v5815_v0 }
0x188b   : > { %5376 = vmatmul.mubr.msk.bf16.vlgmr.msra.gmra.mrb[68].mxu1 %vm1124_vm1, %v6541_v18 }
0x188c   : > { %5387 = vmatprep.mubr.msk.bf16.mxu1 %vm5816_vm0, %v5815_v0 }
0x1896   : > { %v3775_v31 = vpop.permute.xlu0 %3774 }
0x1897   : > { %v3780_v34 = vsel %vm1172_vm2, %v3775_v31, 0 }
0x189a   : > { %v3890_v37 = vpop.permute.xlu0 %3889 }
0x189b   : > { %v3895_v38 = vsel %vm1172_vm2, %v3890_v37, 0 }
0x189e   : > { %v4004_v39 = vpop.permute.xlu0 %4003 }
0x189f   : > { %v4009_v41 = vsel %vm1172_vm2, %v4004_v39, 0 }
0x1956   : > { %v3526_v27 = vpop.f32.mrb[64].mxu1 }
0x1957   : > { %v3527_v28 = vadd.f32 %v4930_v26, %v3526_v27  ;;  %v5361_v29 = vpop.f32.mrb[65].mxu1 }
0x1958   : > { %v3529_v30 = vpop.f32.mrb[66].mxu1 }
0x1959   : > { %v3664_v32 = vpack.c.bf16 %v3527_v28, %v3527_v28  ;;  %v5362_v33 = vpop.f32.mrb[67].mxu1 }
0x195b   : > { %3771 = vrot.lane.b32.xlu1 %v3664_v32, %s7142_s0  ;;  %5382 = vmatmul.mubr.msk.bf16.vlgmr.msra.gmra.mrb[76].mxu0 %vm1172_vm2, %v3664_v32 }
0x195c   : > { %5392 = vmatpush3.bf16.xpose.msra.mxu0 %v3780_v34  ;;  %5393 = vmatprep.mubr.msk.bf16.mxu0 %vm5816_vm0, %v5815_v0 }
0x195d   : > { %5403 = vmatprep.subr.bf16.mxu0 %v5815_v0 }
0x195e   : > { %v3657_v48 = vpop.f32.mrb[68].mxu1 }
0x195f   : > { %3887 = vrot.lane.b32.xlu1 %v3664_v32, %s7143_s19  ;;  %v3658_v49 = vadd.f32 %v4947_v47, %v3657_v48  ;;  %v5377_v50 = vpop.f32.mrb[69].mxu1 }
0x1960   : > { %v3660_v51 = vpop.f32.mrb[70].mxu1 }
0x1961   : > { %v3661_v52 = vadd.f32 %v4947_v47, %v3660_v51  ;;  %v5378_v53 = vpop.f32.mrb[71].mxu1 }
0x1963   : > { %4001 = vrot.lane.b32.xlu1 %v3664_v32, %s7144_s12  ;;  %v3666_v54 = vpack.c.bf16 %v3661_v52, %v3658_v49 }
0x1965   : > { %5386 = vmatpush3.bf16.msra.mxu1 %v3666_v54 }
0x1966   : > { %5397 = vmatprep.subr.bf16.mxu1 %v5815_v0 }
0x19cd   : > { %v3772_v22 = vpop.permute.xlu1 %3771 }
0x19ce   : > { %5394 = vmatmul.mubr.msk.bf16.vlgmr.msra.gmra.mrb[80].mxu0 %vm1172_vm2, %v3772_v22 }
0x19cf   : > { %5404 = vmatpush3.bf16.xpose.msra.mxu0 %v3895_v38  ;;  %5405 = vmatprep.mubr.msk.bf16.mxu0 %vm5816_vm0, %v5815_v0 }
0x19d0   : > { %5415 = vmatprep.subr.bf16.mxu0 %v5815_v0 }
0x19d1   : > { %v3888_v40 = vpop.permute.xlu1 %3887 }
0x19d5   : > { %v4002_v18 = vpop.permute.xlu1 %4001 }
0x19d6   : > { %5406 = vmatmul.mubr.msk.bf16.vlgmr.msra.gmra.mrb[84].mxu0 %vm1172_vm2, %v3888_v40 }
0x19d7   : > { %5416 = vmatpush3.bf16.xpose.msra.mxu0 %v4009_v41  ;;  %5417 = vmatprep.mubr.msk.bf16.mxu0 %vm5816_vm0, %v5815_v0 }
0x19d8   : > { %5427 = vmatprep.subr.bf16.mxu0 %v5815_v0 }
0x19de   : > { %5418 = vmatmul.mubr.msk.bf16.vlgmr.msra.gmra.mrb[88].mxu0 %vm1172_vm2, %v4002_v18 }
0x19df   : > { %5431 = vmatprep.mubr.msk.bf16.mxu0 %vm5816_vm0, %v5815_v0 }
0x1a2e   : > { %v3707_v42 = vpop.f32.mrb[76].mxu0 }
0x1a2f   : > { %v5383_v43 = vpop.f32.mrb[77].mxu0  ;;  %v3713_v44 = vsel %vm2143_vm15, %v3707_v42, -inf }
0x1a30   : > { %3714 = vmax.xlane.f32.xlu0 %v3713_v44  ;;  %v3710_v45 = vpop.f32.mrb[78].mxu0 }
0x1a31   : > { %v5384_v46 = vpop.f32.mrb[79].mxu0 }
0x1aa1   : > { %v3816_v55 = vpop.f32.mrb[80].mxu0 }
0x1aa2   : > { %v5395_v57 = vpop.f32.mrb[81].mxu0  ;;  %v3822_v58 = vsel %vm2143_vm15, %v3816_v55, -inf }
0x1aa3   : > { %3823 = vmax.xlane.f32.xlu1 %v3822_v58  ;;  %v3819_v59 = vpop.f32.mrb[82].mxu0 }
0x1aa4   : > { %v5396_v61 = vpop.f32.mrb[83].mxu0 }
0x1aa5   : > { %v5574_v61 = vld [vmem:[%s7022_s14 + $0x10] sm:$0xff]  }
0x1aa6   : > { %5428 = vmatpush3.bf16.msra.mxu0 %v5574_v61 }
0x1aa7   : > { %5429 = vmatprep.subr.bf16.mxu0 %v5815_v0 }
0x1aa9   : > { %v3931_v62 = vpop.f32.mrb[84].mxu0 }
0x1aaa   : > { %v5407_v63 = vpop.f32.mrb[85].mxu0  ;;  %v3937_v2 = vsel %vm2143_vm15, %v3931_v62, -inf }
0x1aab   : > { %3938 = vmax.xlane.f32.xlu0 %v3937_v2  ;;  %v3934_v4 = vpop.f32.mrb[86].mxu0 }
0x1aac   : > { %v5408_v5 = vpop.f32.mrb[87].mxu0 }
0x1ab1   : > { %v4045_v56 = vpop.f32.mrb[88].mxu0 }
0x1ab2   : > { %v5419_v7 = vpop.f32.mrb[89].mxu0  ;;  %v4051_v8 = vsel %vm2143_vm15, %v4045_v56, -inf }
0x1ab3   : > { %4052 = vmax.xlane.f32.xlu0 %v4051_v8  ;;  %v4048_v9 = vpop.f32.mrb[90].mxu0 }
0x1ab4   : > { %v5420_v11 = vpop.f32.mrb[91].mxu0 }
0x1abd   : > { %v3715_v60 = vpop.xlane.xlu0 %3714 }
0x1abe   : > { %v3716_v12 = vsub.f32 %v3707_v42, %v3715_v60 }
0x1ac0   : > { %v3717_v3 = vmul.f32 1.442695, %v3716_v12 }
0x1ac2   : > { %5640 = vpow2.f32 %v3717_v3 }
0x1acc   : > { %v5641_v1 = vpop.eup %5640 }
0x1acd   : > { %v3719_v13 = vsel %vm2143_vm15, %v5641_v1, 0.0 }
0x1ace   : > { %3720 = vadd.xlane.f32.xlu1 %v3719_v13  ;;  %v4964_v13 = vld [vmem:[%s7023_s15 + $0x1] ss:$0 sm:$0xff] }
0x1adf   : > { %3836 = vrot.lane.b32.xlu1 %v3666_v54, %s7142_s0  ;;  %s922_s0 = scalar_lea.vmem %s7164_s11, %s7162_s22 }
0x1b30   : > { %v3824_v6 = vpop.xlane.xlu1 %3823 }
0x1b31   : > { %v3825_v15 = vsub.f32 %v3816_v55, %v3824_v6 }
0x1b33   : > { %v3826_v16 = vmul.f32 1.442695, %v3825_v15 }
0x1b35   : > { %5642 = vpow2.f32 %v3826_v16 }
0x1b38   : > { %v3939_v17 = vpop.xlane.xlu0 %3938 }
0x1b39   : > { %v3940_v10 = vsub.f32 %v3931_v62, %v3939_v17  ;;  %v5575_v62 = vld [vmem:[%s7022_s14 + $0x18] sm:$0xff]  }
0x1b3a   : > { %5430 = vmatpush3.bf16.msra.mxu0 %v5575_v62 }
0x1b3b   : > { %v3941_v19 = vmul.f32 1.442695, %v3940_v10  ;;  %5443 = vmatprep.subr.bf16.mxu0 %v5815_v0 }
0x1b3d   : > { %5644 = vpow2.f32 %v3941_v19 }
0x1b3f   : > { %v5643_v20 = vpop.eup %5642 }
0x1b40   : > { %v4053_v21 = vpop.xlane.xlu0 %4052  ;;  %v3828_v23 = vsel %vm2143_vm15, %v5643_v20, 0.0 }
0x1b41   : > { %v4054_v24 = vsub.f32 %v4045_v56, %v4053_v21  ;;  %3829 = vadd.xlane.f32.xlu0 %v3828_v23 }
0x1b43   : > { %v4055_v25 = vmul.f32 1.442695, %v4054_v24 }
0x1b45   : > { %5646 = vpow2.f32 %v4055_v25 }
0x1b47   : > { %v5645_v26 = vpop.eup %5644 }
0x1b48   : > { %v3943_v27 = vsel %vm2143_vm15, %v5645_v26, 0.0 }
0x1b49   : > { %3944 = vadd.xlane.f32.xlu1 %v3943_v27  ;;  %v5576_v27 = vld [vmem:[%s7024_s16 + $0x10] sm:$0xff]  }
0x1b4f   : > { %v5647_v28 = vpop.eup %5646 }
0x1b50   : > { %v4057_v29 = vsel %vm2143_vm15, %v5647_v28, 0.0 }
0x1b51   : > { %4058 = vadd.xlane.f32.xlu0 %v4057_v29  ;;  %v5579_v29 = vld [vmem:[%s7026_s18 + $0x28] sm:$0xff]  }
0x1b5a   : > { %4064 = vrot.lane.b32.xlu1 %v3666_v54, %s7144_s12 }
0x1b5b   : > { %v3721_v30 = vpop.xlane.xlu1 %3720 }
0x1b5c   : > { %5648 = vrcp.f32 %v3721_v30 }
0x1b5f   : > { %v3837_v34 = vpop.permute.xlu1 %3836 }
0x1b66   : > { %v5649_v31 = vpop.eup %5648 }
0x1b67   : > { %v3723_v32 = vmul.f32 %v5649_v31, %v5641_v1  ;;  %3950 = vrot.lane.b32.xlu0 %v3666_v54, %s7143_s19  ;;  %s7163_s19 = sld [smem:[#allocation37_spill]] }
0x1b69   : > { %v3725_v33 = vpack.c.bf16 %v3723_v32, %v3723_v32 }
0x1b6b   : > { %5388 = vmatmul.mubr.msk.bf16.vlgmr.msra.gmra.mrb[72].mxu1 %vm2143_vm15, %v3725_v33 }
0x1b6c   : > { %5398 = vmatpush3.bf16.msra.mxu1 %v3837_v34  ;;  %5399 = vmatprep.mubr.msk.bf16.mxu1 %vm5816_vm0, %v5815_v0  ;;  %v4968_v34 = vld [vmem:[%s7028_s20 + $0x4] ss:$0 sm:$0xff] }
0x1b6d   : > { %5409 = vmatprep.subr.bf16.mxu1 %v5815_v0 }
0x1bce   : > { %v3830_v35 = vpop.xlane.xlu0 %3829 }
0x1bcf   : > { %5650 = vrcp.f32 %v3830_v35 }
0x1bd6   : > { %v3945_v36 = vpop.xlane.xlu1 %3944 }
0x1bd7   : > { %5652 = vrcp.f32 %v3945_v36  ;;  %v4969_v36 = vld [vmem:[%s7029_s21 + $0x4] ss:$0 sm:$0xff] }
0x1bd9   : > { %v5651_v37 = vpop.eup %5650 }
0x1bda   : > { %v3832_v22 = vmul.f32 %v5651_v37, %v5643_v20  ;;  %v4065_v43 = vpop.permute.xlu1 %4064 }
0x1bdc   : > { %v3834_v38 = vpack.c.bf16 %v3832_v22, %v3832_v22  ;;  %v3833_v44 = vadd.f32 %v3832_v22, %v3723_v32 }
0x1bde   : > { %5400 = vmatmul.mubr.msk.bf16.vlgmr.msra.gmra.mrb[76].mxu1 %vm2143_vm15, %v3834_v38  ;;  %v4059_v39 = vpop.xlane.xlu0 %4058 }
0x1bdf   : > { %5654 = vrcp.f32 %v4059_v39  ;;  %5411 = vmatprep.mubr.msk.bf16.mxu1 %vm5816_vm0, %v5815_v0  ;;  %v5580_v39 = vld [vmem:[%s7026_s18 + $0x30] sm:$0xff]  }
0x1be1   : > { %v5653_v40 = vpop.eup %5652 }
0x1be2   : > { %v3947_v41 = vmul.f32 %v5653_v40, %v5645_v26  ;;  %v3951_v18 = vpop.permute.xlu0 %3950  ;;  %v5581_v40 = vld [vmem:[%s7026_s18 + $0x38] sm:$0xff]  }
0x1be3   : > { %5410 = vmatpush3.bf16.msra.mxu1 %v3951_v18 }
0x1be4   : > { %v3949_v42 = vpack.c.bf16 %v3947_v41, %v3947_v41  ;;  %5421 = vmatprep.subr.bf16.mxu1 %v5815_v0  ;;  %v3948_v46 = vadd.f32 %v3947_v41, %v3833_v44  ;;  %v4975_v41 = vld [vmem:[#allocation5 + $0x1] ss:$0 sm:$0xff] }
0x1be6   : > { %5412 = vmatmul.mubr.msk.bf16.vlgmr.msra.gmra.mrb[80].mxu1 %vm2143_vm15, %v3949_v42 }
0x1be7   : > { %5422 = vmatpush3.bf16.msra.mxu1 %v4065_v43  ;;  %5423 = vmatprep.mubr.msk.bf16.mxu1 %vm5816_vm0, %v5815_v0 }
0x1be8   : > { %5435 = vmatprep.subr.bf16.mxu1 %v5815_v0 }
0x1be9   : > { %v5655_v45 = vpop.eup %5654 }
0x1bea   : > { %v4061_v47 = vmul.f32 %v5655_v45, %v5647_v28  ;;  %v5577_v28 = vld [vmem:[%s7024_s16 + $0x18] sm:$0xff]  }
0x1bec   : > { %v4062_v48 = vadd.f32 %v4061_v47, %v3948_v46  ;;  %v4063_v49 = vpack.c.bf16 %v4061_v47, %v4061_v47 }
0x1bee   : > { %v4116_v50 = vmul.f32 0.25, %v4062_v48  ;;  %5424 = vmatmul.mubr.msk.bf16.vlgmr.msra.gmra.mrb[84].mxu1 %vm2143_vm15, %v4063_v49  ;;  %v4987_v48 = vld [vmem:[#allocation7 + $0x1] ss:$0 sm:$0xff] }
0x1bef   : > { %5439 = vmatprep.mubr.msk.bf16.mxu1 %vm5816_vm0, %v5815_v0  ;;  %5436 = vmatpush3.bf16.msra.mxu1 %v5576_v27 }
0x1bf0   : > { %4970 = vst.msk [vmem:[%s6586_s17 + $0x8] sm:$0xff] %vm2143_vm15, %v4116_v50  ;;  %5437 = vmatprep.subr.bf16.mxu1 %v5815_v0 }
0x1bf3   : > { %5438 = vmatpush3.bf16.msra.mxu1 %v5577_v28 }
0x1bf4   : > { %5455 = vmatprep.subr.bf16.mxu1 %v5815_v0 }
0x1c3e   : > { %v3763_v51 = vpop.f32.mrb[72].mxu1 }
0x1c3f   : > { %3769 = vst.msk [vmem:[#allocation2] sm:$0xff] %vm1172_vm2, %v3763_v51  ;;  %v5389_v52 = vpop.f32.mrb[73].mxu1 }
0x1c40   : > { %v3766_v53 = vpop.f32.mrb[74].mxu1 }
0x1c41   : > { %v5390_v54 = vpop.f32.mrb[75].mxu1 }
0x1cb1   : > { %v3876_v55 = vpop.f32.mrb[76].mxu1 }
0x1cb2   : > { %3883 = vrot.lane.b32.xlu1 %v3876_v55, %s7148_s23  ;;  %v5401_v57 = vpop.f32.mrb[77].mxu1  ;;  %s7165_s23 = sld [smem:[#allocation40_spill]] }
0x1cb3   : > { %v3879_v58 = vpop.f32.mrb[78].mxu1 }
0x1cb4   : > { %v5402_v59 = vpop.f32.mrb[79].mxu1 }
0x1cb9   : > { %v3990_v63 = vpop.f32.mrb[80].mxu1 }
0x1cba   : > { %3997 = vrot.lane.b32.xlu0 %v3990_v63, %s7149_s27  ;;  %v5413_v2 = vpop.f32.mrb[81].mxu1  ;;  %v5582_v63 = vld [vmem:[%s7163_s19] sm:$0xff]   ;;  %s926_s27 = scalar_lea.vmem %s7165_s23, %s7162_s22 }
0x1cbb   : > { %v3993_v4 = vpop.f32.mrb[82].mxu1  ;;  %v5583_v2 = vld [vmem:[%s7163_s19 + $0x8] sm:$0xff]  }
0x1cbc   : > { %v5414_v5 = vpop.f32.mrb[83].mxu1 }
0x1cc1   : > { %v4104_v56 = vpop.f32.mrb[84].mxu1 }
0x1cc2   : > { %4111 = vrot.lane.b32.xlu1 %v4104_v56, %s7150_s24  ;;  %v5425_v7 = vpop.f32.mrb[85].mxu1  ;;  %s7166_s24 = sld [smem:[#allocation20_spill]] }
0x1cc3   : > { %v4107_v8 = vpop.f32.mrb[86].mxu1 }
0x1cc4   : > { %v5426_v9 = vpop.f32.mrb[87].mxu1  ;;  %v4993_v8 = vld [vmem:[%s7028_s20 + $0x5] ss:$0 sm:$0xff] }
0x1cc8   : > { %p7167_p8 = scmp.ne.s32.totalorder %s7166_s24, 0 }
0x1cc9   : > { %s7168_s29 = sld [smem:[#allocation17_spill]] (%p7167_p8) }
0x1ccf   : > { %s5003_s9 = sshll.u32 (%p7167_p8), %s7168_s29, 3 }
0x1d24   : > { %v3884_v11 = vpop.permute.xlu1 %3883 }
0x1d25   : > { %3886 = vst.msk [vmem:[#allocation2] sm:$0xff] %vm1397_vm4, %v3884_v11 }
0x1d2c   : > { %v3998_v60 = vpop.permute.xlu0 %3997 }
0x1d2d   : > { %4000 = vst.msk [vmem:[#allocation2] sm:$0xff] %vm1514_vm5, %v3998_v60 }
0x1d34   : > { %v4112_v12 = vpop.permute.xlu1 %4111 }
0x1d35   : > { %4114 = vst.msk [vmem:[#allocation2] sm:$0xff] %vm1631_vm6, %v4112_v12 }
0x1d3c   : > { %v4115_v3 = vld [vmem:[#allocation2] sm:$0xff] }
0x1d3d   : > { %v4117_v1 = vpack.c.bf16 %v4115_v3, %v4115_v3 }
0x1d3f   : > { %5432 = vmatmul.mubr.msk.bf16.vlgmr.msra.gmra.mrb[92].mxu0 %vm1124_vm1, %v4117_v1  ;;  %v4996_v1 = vld [vmem:[#allocation8] ss:$0 sm:$0xff] }
0x1d40   : > { %5451 = vmatprep.mubr.msk.bf16.mxu0 %vm5816_vm0, %v5815_v0 }
0x1e12   : > { %v4180_v6 = vpop.f32.mrb[92].mxu0 }
0x1e13   : > { %v4181_v15 = vadd.f32 %v4964_v13, %v4180_v6  ;;  %v5433_v16 = vpop.f32.mrb[93].mxu0 }
0x1e14   : > { %v4183_v17 = vpop.f32.mrb[94].mxu0 }
0x1e15   : > { %v5434_v10 = vpop.f32.mrb[95].mxu0  ;;  %v4186_v19 = vadd.f32 %v4181_v15, %v6810_v14  ;;  %v5578_v14 = vld [vmem:[%s7026_s18 + $0x20] sm:$0xff]  }
0x1e16   : > { %5444 = vmatpush3.bf16.msra.mxu0 %v5578_v14  ;;  %v4531_v10 = vld [vmem:[%s6669_s5] sm:$0xff] (%p7167_p8) }
0x1e17   : > { %v4187_v20 = vsel %vm1124_vm1, %v4186_v19, 0.0  ;;  %5445 = vmatprep.subr.bf16.mxu0 %v5815_v0 }
0x1e18   : > { %4188 = vadd.xlane.f32.xlu0 %v4187_v20 }
0x1e1a   : > { %5446 = vmatpush3.bf16.msra.mxu0 %v5579_v29 }
0x1e1b   : > { %5447 = vmatprep.subr.bf16.mxu0 %v5815_v0 }
0x1e1e   : > { %5448 = vmatpush3.bf16.msra.mxu0 %v5580_v39 }
0x1e1f   : > { %5449 = vmatprep.subr.bf16.mxu0 %v5815_v0 }
0x1e22   : > { %5450 = vmatpush3.bf16.msra.mxu0 %v5581_v40 }
0x1ea5   : > { %v4189_v21 = vpop.xlane.xlu0 %4188 }
0x1ea6   : > { %v4190_v23 = vmul.f32 0.03125, %v4189_v21 }
0x1ea8   : > { %v4191_v24 = vsub.f32 %v4186_v19, %v4190_v23 }
0x1eaa   : > { %v4192_v25 = vmul.f32 %v4191_v24, %v4191_v24 }
0x1eac   : > { %v4193_v26 = vsel %vm1124_vm1, %v4192_v25, 0.0 }
0x1ead   : > { %4194 = vadd.xlane.f32.xlu1 %v4193_v26 }
0x1f3a   : > { %v4195_v30 = vpop.xlane.xlu1 %4194 }
0x1f3b   : > { %v4196_v31 = vmul.f32 0.03125, %v4195_v30 }
0x1f3d   : > { %v4197_v32 = vadd.f32 1e-05, %v4196_v31 }
0x1f3f   : > { %5656 = vrsqrt.f32 %v4197_v32 }
0x1f49   : > { %v5657_v33 = vpop.eup %5656 }
0x1f4a   : > { %v4199_v35 = vmul.f32 %v5657_v33, %v4191_v24 }
0x1f4c   : > { %v4206_v37 = vmul.f32 %v4968_v34, %v4199_v35 }
0x1f4e   : > { %v4213_v22 = vadd.f32 %v4969_v36, %v4206_v37 }
0x1f50   : > { %v4216_v38 = vpack.c.bf16 %v4213_v22, %v4213_v22 }
0x1f52   : > { %5440 = vmatmul.mubr.msk.bf16.vlgmr.msra.gmra.mrb[88].mxu1 %vm1124_vm1, %v4216_v38 }
0x1f53   : > { %5459 = vmatprep.mubr.msk.bf16.mxu1 %vm5816_vm0, %v5815_v0  ;;  %5456 = vmatpush3.bf16.msra.mxu1 %v5582_v63 }
0x1f54   : > { %5457 = vmatprep.subr.bf16.mxu1 %v5815_v0  ;;  %v4994_v0 = vld [vmem:[%s7029_s21 + $0x5] ss:$0 sm:$0xff] }
0x1f57   : > { %5458 = vmatpush3.bf16.msra.mxu1 %v5583_v2 }
0x2025   : > { %v4279_v18 = vpop.f32.mrb[88].mxu1 }
0x2026   : > { %v4280_v42 = vadd.f32 %v4975_v41, %v4279_v18  ;;  %v5441_v43 = vpop.f32.mrb[89].mxu1 }
0x2027   : > { %v4282_v44 = vpop.f32.mrb[90].mxu1 }
0x2028   : > { %v4285_v45 = vmax.f32 %v4280_v42, 0.0  ;;  %v5442_v46 = vpop.f32.mrb[91].mxu1 }
0x202a   : > { %v4286_v47 = vpack.c.bf16 %v4285_v45, %v4285_v45 }
0x202c   : > { %5452 = vmatmul.mubr.msk.bf16.vlgmr.msra.gmra.mrb[96].mxu0 %vm2752_vm7, %v4286_v47 }
0x20ff   : > { %v4365_v49 = vpop.f32.mrb[96].mxu0 }
0x2100   : > { %v4366_v50 = vadd.f32 %v4987_v48, %v4365_v49  ;;  %v5453_v51 = vpop.f32.mrb[97].mxu0 }
0x2101   : > { %v4368_v52 = vpop.f32.mrb[98].mxu0 }
0x2102   : > { %v5454_v53 = vpop.f32.mrb[99].mxu0  ;;  %v4371_v54 = vadd.f32 %v4366_v50, %v4213_v22 }
0x2104   : > { %v4372_v55 = vsel %vm1124_vm1, %v4371_v54, 0.0 }
0x2105   : > { %4373 = vadd.xlane.f32.xlu0 %v4372_v55 }
0x2192   : > { %v4374_v57 = vpop.xlane.xlu0 %4373 }
0x2193   : > { %v4375_v58 = vmul.f32 0.03125, %v4374_v57 }
0x2195   : > { %v4376_v59 = vsub.f32 %v4371_v54, %v4375_v58 }
0x2197   : > { %v4377_v61 = vmul.f32 %v4376_v59, %v4376_v59 }
0x2199   : > { %v4378_v62 = vsel %vm1124_vm1, %v4377_v61, 0.0 }
0x219a   : > { %4379 = vadd.xlane.f32.xlu0 %v4378_v62 }
0x2227   : > { %v4380_v4 = vpop.xlane.xlu0 %4379 }
0x2228   : > { %v4381_v5 = vmul.f32 0.03125, %v4380_v4 }
0x222a   : > { %v4382_v56 = vadd.f32 1e-05, %v4381_v5 }
0x222c   : > { %5658 = vrsqrt.f32 %v4382_v56 }
0x2236   : > { %v5659_v7 = vpop.eup %5658 }
0x2237   : > { %v4384_v9 = vmul.f32 %v5659_v7, %v4376_v59 }
0x2239   : > { %v4391_v11 = vmul.f32 %v4993_v8, %v4384_v9 }
0x223b   : > { %v4398_v60 = vadd.f32 %v4994_v0, %v4391_v11 }
0x223d   : > { %4995 = vst.msk [vmem:[%s6669_s5 + $0x8] sm:$0xff] %vm1124_vm1, %v4398_v60  ;;  %4401 = vst.msk [vmem:[%s922_s0] sm:$0xff] %vm1124_vm1, %v4398_v60  ;;  %v4402_v12 = vmax.f32 %v4398_v60, 0.0  ;;  %s7169_s0 = sld [smem:[#allocation41_spill]] (%p7167_p8) }
0x223f   : > { %v4403_v3 = vpack.c.bf16 %v4402_v12, %v4402_v12 }
0x2241   : > { %5460 = vmatmul.mubr.msk.bf16.vlgmr.msra.gmra.mrb[92].mxu1 %vm1124_vm1, %v4403_v3 }
0x2243   : > { %s4501_s12 = scalar_lea.vmem (%p7167_p8), %s7169_s0, %s5003_s9 }
0x2244   : > { %v4533_v19 = vld [vmem:[%s6669_s5 + $0x8] sm:$0xff] (%p7167_p8)  ;;  %4532 = vst [vmem:[%s4501_s12] sm:$0xff] (%p7167_p8), %v4531_v10 }
0x2245   : > { %4534 = vst [vmem:[%s4501_s12 + $0x10] sm:$0xff] (%p7167_p8), %v4533_v19 }
0x2311   : > { %4499 = sbr.rel (!%p7167_p8) target bundleno = 8984 (0x2318), region = 144 }
0x2314   : > { %v4464_v13 = vpop.f32.mrb[92].mxu1 }
0x2315   : > { %v4465_v6 = vadd.f32 %v4996_v1, %v4464_v13  ;;  %v5461_v15 = vpop.f32.mrb[93].mxu1 }
0x2316   : > { %v4467_v16 = vpop.f32.mrb[94].mxu1 }
0x2317   : > { %4470 = vst [vmem:[%s926_s27] sm:$0xff] %v4465_v6  ;;  %v5462_v17 = vpop.f32.mrb[95].mxu1 }
0x2318 PF: > { %s7170_s22 = sld [smem:[#allocation20_spill]] }
0x231e   : > { %p7171_p10 = scmp.ne.s32.totalorder %s7170_s22, 0 }
0x231f   : > { %s7172_s30 = sld [smem:[#allocation17_spill]] (%p7171_p10)  ;;  %v4572_v20 = vld [vmem:[%s6248_s8] sm:$0xff] (%p7171_p10)  ;;  %v4574_v21 = vld [vmem:[%s6248_s8 + $0x8] sm:$0xff] (%p7171_p10)  ;;  %s7173_s29 = sld [smem:[#allocation42_spill]] (%p7171_p10) }
0x2320   : > { %4540 = sbr.rel (!%p7171_p10) target bundleno = 9000 (0x2328), region = 182 }
0x2325   : > { %s5004_s23 = sshll.u32 (%p7171_p10), %s7172_s30, 3 }
0x2326   : > { %s4542_s5 = scalar_lea.vmem (%p7171_p10), %s7173_s29, %s5004_s23 }
0x2327   : > { %4573 = vst [vmem:[%s4542_s5] sm:$0xff] %v4572_v20  ;;  %4575 = vst [vmem:[%s4542_s5 + $0x10] sm:$0xff] %v4574_v21 }
0x2328 PF: > { %s7174_s9 = sld [smem:[#allocation20_spill]] }
0x232e   : > { %p7175_p12 = scmp.ne.s32.totalorder %s7174_s9, 0 }
0x232f   : > { %s7176_s4 = sld [smem:[#allocation17_spill]] (%p7175_p12)  ;;  %v4613_v23 = vld [vmem:[%s6586_s17] sm:$0xff] (%p7175_p12)  ;;  %v4615_v24 = vld [vmem:[%s6586_s17 + $0x8] sm:$0xff] (%p7175_p12)  ;;  %s7177_s22 = sld [smem:[#allocation43_spill]] (%p7175_p12) }
0x2330   : > { %4581 = sbr.rel (!%p7175_p12) target bundleno = 9016 (0x2338), region = 220 }
0x2335   : > { %s5005_s11 = sshll.u32 (%p7175_p12), %s7176_s4, 3 }
0x2336   : > { %s4583_s8 = scalar_lea.vmem (%p7175_p12), %s7177_s22, %s5005_s11 }
0x2337   : > { %4614 = vst [vmem:[%s4583_s8] sm:$0xff] %v4613_v23  ;;  %4616 = vst [vmem:[%s4583_s8 + $0x10] sm:$0xff] %v4615_v24 }
0x2338 PF: > { %s7178_s9 = sld [smem:[#allocation18_spill]]  ;;  %s7179_s8 = sld [smem:[#allocation16_spill]] }
0x2339   : > { %s7180_s5 = sld [smem:[#allocation19_spill]] }
0x233e   : > { %p39_p2 = scmp.ge.s32.totalorder %s7178_s9, 4  }
0x2340   :  { %41 = sbr.rel (!%p39_p2) target bundleno = 27 (0x1b), region = 346 }
0x2347   :  { %4660 = vsyncpa [#allocation4], 1 }
0x2348   :  { %4662 = vsyncpa [#allocation4 + $0x1], 1 }
0x2349   :  { %4663 = vsyncpa [#allocation6], 1 }
0x234a   :  { %4664 = vsyncpa [#allocation9], 1 }

</bundles_post_ra>
